<compile_context>
chip_gen: v7x
topology: tpu7x:2x2x1
jax: 0.10.0
libtpu: 0.0.40
codegen_flags: <defaults>
</compile_context>

<pallas_src>
import functools

import jax
import jax.numpy as jnp
from jax import lax
from jax.experimental import pallas as pl
from jax.experimental.pallas import tpu as pltpu

# ---- small stand-in sizes for the original GVCNN dims ----------------------
NUM_CLASSES = 16     # stands for 40
GROUP_NUM   = 8      # same as the module default
C, H, W     = 3, 16, 16
D_IN        = C * H * W   # flattened image per view (768, multiple of 128)
D_RAW       = 128         # stands for 256*28*28 flattened FCN features
D_FC_HID    = 32          # stands for 256 in self.FC
D_CNN       = 128         # stands for 1024 (CNN feature after squeeze)
H1          = 64          # stands for 512 (fc_block_1)
H2          = 32          # stands for 256 (fc_block_2)
VIEW_TILE   = 128         # rows per grid step (full MXU row height)

# TODO(synk): pretrained GoogLeNet FCN/CNN backbones have no clean Pallas
# equivalent here; they are replaced by single Linear+ReLU stand-ins.


def _gvcnn_kernel(total_v,
                  x_ref, objid_ref, objsel_ref,
                  wbig_ref, bbig_ref,
                  wfc1_ref, bfc1_ref, wfc2_ref, bfc2_ref,
                  w1_ref, b1_ref, w2_ref, b2_ref, w3_ref, b3_ref,
                  out_ref, feat_scr, score_scr):
    i = pl.program_id(0)
    tv = x_ref.shape[0]
    row0 = pl.multiple_of(i * tv, tv)

    # ---- fused per-view matmul: one 256-lane RHS  W_big = [w_cnn | w_fcn] ----
    x = x_ref[...]                                                    # (TV, D_IN) bf16
    y = jnp.dot(x, wbig_ref[...],
                preferred_element_type=jnp.float32) + bbig_ref[...]   # (TV, 256) f32

    # ragged last tile: rows read past total_v are garbage -> mask them to 0
    local = lax.broadcasted_iota(jnp.int32, (tv, 1), 0)
    rvalid = (row0 + local) < total_v                                 # (TV, 1) bool

    # CNN descriptor stand-in (GoogLeNet CNN -> squeeze), stored in bf16
    feat = jnp.maximum(y[:, :D_CNN], 0.0)
    feat_scr[pl.ds(row0, tv), :] = jnp.where(rvalid, feat, 0.0).astype(jnp.bfloat16)

    # ---- per-view score head (FCN stand-in + self.FC = (Linear,ReLU)x2) ----
    raw = jnp.maximum(y[:, D_CNN:], 0.0)
    h = jnp.maximum(
        jnp.dot(raw.astype(jnp.bfloat16), wfc1_ref[...],
                preferred_element_type=jnp.float32) + bfc1_ref[...], 0.0)
    sc = jnp.maximum(
        jnp.sum(h * wfc2_ref[...], axis=-1, keepdims=True) + bfc2_ref[0], 0.0)
    # abs() of the reference is a no-op after the ReLU above, so it is dropped.
    score = jnp.where(rvalid, jax.nn.sigmoid(jnp.tanh(sc)), 0.0)      # (TV, 1) f32
    # lane-dense (unmasked) store: broadcast the per-view score across 128 lanes
    score_scr[pl.ds(row0, tv), :] = jnp.broadcast_to(score,
                                                     (tv, score_scr.shape[1]))

    # ---- last grid step: group pooling + fusion + batched MLP head ----
    @pl.when(i == pl.num_programs(0) - 1)
    def _():
        feats = feat_scr[...]                                         # (V_PAD, D_CNN) bf16
        s = score_scr[...][:, :1]                                     # (V_PAD, 1) f32
        obj_id = objid_ref[...]                                       # (V_PAD, 1) int32 (-1 = pad)
        v_pad = feats.shape[0]
        n_obj = objsel_ref.shape[0]
        ng = n_obj * GROUP_NUM

        valid = obj_id >= 0
        # one-hot over (object, group) columns;  gid = floor(score * G)
        gid = jnp.clip(jnp.floor(s * GROUP_NUM), 0.0,
                       GROUP_NUM - 1.0).astype(jnp.int32)
        col_id = obj_id * GROUP_NUM + gid                             # (V_PAD, 1)
        lane = lax.broadcasted_iota(jnp.int32, (v_pad, ng), 1)
        one_hot = jnp.where(jnp.logical_and(lane == col_id, valid),
                            1.0, 0.0)                                 # (V_PAD, NG) f32

        cnt_row = jnp.sum(one_hot, axis=0, keepdims=True)             # (1, NG) group sizes
        n_v = jnp.sum(one_hot * cnt_row, axis=1, keepdims=True)       # (V,1) own group size
        ceil_row = jnp.sum(one_hot * jnp.ceil(s * n_v),
                           axis=0, keepdims=True)                     # (1, NG) sum ceil(s*n)
        cnt_safe = jnp.maximum(cnt_row, 1.0)
        w_row = ceil_row / cnt_safe                                   # cal_scores per group
        coef_row = w_row / cnt_safe                                   # w_g / n_g
        c_v = jnp.sum(one_hot * coef_row, axis=1, keepdims=True)      # (V,1) per-view coef

        # group_fusion numerator = one MXU contraction over views (bf16 in, f32 acc)
        num = jnp.dot(objsel_ref[...].astype(jnp.bfloat16),
                      (c_v * feats).astype(jnp.bfloat16),
                      preferred_element_type=jnp.float32)             # (N, D_CNN)

        lane_g = lax.broadcasted_iota(jnp.int32, (n_obj, ng), 1)
        obj_r = lax.broadcasted_iota(jnp.int32, (n_obj, ng), 0)
        gsel = jnp.logical_and(lane_g >= obj_r * GROUP_NUM,
                               lane_g < (obj_r + 1) * GROUP_NUM)
        den = jnp.sum(jnp.where(gsel, w_row, 0.0),
                      axis=1, keepdims=True)                          # (N, 1) sum of w_g
        # den >= 1/n_g > 0 for every object with >=1 view; guard is defensive only.
        shape_des = num / jnp.maximum(den, 1e-6)                      # group_fusion

        # batched MLP head over all N objects
        h1 = jnp.maximum(
            jnp.dot(shape_des.astype(jnp.bfloat16), w1_ref[...],
                    preferred_element_type=jnp.float32) + b1_ref[...], 0.0)
        # TODO(synk): nn.Dropout(0.5) treated as identity (inference mode).
        h2 = jnp.maximum(
            jnp.dot(h1.astype(jnp.bfloat16), w2_ref[...],
                    preferred_element_type=jnp.float32) + b2_ref[...], 0.0)
        out_ref[...] = jnp.dot(h2.astype(jnp.bfloat16), w3_ref[...],
                               preferred_element_type=jnp.float32) + b3_ref[...]


def _const_spec(shape):
    nd = len(shape)
    return pl.BlockSpec(shape, lambda i, _nd=nd: (0,) * _nd)


def gvcnn_forward(views, rand_view_num, params, *, view_tile=VIEW_TILE):
    """views: (total_views, C, H, W);  rand_view_num: (N,) int32 -> (N, NUM_CLASSES)."""
    total_v = views.shape[0]
    n_obj = rand_view_num.shape[0]
    n_tiles = -(-total_v // view_tile)
    v_pad = n_tiles * view_tile

    # flatten + bf16 once (halves HBM traffic of the big input); no zero-pad copy:
    # the ragged last tile is masked inside the kernel.
    x = views.reshape(total_v, -1).astype(jnp.bfloat16)

    # per-view object id and per-object view selector, precomputed on the host
    counts = rand_view_num.astype(jnp.int32)
    bounds = jnp.cumsum(counts)                                       # end offset per object
    vidx = jnp.arange(v_pad, dtype=jnp.int32)
    obj_of_view = jnp.searchsorted(bounds, vidx, side="right").astype(jnp.int32)
    obj_of_view = jnp.where(vidx < total_v, obj_of_view, -1)
    obj_id = obj_of_view.reshape(v_pad, 1)                            # (V_PAD, 1) int32
    obj_sel = (obj_of_view[None, :] ==
               jnp.arange(n_obj, dtype=jnp.int32)[:, None]).astype(jnp.float32)

    bf = lambda a: a.astype(jnp.bfloat16)
    f32 = lambda a: a.astype(jnp.float32)
    w_big = jnp.concatenate([params["w_cnn"], params["w_fcn"]], axis=1)   # (D_IN, 256)
    b_big = jnp.concatenate([params["b_cnn"], params["b_fcn"]], axis=1)   # (1, 256)

    args = (x, obj_id, obj_sel,
            bf(w_big), f32(b_big),
            bf(params["w_fc1"]), f32(params["b_fc1"]),
            f32(params["w_fc2"]), f32(params["b_fc2"]).reshape(1),
            bf(params["w1"]), f32(params["b1"]),
            bf(params["w2"]), f32(params["b2"]),
            bf(params["w3"]), f32(params["b3"]))

    in_specs = [pl.BlockSpec((view_tile, D_IN), lambda i: (i, 0))]        # streamed x tile
    in_specs += [_const_spec(a.shape) for a in args[1:8]]                 # resident consts
    in_specs += [pl.BlockSpec(memory_space=pltpu.MemorySpace.SMEM)]       # b_fc2 scalar
    in_specs += [_const_spec(a.shape) for a in args[9:]]                  # head weights

    # scoped-VMEM budget: double-buffered x tile + resident weights + carried scratch
    resident = sum(a.size * a.dtype.itemsize for a in args[1:])
    scratch_bytes = v_pad * D_CNN * 2 + v_pad * 128 * 4
    x_bufs = 2 * view_tile * D_IN * 2
    vmem_limit = int(min(max(3 * (x_bufs + resident + scratch_bytes), 8 << 20),
                         48 << 20))

    out = pl.pallas_call(
        functools.partial(_gvcnn_kernel, total_v),
        out_shape=jax.ShapeDtypeStruct((n_obj, NUM_CLASSES), jnp.float32),
        grid=(n_tiles,),
        in_specs=in_specs,
        out_specs=_const_spec((n_obj, NUM_CLASSES)),
        scratch_shapes=[pltpu.VMEM((v_pad, D_CNN), jnp.bfloat16),   # per-view descriptors
                        pltpu.VMEM((v_pad, 128), jnp.float32)],     # per-view scores (lane-dense)
        compiler_params=pltpu.CompilerParams(
            dimension_semantics=("arbitrary",),   # scratch carries across view tiles
            vmem_limit_bytes=vmem_limit),
    )(*args)
    return out


def init_params(key):
    ks = jax.random.split(key, 14)
    def w(k, shape, scale=0.05):
        return (scale * jax.random.normal(k, shape)).astype(jnp.float32)
    return dict(
        w_fcn=w(ks[0], (D_IN, D_RAW)),     b_fcn=w(ks[1], (1, D_RAW)),
        w_fc1=w(ks[2], (D_RAW, D_FC_HID)), b_fc1=w(ks[3], (1, D_FC_HID)),
        w_fc2=w(ks[4], (1, D_FC_HID)),     b_fc2=w(ks[5], (1, 1)),
        w_cnn=w(ks[6], (D_IN, D_CNN)),     b_cnn=w(ks[7], (1, D_CNN)),
        w1=w(ks[8], (D_CNN, H1)),          b1=w(ks[9], (1, H1)),
        w2=w(ks[10], (H1, H2)),            b2=w(ks[11], (1, H2)),
        w3=w(ks[12], (H2, NUM_CLASSES)),   b3=w(ks[13], (1, NUM_CLASSES)),
    )


if __name__ == "__main__":
    key = jax.random.PRNGKey(0)
    k_views, k_params = jax.random.split(key)
    # N = 4 objects with ragged view counts -> 160 views -> 2 view tiles (ragged tail)
    rand_view_num = jnp.array([40, 30, 50, 40], dtype=jnp.int32)
    total_v = int(rand_view_num.sum())
    views = jax.random.normal(k_views, (total_v, C, H, W), dtype=jnp.float32)
    params = init_params(k_params)

    out = gvcnn_forward(views, rand_view_num, params)
    out = jax.block_until_ready(out)
    assert out.shape == (rand_view_num.shape[0], NUM_CLASSES)
    assert bool(jnp.all(jnp.isfinite(out)))
    print("KERNEL_OK")
</pallas_src>

<mosaic_0001>
module attributes {stable_mosaic.version = 11 : i64} {
  func.func @_gvcnn_kernel(%arg0: i32, %arg1: memref<128x768xbf16, #tpu.memory_space<vmem>>, %arg2: memref<256x1xi32, #tpu.memory_space<vmem>>, %arg3: memref<4x256xf32, #tpu.memory_space<vmem>>, %arg4: memref<768x256xbf16, #tpu.memory_space<vmem>>, %arg5: memref<1x256xf32, #tpu.memory_space<vmem>>, %arg6: memref<128x32xbf16, #tpu.memory_space<vmem>>, %arg7: memref<1x32xf32, #tpu.memory_space<vmem>>, %arg8: memref<1x32xf32, #tpu.memory_space<vmem>>, %arg9: memref<1xf32, #tpu.memory_space<smem>>, %arg10: memref<128x64xbf16, #tpu.memory_space<vmem>>, %arg11: memref<1x64xf32, #tpu.memory_space<vmem>>, %arg12: memref<64x32xbf16, #tpu.memory_space<vmem>>, %arg13: memref<1x32xf32, #tpu.memory_space<vmem>>, %arg14: memref<32x16xbf16, #tpu.memory_space<vmem>>, %arg15: memref<1x16xf32, #tpu.memory_space<vmem>>, %arg16: memref<4x16xf32, #tpu.memory_space<vmem>>, %arg17: memref<256x128xbf16, #tpu.memory_space<vmem>>, %arg18: memref<256x128xf32, #tpu.memory_space<vmem>>) attributes {dimension_semantics = [#tpu.dimension_semantics<arbitrary>], iteration_bounds = array<i64: 2>, scalar_prefetch = 0 : i64, scratch_operands = 2 : i64, tpu.core_type = #tpu.core_type<tc>, window_params = [{transform_indices = @transform_0, window_bounds = array<i64: 128, 768>}, {pipeline_mode = #tpu.pipeline_mode<synchronous>, transform_indices = @transform_1, window_bounds = array<i64: 256, 1>}, {pipeline_mode = #tpu.pipeline_mode<synchronous>, transform_indices = @transform_2, window_bounds = array<i64: 4, 256>}, {pipeline_mode = #tpu.pipeline_mode<synchronous>, transform_indices = @transform_3, window_bounds = array<i64: 768, 256>}, {pipeline_mode = #tpu.pipeline_mode<synchronous>, transform_indices = @transform_4, window_bounds = array<i64: 1, 256>}, {pipeline_mode = #tpu.pipeline_mode<synchronous>, transform_indices = @transform_5, window_bounds = array<i64: 128, 32>}, {pipeline_mode = #tpu.pipeline_mode<synchronous>, transform_indices = @transform_6, window_bounds = array<i64: 1, 32>}, {pipeline_mode = #tpu.pipeline_mode<synchronous>, transform_indices = @transform_7, window_bounds = array<i64: 1, 32>}, {transform_indices = @transform_8, window_bounds = array<i64: 1>}, {pipeline_mode = #tpu.pipeline_mode<synchronous>, transform_indices = @transform_9, window_bounds = array<i64: 128, 64>}, {pipeline_mode = #tpu.pipeline_mode<synchronous>, transform_indices = @transform_10, window_bounds = array<i64: 1, 64>}, {pipeline_mode = #tpu.pipeline_mode<synchronous>, transform_indices = @transform_11, window_bounds = array<i64: 64, 32>}, {pipeline_mode = #tpu.pipeline_mode<synchronous>, transform_indices = @transform_12, window_bounds = array<i64: 1, 32>}, {pipeline_mode = #tpu.pipeline_mode<synchronous>, transform_indices = @transform_13, window_bounds = array<i64: 32, 16>}, {pipeline_mode = #tpu.pipeline_mode<synchronous>, transform_indices = @transform_14, window_bounds = array<i64: 1, 16>}, {pipeline_mode = #tpu.pipeline_mode<synchronous>, transform_indices = @transform_15, window_bounds = array<i64: 4, 16>}]} {
    %c128_i32 = arith.constant 128 : i32
    %0 = arith.muli %arg0, %c128_i32 : i32
    %1 = tpu.assume_multiple %0, 128 : i32
    %c0 = arith.constant 0 : index
    %c0_0 = arith.constant 0 : index
    %2 = vector.load %arg1[%c0, %c0_0] : memref<128x768xbf16, #tpu.memory_space<vmem>>, vector<128x768xbf16>
    %c0_1 = arith.constant 0 : index
    %c0_2 = arith.constant 0 : index
    %3 = vector.load %arg4[%c0_1, %c0_2] : memref<768x256xbf16, #tpu.memory_space<vmem>>, vector<768x256xbf16>
    %cst = arith.constant dense<0.000000e+00> : vector<128x256xf32>
    %4 = tpu.matmul %2, %3, %cst {dimension_numbers = #tpu.dot_dimension_numbers<[1], [0], [0], [1], [0, 0, 1, 1], [], []>} : vector<128x768xbf16>, vector<768x256xbf16>, vector<128x256xf32> -> vector<128x256xf32>
    %c0_3 = arith.constant 0 : index
    %c0_4 = arith.constant 0 : index
    %5 = vector.load %arg5[%c0_3, %c0_4] : memref<1x256xf32, #tpu.memory_space<vmem>>, vector<1x256xf32>
    %6 = vector.broadcast %5 : vector<1x256xf32> to vector<128x256xf32>
    %7 = arith.addf %4, %6 : vector<128x256xf32>
    %8 = tpu.iota {dimensions = array<i32: 0>} : vector<128x1xi32>
    %9 = vector.broadcast %1 : i32 to vector<128x1xi32>
    %10 = arith.addi %9, %8 : vector<128x1xi32>
    %c160_i32 = arith.constant 160 : i32
    %11 = vector.broadcast %c160_i32 : i32 to vector<128x1xi32>
    %12 = arith.cmpi slt, %10, %11 : vector<128x1xi32>
    %13 = vector.extract_strided_slice %7 {offsets = [0, 0], sizes = [128, 128], strides = [1, 1]} : vector<128x256xf32> to vector<128x128xf32>
    %cst_5 = arith.constant 0.000000e+00 : f32
    %14 = vector.broadcast %cst_5 : f32 to vector<128x128xf32>
    %15 = arith.maximumf %13, %14 : vector<128x128xf32>
    %cst_6 = arith.constant 0.000000e+00 : f32
    %16 = vector.shape_cast %12 : vector<128x1xi1> to vector<128x1xi1>
    %17 = vector.broadcast %16 : vector<128x1xi1> to vector<128x128xi1>
    %18 = vector.broadcast %cst_6 : f32 to vector<128x128xf32>
    %19 = arith.select %17, %15, %18 : vector<128x128xi1>, vector<128x128xf32>
    %20 = arith.truncf %19 : vector<128x128xf32> to vector<128x128xbf16>
    %21 = arith.index_cast %1 : i32 to index
    %c0_7 = arith.constant 0 : index
    %22 = vector.load %arg17[%21, %c0_7] : memref<256x128xbf16, #tpu.memory_space<vmem>>, vector<128x128xbf16>
    tpu.vector_store %arg17[%21, %c0_7], %20 {strides = array<i32>} : memref<256x128xbf16, #tpu.memory_space<vmem>>, vector<128x128xbf16>,
    %23 = vector.extract_strided_slice %7 {offsets = [0, 128], sizes = [128, 128], strides = [1, 1]} : vector<128x256xf32> to vector<128x128xf32>
    %cst_8 = arith.constant 0.000000e+00 : f32
    %24 = vector.broadcast %cst_8 : f32 to vector<128x128xf32>
    %25 = arith.maximumf %23, %24 : vector<128x128xf32>
    %26 = arith.truncf %25 : vector<128x128xf32> to vector<128x128xbf16>
    %c0_9 = arith.constant 0 : index
    %c0_10 = arith.constant 0 : index
    %27 = vector.load %arg6[%c0_9, %c0_10] : memref<128x32xbf16, #tpu.memory_space<vmem>>, vector<128x32xbf16>
    %cst_11 = arith.constant dense<0.000000e+00> : vector<128x32xf32>
    %28 = tpu.matmul %26, %27, %cst_11 {dimension_numbers = #tpu.dot_dimension_numbers<[1], [0], [0], [1], [0, 0, 1, 1], [], []>} : vector<128x128xbf16>, vector<128x32xbf16>, vector<128x32xf32> -> vector<128x32xf32>
    %c0_12 = arith.constant 0 : index
    %c0_13 = arith.constant 0 : index
    %29 = vector.load %arg7[%c0_12, %c0_13] : memref<1x32xf32, #tpu.memory_space<vmem>>, vector<1x32xf32>
    %30 = vector.broadcast %29 : vector<1x32xf32> to vector<128x32xf32>
    %31 = arith.addf %28, %30 : vector<128x32xf32>
    %cst_14 = arith.constant 0.000000e+00 : f32
    %32 = vector.broadcast %cst_14 : f32 to vector<128x32xf32>
    %33 = arith.maximumf %31, %32 : vector<128x32xf32>
    %c0_15 = arith.constant 0 : index
    %c0_16 = arith.constant 0 : index
    %34 = vector.load %arg8[%c0_15, %c0_16] : memref<1x32xf32, #tpu.memory_space<vmem>>, vector<1x32xf32>
    %35 = vector.broadcast %34 : vector<1x32xf32> to vector<128x32xf32>
    %36 = arith.mulf %33, %35 : vector<128x32xf32>
    %cst_17 = arith.constant dense<0.000000e+00> : vector<128xf32>
    %37 = vector.multi_reduction <add>, %36, %cst_17 [1] : vector<128x32xf32> to vector<128xf32>
    %38 = vector.shape_cast %37 : vector<128xf32> to vector<128x1xf32>
    %c0_18 = arith.constant 0 : index
    %39 = memref.load %arg9[%c0_18] : memref<1xf32, #tpu.memory_space<smem>>
    %40 = vector.broadcast %39 : f32 to vector<128x1xf32>
    %41 = arith.addf %38, %40 : vector<128x1xf32>
    %cst_19 = arith.constant 0.000000e+00 : f32
    %42 = vector.broadcast %cst_19 : f32 to vector<128x1xf32>
    %43 = arith.maximumf %41, %42 : vector<128x1xf32>
    %44 = math.tanh %43 : vector<128x1xf32>
    %45 = arith.negf %44 : vector<128x1xf32>
    %46 = math.exp %45 : vector<128x1xf32>
    %cst_20 = arith.constant 1.000000e+00 : f32
    %47 = vector.broadcast %cst_20 : f32 to vector<128x1xf32>
    %48 = arith.addf %47, %46 : vector<128x1xf32>
    %49 = arith.divf %47, %48 : vector<128x1xf32>
    %cst_21 = arith.constant 0.000000e+00 : f32
    %50 = vector.broadcast %cst_21 : f32 to vector<128x1xf32>
    %51 = arith.select %12, %49, %50 : vector<128x1xi1>, vector<128x1xf32>
    %52 = vector.shape_cast %51 : vector<128x1xf32> to vector<128x1xf32>
    %53 = vector.broadcast %52 : vector<128x1xf32> to vector<128x128xf32>
    %54 = arith.index_cast %1 : i32 to index
    %c0_22 = arith.constant 0 : index
    %55 = vector.load %arg18[%54, %c0_22] : memref<256x128xf32, #tpu.memory_space<vmem>>, vector<128x128xf32>
    tpu.vector_store %arg18[%54, %c0_22], %53 {strides = array<i32>} : memref<256x128xf32, #tpu.memory_space<vmem>>, vector<128x128xf32>,
    %c1_i32 = arith.constant 1 : i32
    %56 = arith.cmpi eq, %arg0, %c1_i32 : i32
    %57 = arith.extui %56 : i1 to i32
    %c0_i32 = arith.constant 0 : i32
    %58 = arith.cmpi ne, %57, %c0_i32 : i32
    scf.if %58 {
      %c0_23 = arith.constant 0 : index
      %c0_24 = arith.constant 0 : index
      %59 = vector.load %arg17[%c0_23, %c0_24] : memref<256x128xbf16, #tpu.memory_space<vmem>>, vector<256x128xbf16>
      %c0_25 = arith.constant 0 : index
      %c0_26 = arith.constant 0 : index
      %60 = vector.load %arg18[%c0_25, %c0_26] : memref<256x128xf32, #tpu.memory_space<vmem>>, vector<256x128xf32>
      %61 = vector.extract_strided_slice %60 {offsets = [0, 0], sizes = [256, 1], strides = [1, 1]} : vector<256x128xf32> to vector<256x1xf32>
      %c0_27 = arith.constant 0 : index
      %c0_28 = arith.constant 0 : index
      %62 = vector.load %arg2[%c0_27, %c0_28] : memref<256x1xi32, #tpu.memory_space<vmem>>, vector<256x1xi32>
      %c0_i32_29 = arith.constant 0 : i32
      %63 = vector.broadcast %c0_i32_29 : i32 to vector<256x1xi32>
      %64 = arith.cmpi sge, %62, %63 : vector<256x1xi32>
      %cst_30 = arith.constant 8.000000e+00 : f32
      %65 = vector.broadcast %cst_30 : f32 to vector<256x1xf32>
      %66 = arith.mulf %61, %65 : vector<256x1xf32>
      %67 = math.floor %66 : vector<256x1xf32>
      %cst_31 = arith.constant 0.000000e+00 : f32
      %cst_32 = arith.constant 7.000000e+00 : f32
      %68 = vector.broadcast %cst_31 : f32 to vector<256x1xf32>
      %69 = arith.maximumf %68, %67 : vector<256x1xf32>
      %70 = vector.broadcast %cst_32 : f32 to vector<256x1xf32>
      %71 = arith.minimumf %70, %69 : vector<256x1xf32>
      %72 = arith.fptosi %71 : vector<256x1xf32> to vector<256x1xi32>
      %c8_i32 = arith.constant 8 : i32
      %73 = vector.broadcast %c8_i32 : i32 to vector<256x1xi32>
      %74 = arith.muli %62, %73 : vector<256x1xi32>
      %75 = arith.addi %74, %72 : vector<256x1xi32>
      %76 = tpu.iota {dimensions = array<i32: 1>} : vector<256x32xi32>
      %77 = vector.broadcast %75 : vector<256x1xi32> to vector<256x32xi32>
      %78 = arith.cmpi eq, %76, %77 : vector<256x32xi32>
      %79 = vector.broadcast %64 : vector<256x1xi1> to vector<256x32xi1>
      %80 = arith.andi %78, %79 : vector<256x32xi1>
      %cst_33 = arith.constant 1.000000e+00 : f32
      %cst_34 = arith.constant 0.000000e+00 : f32
      %81 = vector.broadcast %cst_33 : f32 to vector<256x32xf32>
      %82 = vector.broadcast %cst_34 : f32 to vector<256x32xf32>
      %83 = arith.select %80, %81, %82 : vector<256x32xi1>, vector<256x32xf32>
      %cst_35 = arith.constant dense<0.000000e+00> : vector<32xf32>
      %84 = vector.multi_reduction <add>, %83, %cst_35 [0] : vector<256x32xf32> to vector<32xf32>
      %85 = vector.shape_cast %84 : vector<32xf32> to vector<1x32xf32>
      %86 = vector.broadcast %85 : vector<1x32xf32> to vector<256x32xf32>
      %87 = arith.mulf %83, %86 : vector<256x32xf32>
      %cst_36 = arith.constant dense<0.000000e+00> : vector<256xf32>
      %88 = vector.multi_reduction <add>, %87, %cst_36 [1] : vector<256x32xf32> to vector<256xf32>
      %89 = vector.shape_cast %88 : vector<256xf32> to vector<256x1xf32>
      %90 = arith.mulf %61, %89 : vector<256x1xf32>
      %91 = math.ceil %90 : vector<256x1xf32>
      %92 = vector.broadcast %91 : vector<256x1xf32> to vector<256x32xf32>
      %93 = arith.mulf %83, %92 : vector<256x32xf32>
      %cst_37 = arith.constant dense<0.000000e+00> : vector<32xf32>
      %94 = vector.multi_reduction <add>, %93, %cst_37 [0] : vector<256x32xf32> to vector<32xf32>
      %95 = vector.shape_cast %94 : vector<32xf32> to vector<1x32xf32>
      %cst_38 = arith.constant 1.000000e+00 : f32
      %96 = vector.broadcast %cst_38 : f32 to vector<1x32xf32>
      %97 = arith.maximumf %85, %96 : vector<1x32xf32>
      %98 = arith.divf %95, %97 : vector<1x32xf32>
      %99 = arith.divf %98, %97 : vector<1x32xf32>
      %100 = vector.broadcast %99 : vector<1x32xf32> to vector<256x32xf32>
      %101 = arith.mulf %83, %100 : vector<256x32xf32>
      %cst_39 = arith.constant dense<0.000000e+00> : vector<256xf32>
      %102 = vector.multi_reduction <add>, %101, %cst_39 [1] : vector<256x32xf32> to vector<256xf32>
      %103 = vector.shape_cast %102 : vector<256xf32> to vector<256x1xf32>
      %c0_40 = arith.constant 0 : index
      %c0_41 = arith.constant 0 : index
      %104 = vector.load %arg3[%c0_40, %c0_41] : memref<4x256xf32, #tpu.memory_space<vmem>>, vector<4x256xf32>
      %105 = arith.truncf %104 : vector<4x256xf32> to vector<4x256xbf16>
      %106 = arith.extf %59 : vector<256x128xbf16> to vector<256x128xf32>
      %107 = vector.broadcast %103 : vector<256x1xf32> to vector<256x128xf32>
      %108 = arith.mulf %107, %106 : vector<256x128xf32>
      %109 = arith.truncf %108 : vector<256x128xf32> to vector<256x128xbf16>
      %cst_42 = arith.constant dense<0.000000e+00> : vector<4x128xf32>
      %110 = tpu.matmul %105, %109, %cst_42 {dimension_numbers = #tpu.dot_dimension_numbers<[1], [0], [0], [1], [0, 0, 1, 1], [], []>} : vector<4x256xbf16>, vector<256x128xbf16>, vector<4x128xf32> -> vector<4x128xf32>
      %111 = tpu.iota {dimensions = array<i32: 1>} : vector<4x32xi32>
      %112 = tpu.iota {dimensions = array<i32: 0>} : vector<4x32xi32>
      %c8_i32_43 = arith.constant 8 : i32
      %113 = vector.broadcast %c8_i32_43 : i32 to vector<4x32xi32>
      %114 = arith.muli %112, %113 : vector<4x32xi32>
      %115 = arith.cmpi sge, %111, %114 : vector<4x32xi32>
      %c1_i32_44 = arith.constant 1 : i32
      %116 = vector.broadcast %c1_i32_44 : i32 to vector<4x32xi32>
      %117 = arith.addi %112, %116 : vector<4x32xi32>
      %c8_i32_45 = arith.constant 8 : i32
      %118 = vector.broadcast %c8_i32_45 : i32 to vector<4x32xi32>
      %119 = arith.muli %117, %118 : vector<4x32xi32>
      %120 = arith.cmpi slt, %111, %119 : vector<4x32xi32>
      %121 = arith.andi %115, %120 : vector<4x32xi1>
      %cst_46 = arith.constant 0.000000e+00 : f32
      %122 = vector.shape_cast %98 : vector<1x32xf32> to vector<1x32xf32>
      %123 = vector.broadcast %122 : vector<1x32xf32> to vector<4x32xf32>
      %124 = vector.broadcast %cst_46 : f32 to vector<4x32xf32>
      %125 = arith.select %121, %123, %124 : vector<4x32xi1>, vector<4x32xf32>
      %cst_47 = arith.constant dense<0.000000e+00> : vector<4xf32>
      %126 = vector.multi_reduction <add>, %125, %cst_47 [1] : vector<4x32xf32> to vector<4xf32>
      %127 = vector.shape_cast %126 : vector<4xf32> to vector<4x1xf32>
      %cst_48 = arith.constant 9.99999997E-7 : f32
      %128 = vector.broadcast %cst_48 : f32 to vector<4x1xf32>
      %129 = arith.maximumf %127, %128 : vector<4x1xf32>
      %130 = vector.broadcast %129 : vector<4x1xf32> to vector<4x128xf32>
      %131 = arith.divf %110, %130 : vector<4x128xf32>
      %132 = arith.truncf %131 : vector<4x128xf32> to vector<4x128xbf16>
      %c0_49 = arith.constant 0 : index
      %c0_50 = arith.constant 0 : index
      %133 = vector.load %arg10[%c0_49, %c0_50] : memref<128x64xbf16, #tpu.memory_space<vmem>>, vector<128x64xbf16>
      %cst_51 = arith.constant dense<0.000000e+00> : vector<4x64xf32>
      %134 = tpu.matmul %132, %133, %cst_51 {dimension_numbers = #tpu.dot_dimension_numbers<[1], [0], [0], [1], [0, 0, 1, 1], [], []>} : vector<4x128xbf16>, vector<128x64xbf16>, vector<4x64xf32> -> vector<4x64xf32>
      %c0_52 = arith.constant 0 : index
      %c0_53 = arith.constant 0 : index
      %135 = vector.load %arg11[%c0_52, %c0_53] : memref<1x64xf32, #tpu.memory_space<vmem>>, vector<1x64xf32>
      %136 = vector.broadcast %135 : vector<1x64xf32> to vector<4x64xf32>
      %137 = arith.addf %134, %136 : vector<4x64xf32>
      %cst_54 = arith.constant 0.000000e+00 : f32
      %138 = vector.broadcast %cst_54 : f32 to vector<4x64xf32>
      %139 = arith.maximumf %137, %138 : vector<4x64xf32>
      %140 = arith.truncf %139 : vector<4x64xf32> to vector<4x64xbf16>
      %c0_55 = arith.constant 0 : index
      %c0_56 = arith.constant 0 : index
      %141 = vector.load %arg12[%c0_55, %c0_56] : memref<64x32xbf16, #tpu.memory_space<vmem>>, vector<64x32xbf16>
      %cst_57 = arith.constant dense<0.000000e+00> : vector<4x32xf32>
      %142 = tpu.matmul %140, %141, %cst_57 {dimension_numbers = #tpu.dot_dimension_numbers<[1], [0], [0], [1], [0, 0, 1, 1], [], []>} : vector<4x64xbf16>, vector<64x32xbf16>, vector<4x32xf32> -> vector<4x32xf32>
      %c0_58 = arith.constant 0 : index
      %c0_59 = arith.constant 0 : index
      %143 = vector.load %arg13[%c0_58, %c0_59] : memref<1x32xf32, #tpu.memory_space<vmem>>, vector<1x32xf32>
      %144 = vector.broadcast %143 : vector<1x32xf32> to vector<4x32xf32>
      %145 = arith.addf %142, %144 : vector<4x32xf32>
      %cst_60 = arith.constant 0.000000e+00 : f32
      %146 = vector.broadcast %cst_60 : f32 to vector<4x32xf32>
      %147 = arith.maximumf %145, %146 : vector<4x32xf32>
      %148 = arith.truncf %147 : vector<4x32xf32> to vector<4x32xbf16>
      %c0_61 = arith.constant 0 : index
      %c0_62 = arith.constant 0 : index
      %149 = vector.load %arg14[%c0_61, %c0_62] : memref<32x16xbf16, #tpu.memory_space<vmem>>, vector<32x16xbf16>
      %cst_63 = arith.constant dense<0.000000e+00> : vector<4x16xf32>
      %150 = tpu.matmul %148, %149, %cst_63 {dimension_numbers = #tpu.dot_dimension_numbers<[1], [0], [0], [1], [0, 0, 1, 1], [], []>} : vector<4x32xbf16>, vector<32x16xbf16>, vector<4x16xf32> -> vector<4x16xf32>
      %c0_64 = arith.constant 0 : index
      %c0_65 = arith.constant 0 : index
      %151 = vector.load %arg15[%c0_64, %c0_65] : memref<1x16xf32, #tpu.memory_space<vmem>>, vector<1x16xf32>
      %152 = vector.broadcast %151 : vector<1x16xf32> to vector<4x16xf32>
      %153 = arith.addf %150, %152 : vector<4x16xf32>
      %c0_66 = arith.constant 0 : index
      %c0_67 = arith.constant 0 : index
      %154 = vector.load %arg16[%c0_66, %c0_67] : memref<4x16xf32, #tpu.memory_space<vmem>>, vector<4x16xf32>
      tpu.vector_store %arg16[%c0_66, %c0_67], %153 {strides = array<i32>} : memref<4x16xf32, #tpu.memory_space<vmem>>, vector<4x16xf32>,
    } else {
    }
    return
  }
  func.func @transform_0(%arg0: i32) -> (i32, i32) {
    %c0_i32 = arith.constant 0 : i32
    %c0_i32_0 = arith.constant 0 : i32
    return %arg0, %c0_i32 : i32, i32
  }
  func.func @transform_1(%arg0: i32) -> (i32, i32) {
    %c0_i32 = arith.constant 0 : i32
    %c0_i32_0 = arith.constant 0 : i32
    %c0_i32_1 = arith.constant 0 : i32
    return %c0_i32, %c0_i32_0 : i32, i32
  }
  func.func @transform_2(%arg0: i32) -> (i32, i32) {
    %c0_i32 = arith.constant 0 : i32
    %c0_i32_0 = arith.constant 0 : i32
    %c0_i32_1 = arith.constant 0 : i32
    return %c0_i32, %c0_i32_0 : i32, i32
  }
  func.func @transform_3(%arg0: i32) -> (i32, i32) {
    %c0_i32 = arith.constant 0 : i32
    %c0_i32_0 = arith.constant 0 : i32
    %c0_i32_1 = arith.constant 0 : i32
    return %c0_i32, %c0_i32_0 : i32, i32
  }
  func.func @transform_4(%arg0: i32) -> (i32, i32) {
    %c0_i32 = arith.constant 0 : i32
    %c0_i32_0 = arith.constant 0 : i32
    %c0_i32_1 = arith.constant 0 : i32
    return %c0_i32, %c0_i32_0 : i32, i32
  }
  func.func @transform_5(%arg0: i32) -> (i32, i32) {
    %c0_i32 = arith.constant 0 : i32
    %c0_i32_0 = arith.constant 0 : i32
    %c0_i32_1 = arith.constant 0 : i32
    return %c0_i32, %c0_i32_0 : i32, i32
  }
  func.func @transform_6(%arg0: i32) -> (i32, i32) {
    %c0_i32 = arith.constant 0 : i32
    %c0_i32_0 = arith.constant 0 : i32
    %c0_i32_1 = arith.constant 0 : i32
    return %c0_i32, %c0_i32_0 : i32, i32
  }
  func.func @transform_7(%arg0: i32) -> (i32, i32) {
    %c0_i32 = arith.constant 0 : i32
    %c0_i32_0 = arith.constant 0 : i32
    %c0_i32_1 = arith.constant 0 : i32
    return %c0_i32, %c0_i32_0 : i32, i32
  }
  func.func @transform_8(%arg0: i32) -> i32 {
    %c0_i32 = arith.constant 0 : i32
    %c0_i32_0 = arith.constant 0 : i32
    return %c0_i32 : i32
  }
  func.func @transform_9(%arg0: i32) -> (i32, i32) {
    %c0_i32 = arith.constant 0 : i32
    %c0_i32_0 = arith.constant 0 : i32
    %c0_i32_1 = arith.constant 0 : i32
    return %c0_i32, %c0_i32_0 : i32, i32
  }
  func.func @transform_10(%arg0: i32) -> (i32, i32) {
    %c0_i32 = arith.constant 0 : i32
    %c0_i32_0 = arith.constant 0 : i32
    %c0_i32_1 = arith.constant 0 : i32
    return %c0_i32, %c0_i32_0 : i32, i32
  }
  func.func @transform_11(%arg0: i32) -> (i32, i32) {
    %c0_i32 = arith.constant 0 : i32
    %c0_i32_0 = arith.constant 0 : i32
    %c0_i32_1 = arith.constant 0 : i32
    return %c0_i32, %c0_i32_0 : i32, i32
  }
  func.func @transform_12(%arg0: i32) -> (i32, i32) {
    %c0_i32 = arith.constant 0 : i32
    %c0_i32_0 = arith.constant 0 : i32
    %c0_i32_1 = arith.constant 0 : i32
    return %c0_i32, %c0_i32_0 : i32, i32
  }
  func.func @transform_13(%arg0: i32) -> (i32, i32) {
    %c0_i32 = arith.constant 0 : i32
    %c0_i32_0 = arith.constant 0 : i32
    %c0_i32_1 = arith.constant 0 : i32
    return %c0_i32, %c0_i32_0 : i32, i32
  }
  func.func @transform_14(%arg0: i32) -> (i32, i32) {
    %c0_i32 = arith.constant 0 : i32
    %c0_i32_0 = arith.constant 0 : i32
    %c0_i32_1 = arith.constant 0 : i32
    return %c0_i32, %c0_i32_0 : i32, i32
  }
  func.func @transform_15(%arg0: i32) -> (i32, i32) {
    %c0_i32 = arith.constant 0 : i32
    %c0_i32_0 = arith.constant 0 : i32
    %c0_i32_1 = arith.constant 0 : i32
    return %c0_i32, %c0_i32_0 : i32, i32
  }
}

</mosaic_0001>

<bundles_post_ra>
// kernel: tpu_custom_call.1
= control target key start
LH: loop header
LB: loop body
LE: loop exit
PB: predicated region body
PF: predicated region fallthrough
CT: control target
= control target key end

     0   :  { %s6977_s0 = inlined_call_operand.vmem [shape: bf16[160,768], index: 0, kind: input, shape index: {}]   ;;  %s6978_s1 = inlined_call_operand.vmem [shape: s32[256,1], index: 1, kind: input, shape index: {}]   ;;  %s6979_s2 = inlined_call_operand.hbm [shape: f32[4,256], index: 2, kind: input, shape index: {}]   ;;  %s6980_s3 = inlined_call_operand.hbm [shape: bf16[768,256], index: 3, kind: input, shape index: {}]   ;;  %s6981_s4 = inlined_call_operand.hbm [shape: f32[1,256], index: 4, kind: input, shape index: {}]   ;;  %s6982_s5 = inlined_call_operand.vmem [shape: bf16[128,32], index: 5, kind: input, shape index: {}]   ;;  %s6983_s6 = inlined_call_operand.hbm [shape: f32[1,32], index: 6, kind: input, shape index: {}]   ;;  %s6984_s7 = inlined_call_operand.hbm [shape: f32[1,32], index: 7, kind: input, shape index: {}]   ;;  %s6985_s8 = inlined_call_operand.<no memory space> [shape: f32[1], index: 8, kind: input, shape index: {}]   ;;  %s6986_s9 = inlined_call_operand.vmem [shape: bf16[128,64], index: 9, kind: input, shape index: {}]   ;;  %s6987_s10 = inlined_call_operand.vmem [shape: f32[1,64], index: 10, kind: input, shape index: {}]   ;;  %s6988_s11 = inlined_call_operand.vmem [shape: bf16[64,32], index: 11, kind: input, shape index: {}]   ;;  %s6989_s12 = inlined_call_operand.vmem [shape: f32[1,32], index: 12, kind: input, shape index: {}]   ;;  %s6990_s13 = inlined_call_operand.vmem [shape: bf16[32,16], index: 13, kind: input, shape index: {}]   ;;  %s6991_s14 = inlined_call_operand.vmem [shape: f32[1,16], index: 14, kind: input, shape index: {}]   ;;  %s6992_s15 = inlined_call_operand.hbm [shape: f32[4,16], index: 15, kind: output, shape index: {}]  }
   0x1   :  { %6998 = sst [smem:[#allocation20_spill]] %s6989_s12 }
   0x2   :  { %6999 = sst [smem:[#allocation21_spill]] %s6991_s14 }
   0x3   :  { %7000 = sst [smem:[#allocation22_spill]] %s6992_s15 }
   0x4   :  { %20 = sst [smem:[#allocation4]] %s6985_s8 }
   0x5   :  { %21 = vsyncpa [#allocation6], 0 }
   0x6   :  { %22 = vsyncpa [#allocation9], 0 }
   0x7   :  { %23 = vsyncpa [#allocation12], 0 }
   0x8   :  { %24 = vsyncpa [#allocation7], 0  ;;  %s5470_s20 = smov 0  }
   0x9 LB: > { %7001 = sst [smem:[#allocation19_spill]] %s5374_s20  ;;  %s5376_s21 = smov [#allocation8]   ;;  %s5374_s20 = sphi %s5470_s20, %s30_s20  }
   0xa   : > { %s402_s22 = sshll.u32 %s5376_s21, 4  ;;  %s5476_s23 = sadd.s32 4294967295, %s5374_s20   ;;  %s5481_s22 = int_to_ptr.vmem [resolvable:$true] %s402_s22 }
   0xb   : > { %p4243_p0 = scmp.ge.s32.totalorder %s5374_s20, 1  ;;  %p376_p1 = scmp.lt.s32.totalorder %s5374_s20, 3 }
   0xc   : > { %p6995_p2 = scmp.eq.s32.totalorder %s5476_s23, 0  ;;  %s5377_s24 = smov [#allocation11]  }
   0xd   : > { %p5483_p3 = pnand %p4243_p0, %p376_p1  ;;  %s430_s25 = sshll.u32 %s5377_s24, 4  ;;  %s5489_s25 = int_to_ptr.vmem [resolvable:$true] %s430_s25 }
   0xe   : > { %s5378_s27 = smov [#allocation5]   ;;  %s5379_s29 = smov [#allocation10]  }
   0xf   : > { %s7002_s8 = scalar_select %p5483_p3, 1, 0 }
  0x10   : > { %p4766_p4 = pneg %p5483_p3  ;;  %s392_s28 = sshll.u32 %s5378_s27, 4  ;;  %s5497_s28 = int_to_ptr.vmem [resolvable:$true] %s392_s28 }
  0x11   : > { %s5499_s30 = sshll.u32 %s5379_s29, 4  ;;  %s5186_s18 = scalar_lea.hbm %s6980_s3, 12288  ;;  %s417_s30 = int_to_ptr.vmem [resolvable:$true] %s5499_s30 }
  0x12   : > { %p5493_p5 = pnand %p6995_p2, %p4766_p4  ;;  %p5187_p6 = scmp.ne.s32.totalorder %s6980_s3, %s5186_s18 }
  0x13   : > { %p5193_p10 = scmp.lt.u32.totalorder %s5186_s18, %s6980_s3 }
  0x14   : > { %p5509_p7 = pneg %p5493_p5 }
  0x16   : > { %p5189_p8 = pnand %p5509_p7, %p5187_p6 }
  0x18   : > { %p5190_p9 = pneg %p5189_p8 }
  0x1a   : > { %p5195_p11 = pnand %p5193_p10, %p5190_p9 }
  0x1c   : > { %5198 = shalt.err (!%p5195_p11)
}
  0x1d   : > { %s5199_s16 = scalar_lea.vmem %s5481_s22, 12288  ;;  %p5207_p1 = scmp.lt.s32.totalorder %s5481_s22, %s5481_s22 }
  0x1e   : > { %p5200_p12 = scmp.ne.s32.totalorder %s5481_s22, %s5199_s16  ;;  %p5208_p4 = scmp.lt.s32.totalorder %s5199_s16, %s5199_s16 }
  0x20   : > { %p5202_p13 = pnand %p5200_p12, %p5509_p7  ;;  %p5209_p6 = por %p5208_p4, %p5207_p1 }
  0x22   : > { %p5203_p0 = pneg %p5202_p13 }
  0x24   : > { %p5210_p8 = pnand %p5209_p6, %p5203_p0 }
  0x26   : > { %5213 = shalt.err (!%p5210_p8)
}
  0x27   : > { %s5380_s17 = smov 128   ;;  %s5381_s18 = smov 8  }
  0x28   : > { %4772 = dma.hbm_to_vmem [thread:$0]  (!%p5493_p5), %s6980_s3, 12288, %s5481_s22, [#allocation9], %s5380_s17, %s5380_s17, %s5381_s18  }
  0x29   : > { %s5214_s20 = scalar_lea.hbm %s6983_s6, 16 }
  0x2a   : > { %p5215_p9 = scmp.ne.s32.totalorder %s6983_s6, %s5214_s20  ;;  %p5221_p12 = scmp.lt.u32.totalorder %s5214_s20, %s6983_s6 }
  0x2c   : > { %p5217_p10 = pnand %p5215_p9, %p5509_p7 }
  0x2e   : > { %p5218_p11 = pneg %p5217_p10 }
  0x30   : > { %p5223_p13 = pnand %p5221_p12, %p5218_p11 }
  0x32   : > { %5226 = shalt.err (!%p5223_p13)
}
  0x33   : > { %s5227_s22 = scalar_lea.vmem %s5489_s25, 16  ;;  %s5234_s14 = scalar_lea.vmem %s5489_s25, 32 }
  0x34   : > { %p5228_p0 = scmp.ne.s32.totalorder %s5489_s25, %s5227_s22  ;;  %p5235_p6 = scmp.lt.s32.totalorder %s5489_s25, %s5489_s25 }
  0x35   : > { %p5236_p8 = scmp.lt.s32.totalorder %s5234_s14, %s5227_s22 }
  0x36   : > { %p5230_p1 = pnand %p5228_p0, %p5509_p7 }
  0x37   : > { %p5237_p9 = por %p5236_p8, %p5235_p6 }
  0x38   : > { %p5231_p4 = pneg %p5230_p1 }
  0x3a   : > { %p5238_p10 = pnand %p5237_p9, %p5231_p4 }
  0x3c   : > { %5241 = shalt.err (!%p5238_p10)
}
  0x3d   : > { %4778 = dma.hbm_to_vmem [thread:$0]  (!%p5493_p5), %s6983_s6, 16, %s5489_s25, [#allocation12]  }
  0x3e   : > { %s5242_s18 = scalar_lea.hbm %s6979_s2, 128 }
  0x3f   : > { %p5243_p11 = scmp.ne.s32.totalorder %s6979_s2, %s5242_s18  ;;  %p5249_p0 = scmp.lt.u32.totalorder %s5242_s18, %s6979_s2 }
  0x41   : > { %p5245_p12 = pnand %p5243_p11, %p5509_p7 }
  0x43   : > { %p5246_p13 = pneg %p5245_p12 }
  0x45   : > { %p5251_p1 = pnand %p5249_p0, %p5246_p13 }
  0x47   : > { %5254 = shalt.err (!%p5251_p1)
}
  0x48   : > { %s5255_s25 = scalar_lea.vmem %s5497_s28, 128  ;;  %p5263_p9 = scmp.lt.s32.totalorder %s5497_s28, %s5497_s28 }
  0x49   : > { %p5256_p4 = scmp.ne.s32.totalorder %s5497_s28, %s5255_s25  ;;  %p5264_p10 = scmp.lt.s32.totalorder %s5255_s25, %s5255_s25 }
  0x4b   : > { %p5258_p6 = pnand %p5256_p4, %p5509_p7  ;;  %p5265_p11 = por %p5264_p10, %p5263_p9 }
  0x4d   : > { %p5259_p8 = pneg %p5258_p6 }
  0x4f   : > { %p5266_p12 = pnand %p5265_p11, %p5259_p8 }
  0x51   : > { %5269 = shalt.err (!%p5266_p12)
}
  0x52   : > { %4769 = dma.hbm_to_vmem [thread:$0]  (!%p5493_p5), %s6979_s2, 128, %s5497_s28, [#allocation6]  }
  0x53   : > { %s5270_s15 = scalar_lea.hbm %s6981_s4, 32 }
  0x54   : > { %p5271_p13 = scmp.ne.s32.totalorder %s6981_s4, %s5270_s15  ;;  %p5277_p4 = scmp.lt.u32.totalorder %s5270_s15, %s6981_s4 }
  0x56   : > { %p5273_p0 = pnand %p5271_p13, %p5509_p7 }
  0x58   : > { %p5274_p1 = pneg %p5273_p0 }
  0x5a   : > { %p5279_p6 = pnand %p5277_p4, %p5274_p1 }
  0x5c   : > { %5282 = shalt.err (!%p5279_p6)
}
  0x5d   : > { %s5283_s21 = scalar_lea.vmem %s417_s30, 32  ;;  %p5291_p11 = scmp.lt.s32.totalorder %s417_s30, %s417_s30 }
  0x5e   : > { %p5284_p8 = scmp.ne.s32.totalorder %s417_s30, %s5283_s21  ;;  %p5292_p12 = scmp.lt.s32.totalorder %s5283_s21, %s5283_s21 }
  0x60   : > { %p5286_p9 = pnand %p5284_p8, %p5509_p7  ;;  %p5293_p2 = por %p5292_p12, %p5291_p11 }
  0x62   : > { %p5287_p10 = pneg %p5286_p9 }
  0x64   : > { %p5294_p3 = pnand %p5293_p2, %p5287_p10 }
  0x66   : > { %5297 = shalt.err (!%p5294_p3)
}
  0x67   : > { %4775 = dma.hbm_to_vmem [thread:$0]  (!%p5493_p5), %s6981_s4, 32, %s417_s30, [#allocation9]  }
  0x68   : > { %s5382_s29 = smov [#allocation13]   ;;  %s5298_s14 = scalar_lea.hbm %s6984_s7, 16 }
  0x69   : > { %s441_s25 = sshll.u32 %s5382_s29, 4  ;;  %p5299_p13 = scmp.ne.s32.totalorder %s6984_s7, %s5298_s14  ;;  %s442_s25 = int_to_ptr.vmem [resolvable:$true] %s441_s25 }
  0x6a   : > { %p5305_p0 = scmp.lt.u32.totalorder %s5298_s14, %s6984_s7 }
  0x6b   : > { %p5301_p2 = pnand %p5299_p13, %p5509_p7 }
  0x6d   : > { %p5302_p3 = pneg %p5301_p2 }
  0x6f   : > { %p5307_p1 = pnand %p5305_p0, %p5302_p3 }
  0x71   : > { %5310 = shalt.err (!%p5307_p1)
}
  0x72   : > { %s5311_s30 = scalar_lea.vmem %s442_s25, 16  ;;  %s5318_s18 = scalar_lea.vmem %s442_s25, 32 }
  0x73   : > { %p5312_p4 = scmp.ne.s32.totalorder %s442_s25, %s5311_s30  ;;  %p5319_p9 = scmp.lt.s32.totalorder %s442_s25, %s442_s25 }
  0x74   : > { %p5320_p10 = scmp.lt.s32.totalorder %s5318_s18, %s5311_s30 }
  0x75   : > { %p5314_p6 = pnand %p5312_p4, %p5509_p7 }
  0x76   : > { %p5321_p11 = por %p5320_p10, %p5319_p9 }
  0x77   : > { %p5315_p8 = pneg %p5314_p6 }
  0x79   : > { %p5322_p12 = pnand %p5321_p11, %p5315_p8 }
  0x7b   : > { %5325 = shalt.err (!%p5322_p12)
}
  0x7c   : > { %4781 = dma.hbm_to_vmem [thread:$0]  (!%p5493_p5), %s6984_s7, 16, %s442_s25, [#allocation12]  }
  0x7d   : > { %p7005_p13 = scmp.ne.s32.totalorder %s7002_s8, 0 }
  0x7e   : > { %p7006_p2 = scmp.eq.s32.totalorder (!%p7005_p13), %s5476_s23, 0 }
  0x7f   : > { %495 = sbr.rel (%p7005_p13) target bundleno = 2729 (0xaa9), region = 80 }
  0x86   : > { %5357 = dma.done.wait (%p7006_p2), [#allocation6], 128   ;;  %p7007_p7 = pmov %p7006_p2 }
  0x87   : > { %p7008_p3 = pmov %p7006_p2 }
  0x88   : > { %5359 = vsyncadd (%p7007_p7), [#allocation6], 4294967168 }
  0x89   : > { %5361 = dma.done.wait (%p7008_p3), [#allocation9], 12320   ;;  %p7009_p0 = pmov %p7006_p2 }
  0x8b   : > { %5363 = vsyncadd (%p7009_p0), [#allocation9], 4294954976  ;;  %p7010_p1 = pmov %p7009_p0 }
  0x8c   : > { %p7011_p5 = pmov %p7009_p0 }
  0x8d   : > { %5365 = dma.done.wait (%p7010_p1), [#allocation12], 32  }
  0x8e   : > { %5367 = vsyncadd (%p7011_p5), [#allocation12], 4294967264  ;;  %v4813_v0 = vld [vmem:[#allocation8 + $0x104] ss:$8 sps:$4 sm:$0xff]   ;;  %v4815_v1 = vld [vmem:[#allocation8 + $0x100] ss:$8 sps:$4 sm:$0xff]  }
  0x8f   : > { %1568 = vmatprep.subr.bf16.mxu0 %v4813_v0  ;;  %v4816_v2 = vld [vmem:[#allocation8 + $0x114] ss:$8 sps:$4 sm:$0xff]   ;;  %v4818_v3 = vld [vmem:[#allocation8 + $0x110] ss:$8 sps:$4 sm:$0xff]   ;;  %v4819_v4 = vld [vmem:[#allocation8 + $0x124] ss:$8 sps:$4 sm:$0xff]  }
  0x90   : > { %1569 = vmatpush1.bf16.msra.mxu0 %v4815_v1  ;;  %s4256_s8 = sshll.u32 %s5476_s23, 4  ;;  %v4821_v5 = vld [vmem:[#allocation8 + $0x120] ss:$8 sps:$4 sm:$0xff]   ;;  %v4822_v6 = vld [vmem:[#allocation8 + $0x134] ss:$8 sps:$4 sm:$0xff]   ;;  %s5742_s28 = sshll.u32 %s5476_s23, 7 }
  0x91   : > { %1570 = vmatprep.subr.bf16.mxu0 %v4816_v2  ;;  %p566_p4 = scmp.lt.s32.totalorder %s4256_s8, 19  ;;  %v4824_v7 = vld [vmem:[#allocation8 + $0x130] ss:$8 sps:$4 sm:$0xff]   ;;  %v4825_v8 = vld [vmem:[#allocation8 + $0x144] ss:$8 sps:$4 sm:$0xff]   ;;  %s2208_s16 = sld [smem:[#allocation4]] }
  0x92   : > { %v4827_v9 = vld [vmem:[#allocation8 + $0x140] ss:$8 sps:$4 sm:$0xff]   ;;  %v4828_v10 = vld [vmem:[#allocation8 + $0x154] ss:$8 sps:$4 sm:$0xff]   ;;  %v4830_v11 = vld [vmem:[#allocation8 + $0x150] ss:$8 sps:$4 sm:$0xff]  }
  0x93   : > { %s7018_s8 = smov (!%p566_p4, %s4256_s8), 19  ;;  %v4831_v12 = vld [vmem:[#allocation8 + $0x164] ss:$8 sps:$4 sm:$0xff]   ;;  %v4833_v14 = vld [vmem:[#allocation8 + $0x160] ss:$8 sps:$4 sm:$0xff]   ;;  %s6023_s22 = scalar_lea.vmem [#allocation3], %s5742_s28 }
  0x94   : > { %1571 = vmatpush1.bf16.msra.mxu0 %v4818_v3  ;;  %s4677_s26 = smul.u32 24, %s7018_s8  ;;  %v4858_v13 = vld [vmem:[#allocation8 + $0x4] ss:$8 sps:$4 sm:$0xff]   ;;  %v4862_v15 = vld [vmem:[#allocation8] ss:$8 sps:$4 sm:$0xff]   ;;  %p4430_p6 = scmp.ne.s32.totalorder %s5476_s23, 1 }
  0x95   : > { %1572 = vmatprep.subr.bf16.mxu0 %v4819_v4  ;;  %1455 = vmatprep.subr.bf16.mxu1 %v4858_v13  ;;  %v4834_v16 = vld [vmem:[#allocation8 + $0x174] ss:$8 sps:$4 sm:$0xff]   ;;  %v4836_v19 = vld [vmem:[#allocation8 + $0x170] ss:$8 sps:$4 sm:$0xff]   ;;  %v4873_v21 = vld [vmem:[#allocation8 + $0x24] ss:$8 sps:$4 sm:$0xff]  }
  0x96   : > { %s5632_s27 = scalar_lea.vmem %s6977_s0, %s4677_s26  ;;  %1456 = vmatpush1.bf16.msra.mxu1 %v4862_v15  ;;  %v4867_v18 = vld [vmem:[#allocation8 + $0x14] ss:$8 sps:$4 sm:$0xff]   ;;  %v4872_v20 = vld [vmem:[#allocation8 + $0x10] ss:$8 sps:$4 sm:$0xff]   ;;  %v4837_v22 = vld [vmem:[#allocation8 + $0x184] ss:$8 sps:$4 sm:$0xff]  }
  0x97   : > { %v4866_v17 = vld [vmem:[%s5632_s27 + $0xc] ss:$24 sps:$4 sm:$0xff]   ;;  %1457 = vmatprep.subr.bf16.mxu1 %v4867_v18  ;;  %v4878_v23 = vld [vmem:[#allocation8 + $0x20] ss:$8 sps:$4 sm:$0xff]   ;;  %v4887_v27 = vld [vmem:[#allocation8 + $0x30] ss:$8 sps:$4 sm:$0xff]  }
  0x98   : > { %1573 = vmatpush1.bf16.msra.mxu0 %v4821_v5  ;;  %1600 = vmatprep.mubr.bf16.mxu0 %v4866_v17  ;;  %v4839_v24 = vld [vmem:[#allocation8 + $0x180] ss:$8 sps:$4 sm:$0xff]   ;;  %v4881_v25 = vld [vmem:[#allocation8 + $0x34] ss:$8 sps:$4 sm:$0xff]   ;;  %v4888_v28 = vld [vmem:[#allocation8 + $0x44] ss:$8 sps:$4 sm:$0xff]  }
  0x99   : > { %1574 = vmatprep.subr.bf16.mxu0 %v4822_v6  ;;  %v4840_v26 = vld [vmem:[#allocation8 + $0x194] ss:$8 sps:$4 sm:$0xff]   ;;  %v4842_v29 = vld [vmem:[#allocation8 + $0x190] ss:$8 sps:$4 sm:$0xff]   ;;  %v4843_v30 = vld [vmem:[#allocation8 + $0x1a4] ss:$8 sps:$4 sm:$0xff]  }
  0x9a   : > { %1458 = vmatpush1.bf16.msra.mxu1 %v4872_v20  ;;  %v4893_v31 = vld [vmem:[#allocation8 + $0x40] ss:$8 sps:$4 sm:$0xff]   ;;  %v4896_v32 = vld [vmem:[#allocation8 + $0x54] ss:$8 sps:$4 sm:$0xff]   ;;  %v4902_v35 = vld [vmem:[#allocation8 + $0x50] ss:$8 sps:$4 sm:$0xff]  }
  0x9b   : > { %1459 = vmatprep.subr.bf16.mxu1 %v4873_v21  ;;  %v4845_v33 = vld [vmem:[#allocation8 + $0x1a0] ss:$8 sps:$4 sm:$0xff]   ;;  %v4846_v34 = vld [vmem:[#allocation8 + $0x1b4] ss:$8 sps:$4 sm:$0xff]   ;;  %v4903_v36 = vld [vmem:[#allocation8 + $0x64] ss:$8 sps:$4 sm:$0xff]  }
  0x9c   : > { %1575 = vmatpush1.bf16.msra.mxu0 %v4824_v7  ;;  %v4848_v37 = vld [vmem:[#allocation8 + $0x1b0] ss:$8 sps:$4 sm:$0xff]   ;;  %v4849_v38 = vld [vmem:[#allocation8 + $0x1c4] ss:$8 sps:$4 sm:$0xff]   ;;  %v4908_v39 = vld [vmem:[#allocation8 + $0x60] ss:$8 sps:$4 sm:$0xff]  }
  0x9d   : > { %1576 = vmatprep.subr.bf16.mxu0 %v4825_v8  ;;  %v4911_v40 = vld [vmem:[#allocation8 + $0x74] ss:$8 sps:$4 sm:$0xff]   ;;  %v4851_v41 = vld [vmem:[#allocation8 + $0x1c0] ss:$8 sps:$4 sm:$0xff]   ;;  %v4917_v43 = vld [vmem:[#allocation8 + $0x70] ss:$8 sps:$4 sm:$0xff]  }
  0x9e   : > { %1460 = vmatpush1.bf16.msra.mxu1 %v4878_v23  ;;  %v4852_v42 = vld [vmem:[#allocation8 + $0x1d4] ss:$8 sps:$4 sm:$0xff]   ;;  %v4918_v44 = vld [vmem:[#allocation8 + $0x84] ss:$8 sps:$4 sm:$0xff]   ;;  %v4854_v45 = vld [vmem:[#allocation8 + $0x1d0] ss:$8 sps:$4 sm:$0xff]  }
  0x9f   : > { %1461 = vmatprep.subr.bf16.mxu1 %v4881_v25  ;;  %v4855_v46 = vld [vmem:[#allocation8 + $0x1e4] ss:$8 sps:$4 sm:$0xff]   ;;  %v4923_v47 = vld [vmem:[#allocation8 + $0x80] ss:$8 sps:$4 sm:$0xff]   ;;  %v4926_v48 = vld [vmem:[#allocation8 + $0x94] ss:$8 sps:$4 sm:$0xff]  }
  0xa0   : > { %1577 = vmatpush1.bf16.msra.mxu0 %v4827_v9  ;;  %v4857_v49 = vld [vmem:[#allocation8 + $0x1e0] ss:$8 sps:$4 sm:$0xff]   ;;  %v4860_v50 = vld [vmem:[#allocation8 + $0x1f4] ss:$8 sps:$4 sm:$0xff]   ;;  %v4932_v51 = vld [vmem:[#allocation8 + $0x90] ss:$8 sps:$4 sm:$0xff]  }
  0xa1   : > { %1578 = vmatprep.subr.bf16.mxu0 %v4828_v10  ;;  %v4933_v52 = vld [vmem:[#allocation8 + $0xa4] ss:$8 sps:$4 sm:$0xff]   ;;  %v4863_v53 = vld [vmem:[#allocation8 + $0x1f0] ss:$8 sps:$4 sm:$0xff]   ;;  %v4938_v55 = vld [vmem:[#allocation8 + $0xa0] ss:$8 sps:$4 sm:$0xff]  }
  0xa2   : > { %1462 = vmatpush1.bf16.msra.mxu1 %v4887_v27  ;;  %v4871_v54 = vld [vmem:[#allocation8 + $0x204] ss:$8 sps:$4 sm:$0xff]   ;;  %v4941_v56 = vld [vmem:[#allocation8 + $0xb4] ss:$8 sps:$4 sm:$0xff]   ;;  %v4864_v57 = vld [vmem:[%s5632_s27 + $0x8] ss:$24 sps:$4 sm:$0xff]  }
  0xa3   : > { %1463 = vmatprep.subr.bf16.mxu1 %v4888_v28  ;;  %v4869_v58 = vld [vmem:[#allocation8 + $0x200] ss:$8 sps:$4 sm:$0xff]   ;;  %v4879_v59 = vld [vmem:[%s5632_s27 + $0x3c] ss:$24 sps:$4 sm:$0xff]   ;;  %v4947_v61 = vld [vmem:[#allocation8 + $0xb0] ss:$8 sps:$4 sm:$0xff]  }
  0xa4   : > { %1579 = vmatpush1.bf16.msra.mxu0 %v4830_v11  ;;  %v4877_v60 = vld [vmem:[#allocation8 + $0x214] ss:$8 sps:$4 sm:$0xff]   ;;  %v4948_v62 = vld [vmem:[#allocation8 + $0xc4] ss:$8 sps:$4 sm:$0xff]   ;;  %v4875_v63 = vld [vmem:[#allocation8 + $0x210] ss:$8 sps:$4 sm:$0xff]  }
  0xa5   : > { %1580 = vmatprep.subr.bf16.mxu0 %v4831_v12  ;;  %v4886_v0 = vld [vmem:[#allocation8 + $0x224] ss:$8 sps:$4 sm:$0xff]   ;;  %v4953_v1 = vld [vmem:[#allocation8 + $0xc0] ss:$8 sps:$4 sm:$0xff]   ;;  %v4956_v2 = vld [vmem:[#allocation8 + $0xd4] ss:$8 sps:$4 sm:$0xff]  }
  0xa6   : > { %1464 = vmatpush1.bf16.msra.mxu1 %v4893_v31  ;;  %v4883_v3 = vld [vmem:[%s5632_s27 + $0x38] ss:$24 sps:$4 sm:$0xff]   ;;  %v4894_v5 = vld [vmem:[%s5632_s27 + $0x6c] ss:$24 sps:$4 sm:$0xff]   ;;  %v4909_v17 = vld [vmem:[%s5632_s27 + $0x9c] ss:$24 sps:$4 sm:$0xff]  }
  0xa7   : > { %1465 = vmatprep.subr.bf16.mxu1 %v4896_v32  ;;  %v4884_v4 = vld [vmem:[#allocation8 + $0x220] ss:$8 sps:$4 sm:$0xff]   ;;  %v4892_v6 = vld [vmem:[#allocation8 + $0x234] ss:$8 sps:$4 sm:$0xff]   ;;  %v4962_v7 = vld [vmem:[#allocation8 + $0xd0] ss:$8 sps:$4 sm:$0xff]  }
  0xa8   : > { %1581 = vmatpush1.bf16.msra.mxu0 %v4833_v14  ;;  %v4963_v8 = vld [vmem:[#allocation8 + $0xe4] ss:$8 sps:$4 sm:$0xff]   ;;  %v4980_v9 = vld [vmem:[%s5632_s27 + $0x4] ss:$24 sps:$4 sm:$0xff]   ;;  %v4890_v10 = vld [vmem:[#allocation8 + $0x230] ss:$8 sps:$4 sm:$0xff]  }
  0xa9   : > { %1582 = vmatprep.subr.bf16.mxu0 %v4834_v16  ;;  %v4901_v11 = vld [vmem:[#allocation8 + $0x244] ss:$8 sps:$4 sm:$0xff]   ;;  %v4968_v12 = vld [vmem:[#allocation8 + $0xe0] ss:$8 sps:$4 sm:$0xff]   ;;  %v4971_v13 = vld [vmem:[#allocation8 + $0xf4] ss:$8 sps:$4 sm:$0xff]   ;;  %1487 = vmatprep.mubr.bf16.mxu1 %v4980_v9 }
  0xaa   : > { %1466 = vmatpush1.bf16.msra.mxu1 %v4902_v35  ;;  %v4898_v14 = vld [vmem:[%s5632_s27 + $0x68] ss:$24 sps:$4 sm:$0xff]   ;;  %v4907_v16 = vld [vmem:[#allocation8 + $0x254] ss:$8 sps:$4 sm:$0xff]   ;;  %v4916_v20 = vld [vmem:[#allocation8 + $0x264] ss:$8 sps:$4 sm:$0xff]  }
  0xab   : > { %1467 = vmatprep.subr.bf16.mxu1 %v4903_v36  ;;  %v4899_v15 = vld [vmem:[#allocation8 + $0x240] ss:$8 sps:$4 sm:$0xff]   ;;  %v4977_v18 = vld [vmem:[#allocation8 + $0xf0] ss:$8 sps:$4 sm:$0xff]   ;;  %v4924_v25 = vld [vmem:[%s5632_s27 + $0xcc] ss:$24 sps:$4 sm:$0xff]  }
  0xac   : > { %1583 = vmatpush1.bf16.msra.mxu0 %v4836_v19  ;;  %v4905_v19 = vld [vmem:[#allocation8 + $0x250] ss:$8 sps:$4 sm:$0xff]   ;;  %v4931_v28 = vld [vmem:[#allocation8 + $0x284] ss:$8 sps:$4 sm:$0xff]   ;;  %v4929_v32 = vld [vmem:[#allocation8 + $0x280] ss:$8 sps:$4 sm:$0xff]  }
  0xad   : > { %1584 = vmatprep.subr.bf16.mxu0 %v4837_v22  ;;  %v4978_v21 = vld [vmem:[%s5632_s27] ss:$24 sps:$4 sm:$0xff]   ;;  %v4987_v22 = vld [vmem:[%s5632_s27 + $0x34] ss:$24 sps:$4 sm:$0xff]   ;;  %v5002_v9 = vld [vmem:[%s5632_s27 + $0xa4] ss:$24 sps:$4 sm:$0xff]  }
  0xae   : > { %1468 = vmatpush1.bf16.msra.mxu1 %v4908_v39  ;;  %v4913_v23 = vld [vmem:[%s5632_s27 + $0x98] ss:$24 sps:$4 sm:$0xff]   ;;  %v4928_v31 = vld [vmem:[%s5632_s27 + $0xc8] ss:$24 sps:$4 sm:$0xff]   ;;  %s7013_s18 = sld [smem:[#allocation20_spill]] (!%p4430_p6)  ;;  %s7014_s8 = sld [smem:[#allocation21_spill]] (!%p4430_p6) }
  0xaf   : > { %1469 = vmatprep.subr.bf16.mxu1 %v4911_v40  ;;  %v4920_v27 = vld [vmem:[#allocation8 + $0x270] ss:$8 sps:$4 sm:$0xff]   ;;  %v4999_v40 = vld [vmem:[%s5632_s27 + $0x94] ss:$24 sps:$4 sm:$0xff]  }
  0xb0   : > { %1585 = vmatpush1.bf16.msra.mxu0 %v4839_v24  ;;  %v4914_v24 = vld [vmem:[#allocation8 + $0x260] ss:$8 sps:$4 sm:$0xff]   ;;  %v5029_v35 = vld [vmem:[%s6982_s5] sm:$0xff]  }
  0xb1   : > { %1586 = vmatprep.subr.bf16.mxu0 %v4840_v26  ;;  %v4922_v26 = vld [vmem:[#allocation8 + $0x274] ss:$8 sps:$4 sm:$0xff]   ;;  %v4935_v36 = vld [vmem:[#allocation8 + $0x290] ss:$8 sps:$4 sm:$0xff]  }
  0xb2   : > { %1470 = vmatpush1.bf16.msra.mxu1 %v4917_v43  ;;  %v4995_v39 = vld [vmem:[%s5632_s27 + $0x60] ss:$24 sps:$4 sm:$0xff]   ;;  %v4944_v43 = vld [vmem:[#allocation8 + $0x2a0] ss:$8 sps:$4 sm:$0xff]  }
  0xb3   : > { %1471 = vmatprep.subr.bf16.mxu1 %v4918_v44  ;;  %v4954_v44 = vld [vmem:[%s5632_s27 + $0x12c] ss:$24 sps:$4 sm:$0xff]  }
  0xb4   : > { %1587 = vmatpush1.bf16.msra.mxu0 %v4842_v29  ;;  %v4989_v29 = vld [vmem:[%s5632_s27 + $0x30] ss:$24 sps:$4 sm:$0xff]  }
  0xb5   : > { %1588 = vmatprep.subr.bf16.mxu0 %v4843_v30  ;;  %v4993_v30 = vld [vmem:[%s5632_s27 + $0x64] ss:$24 sps:$4 sm:$0xff]  }
  0xb6   : > { %1472 = vmatpush1.bf16.msra.mxu1 %v4923_v47  ;;  %v5001_v47 = vld [vmem:[%s5632_s27 + $0x90] ss:$24 sps:$4 sm:$0xff]  }
  0xb7   : > { %1473 = vmatprep.subr.bf16.mxu1 %v4926_v48  ;;  %v4961_v48 = vld [vmem:[#allocation8 + $0x2c4] ss:$8 sps:$4 sm:$0xff]  }
  0xb8   : > { %1589 = vmatpush1.bf16.msra.mxu0 %v4845_v33  ;;  %v4937_v33 = vld [vmem:[#allocation8 + $0x294] ss:$8 sps:$4 sm:$0xff]  }
  0xb9   : > { %1590 = vmatprep.subr.bf16.mxu0 %v4846_v34  ;;  %v4939_v34 = vld [vmem:[%s5632_s27 + $0xfc] ss:$24 sps:$4 sm:$0xff]  }
  0xba   : > { %1474 = vmatpush1.bf16.msra.mxu1 %v4932_v51  ;;  %v4959_v51 = vld [vmem:[#allocation8 + $0x2c0] ss:$8 sps:$4 sm:$0xff]  }
  0xbb   : > { %1475 = vmatprep.subr.bf16.mxu1 %v4933_v52  ;;  %v4969_v52 = vld [vmem:[%s5632_s27 + $0x15c] ss:$24 sps:$4 sm:$0xff]  }
  0xbc   : > { %1591 = vmatpush1.bf16.msra.mxu0 %v4848_v37  ;;  %v5030_v37 = vld [vmem:[%s6982_s5 + $0x8] sm:$0xff]  }
  0xbd   : > { %1592 = vmatprep.subr.bf16.mxu0 %v4849_v38  ;;  %v4946_v38 = vld [vmem:[#allocation8 + $0x2a4] ss:$8 sps:$4 sm:$0xff]  }
  0xbe   : > { %1476 = vmatpush1.bf16.msra.mxu1 %v4938_v55  ;;  %v5007_v55 = vld [vmem:[%s5632_s27 + $0xc0] ss:$24 sps:$4 sm:$0xff]  }
  0xbf   : > { %1477 = vmatprep.subr.bf16.mxu1 %v4941_v56  ;;  %v4976_v56 = vld [vmem:[#allocation8 + $0x2e4] ss:$8 sps:$4 sm:$0xff]  }
  0xc0   : > { %1593 = vmatpush1.bf16.msra.mxu0 %v4851_v41  ;;  %v4943_v41 = vld [vmem:[%s5632_s27 + $0xf8] ss:$24 sps:$4 sm:$0xff]  }
  0xc1   : > { %1594 = vmatprep.subr.bf16.mxu0 %v4852_v42  ;;  %v5031_v42 = vld [vmem:[%s6982_s5 + $0x10] sm:$0xff]  }
  0xc2   : > { %1478 = vmatpush1.bf16.msra.mxu1 %v4947_v61  ;;  %v4983_v61 = vld [vmem:[#allocation8 + $0x2f4] ss:$8 sps:$4 sm:$0xff]  }
  0xc3   : > { %1479 = vmatprep.subr.bf16.mxu1 %v4948_v62  ;;  %v4981_v62 = vld [vmem:[#allocation8 + $0x2f0] ss:$8 sps:$4 sm:$0xff]  }
  0xc4   : > { %1595 = vmatpush1.bf16.msra.mxu0 %v4854_v45  ;;  %v4952_v45 = vld [vmem:[#allocation8 + $0x2b4] ss:$8 sps:$4 sm:$0xff]  }
  0xc5   : > { %1596 = vmatprep.subr.bf16.mxu0 %v4855_v46  ;;  %v4950_v46 = vld [vmem:[#allocation8 + $0x2b0] ss:$8 sps:$4 sm:$0xff]  }
  0xc6   : > { %1480 = vmatpush1.bf16.msra.mxu1 %v4953_v1  ;;  %v4984_v1 = vld [vmem:[%s5632_s27 + $0x10] ss:$24 sps:$4 sm:$0xff]  }
  0xc7   : > { %1481 = vmatprep.subr.bf16.mxu1 %v4956_v2  ;;  %v4990_v2 = vld [vmem:[%s5632_s27 + $0x44] ss:$24 sps:$4 sm:$0xff]  }
  0xc8   : > { %1597 = vmatpush1.bf16.msra.mxu0 %v4857_v49  ;;  %v5005_v49 = vld [vmem:[%s5632_s27 + $0xc4] ss:$24 sps:$4 sm:$0xff]  }
  0xc9   : > { %1598 = vmatprep.subr.bf16.mxu0 %v4860_v50  ;;  %v4958_v50 = vld [vmem:[%s5632_s27 + $0x128] ss:$24 sps:$4 sm:$0xff]  }
  0xca   : > { %1482 = vmatpush1.bf16.msra.mxu1 %v4962_v7  ;;  %v5025_v7 = vld [vmem:[%s5632_s27 + $0x150] ss:$24 sps:$4 sm:$0xff]  }
  0xcb   : > { %1483 = vmatprep.subr.bf16.mxu1 %v4963_v8  ;;  %v4998_v8 = vld [vmem:[%s5632_s27 + $0x70] ss:$24 sps:$4 sm:$0xff]  }
  0xcc   : > { %1599 = vmatpush1.bf16.msra.mxu0 %v4863_v53  ;;  %v4967_v53 = vld [vmem:[#allocation8 + $0x2d4] ss:$8 sps:$4 sm:$0xff]  }
  0xcd   : > { %1681 = vmatprep.subr.bf16.mxu0 %v4871_v54  ;;  %v4965_v54 = vld [vmem:[#allocation8 + $0x2d0] ss:$8 sps:$4 sm:$0xff]  }
  0xce   : > { %1484 = vmatpush1.bf16.msra.mxu1 %v4968_v12  ;;  %v5010_v12 = vld [vmem:[%s5632_s27 + $0xd0] ss:$24 sps:$4 sm:$0xff]  }
  0xcf   : > { %1601 = vmatmul.mubr.bf16.vlgmr.msra.gmra.mrb[0].mxu0 %v4864_v57  ;;  %1485 = vmatprep.subr.bf16.mxu1 %v4971_v13  ;;  %v5011_v57 = vld [vmem:[%s5632_s27 + $0xf4] ss:$24 sps:$4 sm:$0xff]   ;;  %v5014_v13 = vld [vmem:[%s5632_s27 + $0x104] ss:$24 sps:$4 sm:$0xff]  }
  0xd0   : > { %1682 = vmatpush1.bf16.msra.mxu0 %v4869_v58  ;;  %1610 = vmatprep.mubr.bf16.mxu0 %v4879_v59  ;;  %v4973_v58 = vld [vmem:[%s5632_s27 + $0x158] ss:$24 sps:$4 sm:$0xff]  }
  0xd1   : > { %1683 = vmatprep.subr.bf16.mxu0 %v4877_v60  ;;  %v4974_v59 = vld [vmem:[#allocation8 + $0x2e0] ss:$8 sps:$4 sm:$0xff]   ;;  %v4986_v60 = vld [vmem:[%s5632_s27 + $0x14] ss:$24 sps:$4 sm:$0xff]  }
  0xd2   : > { %1486 = vmatpush1.bf16.msra.mxu1 %v4977_v18  ;;  %v5026_v18 = vld [vmem:[%s5632_s27 + $0x164] ss:$24 sps:$4 sm:$0xff]  }
  0xd3   : > { %4509 = vmatprep.subr.bf16.mxu1 %v5029_v35 }
  0xd4   : > { %1684 = vmatpush1.bf16.msra.mxu0 %v4875_v63  ;;  %v5013_v63 = vld [vmem:[%s5632_s27 + $0xf0] ss:$24 sps:$4 sm:$0xff]  }
  0xd5   : > { %1685 = vmatprep.subr.bf16.mxu0 %v4886_v0  ;;  %1488 = vmatmul.mubr.bf16.vlgmr.msra.gmra.mrb[0].mxu1 %v4978_v21  ;;  %v5017_v0 = vld [vmem:[%s5632_s27 + $0x124] ss:$24 sps:$4 sm:$0xff]   ;;  %v5034_v21 = vld [vmem:[%s6982_s5 + $0x28] sm:$0xff]  }
  0xd6   : > { %1497 = vmatprep.mubr.bf16.mxu1 %v4987_v22  ;;  %4510 = vmatpush3.bf16.msra.mxu1 %v5029_v35  ;;  %v5035_v22 = vld [vmem:[%s6982_s5 + $0x30] sm:$0xff]  }
  0xd7   : > { %1611 = vmatmul.mubr.bf16.gmra.mrb[4].mxu0 %v4883_v3  ;;  %4511 = vmatprep.subr.bf16.mxu1 %v5030_v37  ;;  %v5019_v3 = vld [vmem:[%s5632_s27 + $0x120] ss:$24 sps:$4 sm:$0xff]  }
  0xd8   : > { %1686 = vmatpush1.bf16.msra.mxu0 %v4884_v4  ;;  %1620 = vmatprep.mubr.bf16.mxu0 %v4894_v5  ;;  %v5023_v4 = vld [vmem:[%s5632_s27 + $0x154] ss:$24 sps:$4 sm:$0xff]   ;;  %v4992_v5 = vld [vmem:[%s5632_s27 + $0x40] ss:$24 sps:$4 sm:$0xff]  }
  0xd9   : > { %1687 = vmatprep.subr.bf16.mxu0 %v4892_v6  ;;  %v4996_v6 = vld [vmem:[%s5632_s27 + $0x74] ss:$24 sps:$4 sm:$0xff]  }
  0xda   : > { %4512 = vmatpush3.bf16.msra.mxu1 %v5030_v37 }
  0xdb   : > { %4513 = vmatprep.subr.bf16.mxu1 %v5031_v42 }
  0xdc   : > { %1688 = vmatpush1.bf16.msra.mxu0 %v4890_v10  ;;  %v5004_v10 = vld [vmem:[%s5632_s27 + $0xa0] ss:$24 sps:$4 sm:$0xff]  }
  0xdd   : > { %1689 = vmatprep.subr.bf16.mxu0 %v4901_v11  ;;  %1498 = vmatmul.mubr.bf16.gmra.mrb[4].mxu1 %v4989_v29  ;;  %v5008_v11 = vld [vmem:[%s5632_s27 + $0xd4] ss:$24 sps:$4 sm:$0xff]  }
  0xde   : > { %1507 = vmatprep.mubr.bf16.mxu1 %v4993_v30  ;;  %4514 = vmatpush3.bf16.msra.mxu1 %v5031_v42 }
  0xdf   : > { %1621 = vmatmul.mubr.bf16.gmra.mrb[8].mxu0 %v4898_v14  ;;  %v5016_v14 = vld [vmem:[%s5632_s27 + $0x100] ss:$24 sps:$4 sm:$0xff]  }
  0xe0   : > { %1690 = vmatpush1.bf16.msra.mxu0 %v4899_v15  ;;  %1630 = vmatprep.mubr.bf16.mxu0 %v4909_v17  ;;  %v5020_v15 = vld [vmem:[%s5632_s27 + $0x134] ss:$24 sps:$4 sm:$0xff]   ;;  %v5022_v17 = vld [vmem:[%s5632_s27 + $0x130] ss:$24 sps:$4 sm:$0xff]  }
  0xe1   : > { %1691 = vmatprep.subr.bf16.mxu0 %v4907_v16  ;;  %v5032_v16 = vld [vmem:[%s6982_s5 + $0x18] sm:$0xff]  }
  0xe2   : > { %4515 = vmatprep.subr.bf16.mxu1 %v5032_v16 }
  0xe3   : > { %4516 = vmatpush3.bf16.msra.mxu1 %v5032_v16 }
  0xe4   : > { %1692 = vmatpush1.bf16.msra.mxu0 %v4905_v19  ;;  %v5028_v19 = vld [vmem:[%s5632_s27 + $0x160] ss:$24 sps:$4 sm:$0xff]   ;;  %s1916_s27 = sshra.s32 %s5742_s28, 4 }
  0xe5   : > { %1693 = vmatprep.subr.bf16.mxu0 %v4916_v20  ;;  %1508 = vmatmul.mubr.bf16.gmra.mrb[8].mxu1 %v4995_v39  ;;  %v5033_v20 = vld [vmem:[%s6982_s5 + $0x20] sm:$0xff]   ;;  %s4403_s29 = sshll.u32 %s1916_s27, 3 }
  0xe6   : > { %1517 = vmatprep.mubr.bf16.mxu1 %v4999_v40  ;;  %4517 = vmatprep.subr.bf16.mxu1 %v5033_v20  ;;  %s5796_s25 = scalar_lea.vmem [#allocation2], %s4403_s29 }
  0xe7   : > { %1631 = vmatmul.mubr.bf16.gmra.mrb[12].mxu0 %v4913_v23  ;;  %4518 = vmatpush3.bf16.msra.mxu1 %v5033_v20  ;;  %v5036_v23 = vld [vmem:[%s6982_s5 + $0x38] sm:$0xff]  }
  0xe8   : > { %1694 = vmatpush1.bf16.msra.mxu0 %v4914_v24  ;;  %1640 = vmatprep.mubr.bf16.mxu0 %v4924_v25 }
  0xe9   : > { %1695 = vmatprep.subr.bf16.mxu0 %v4922_v26  ;;  %4519 = vmatprep.subr.bf16.mxu1 %v5034_v21 }
  0xeb   : > { %4520 = vmatpush3.bf16.msra.mxu1 %v5034_v21 }
  0xec   : > { %1696 = vmatpush1.bf16.msra.mxu0 %v4920_v27  ;;  %4521 = vmatprep.subr.bf16.mxu1 %v5035_v22 }
  0xed   : > { %1697 = vmatprep.subr.bf16.mxu0 %v4931_v28  ;;  %1518 = vmatmul.mubr.bf16.gmra.mrb[12].mxu1 %v5001_v47 }
  0xee   : > { %1527 = vmatprep.mubr.bf16.mxu1 %v5005_v49 }
  0xef   : > { %1641 = vmatmul.mubr.bf16.gmra.mrb[16].mxu0 %v4928_v31  ;;  %4522 = vmatpush3.bf16.msra.mxu1 %v5035_v22 }
  0xf0   : > { %1698 = vmatpush1.bf16.msra.mxu0 %v4929_v32  ;;  %1650 = vmatprep.mubr.bf16.mxu0 %v4939_v34 }
  0xf1   : > { %1699 = vmatprep.subr.bf16.mxu0 %v4937_v33  ;;  %4523 = vmatprep.subr.bf16.mxu1 %v5036_v23 }
  0xf3   : > { %4524 = vmatpush3.bf16.msra.mxu1 %v5036_v23 }
  0xf4   : > { %1700 = vmatpush1.bf16.msra.mxu0 %v4935_v36  ;;  %v725_v36 = vlaneseq }
  0xf5   : > { %1701 = vmatprep.subr.bf16.mxu0 %v4946_v38  ;;  %1528 = vmatmul.mubr.bf16.gmra.mrb[16].mxu1 %v5007_v55 }
  0xf6   : > { %1537 = vmatprep.mubr.bf16.mxu1 %v5011_v57 }
  0xf7   : > { %1651 = vmatmul.mubr.bf16.gmra.mrb[20].mxu0 %v4943_v41  ;;  %v5727_v41 = vshrl.u32 %v725_v36, 7 }
  0xf8   : > { %1702 = vmatpush1.bf16.msra.mxu0 %v4944_v43  ;;  %1660 = vmatprep.mubr.bf16.mxu0 %v4954_v44  ;;  %v723_v44 = vld [vmem:[#allocation10] sm:$0x3] }
  0xf9   : > { %1703 = vmatprep.subr.bf16.mxu0 %v4952_v45  ;;  %v727_v42 = vsub.s32 0, %v5727_v41  ;;  %v731_v45 = vsub.s32 1, %v5727_v41 }
  0xfb   : > { %v5739_v49 = vrot.slane %v723_v44, %v727_v42 }
  0xfc   : > { %1704 = vmatpush1.bf16.msra.mxu0 %v4950_v46 }
  0xfd   : > { %1705 = vmatprep.subr.bf16.mxu0 %v4961_v48  ;;  %1538 = vmatmul.mubr.bf16.gmra.mrb[20].mxu1 %v5013_v63 }
  0xfe   : > { %1547 = vmatprep.mubr.bf16.mxu1 %v5017_v0 }
  0xff   : > { %1661 = vmatmul.mubr.bf16.gmra.mrb[24].mxu0 %v4958_v50  ;;  %v5744_v50 = vrot.slane %v723_v44, %v731_v45 }
 0x100   : > { %1706 = vmatpush1.bf16.msra.mxu0 %v4959_v51  ;;  %1670 = vmatprep.mubr.bf16.mxu0 %v4969_v52  ;;  %v5747_v51 = vstv %s5742_s28  ;;  %v1796_v52 = vadd.s32 8, %v5727_v41 }
 0x101   : > { %1707 = vmatprep.subr.bf16.mxu0 %v4967_v53  ;;  %v5758_v57 = vadd.s32 %v5747_v51, %v5727_v41 }
 0x103   : > { %vm1828_vm0 = vcmp.lt.s32.totalorder %v5758_v57, 160 }
 0x104   : > { %1708 = vmatpush1.bf16.msra.mxu0 %v4965_v54 }
 0x105   : > { %1709 = vmatprep.subr.bf16.mxu0 %v4976_v56  ;;  %1548 = vmatmul.mubr.bf16.gmra.mrb[24].mxu1 %v5019_v3 }
 0x106   : > { %1557 = vmatprep.mubr.bf16.mxu1 %v5023_v4 }
 0x107   : > { %1671 = vmatmul.mubr.bf16.gmra.mrb[28].mxu0 %v4973_v58 }
 0x108   : > { %1710 = vmatpush1.bf16.msra.mxu0 %v4974_v59  ;;  %1713 = vmatprep.mubr.bf16.mxu0 %v4986_v60  ;;  %v5763_v60 = vadd.s32 %v5747_v51, %v1796_v52 }
 0x109   : > { %1711 = vmatprep.subr.bf16.mxu0 %v4983_v61 }
 0x10a   : > { %vm1829_vm1 = vcmp.lt.s32.totalorder %v5763_v60, 160 }
 0x10c   : > { %1712 = vmatpush1.bf16.msra.mxu0 %v4981_v62 }
 0x10d   : > { %1558 = vmatmul.mubr.bf16.gmra.mrb[28].mxu1 %v5025_v7 }
 0x10f   : > { %1714 = vmatmul.mubr.bf16.vlgmr.msra.gmra.mrb[0].mxu0 %v4984_v1 }
 0x110   : > { %1723 = vmatprep.mubr.bf16.mxu0 %v4990_v2 }
 0x117   : > { %1724 = vmatmul.mubr.bf16.gmra.mrb[4].mxu0 %v4992_v5 }
 0x118   : > { %1733 = vmatprep.mubr.bf16.mxu0 %v4996_v6 }
 0x11f   : > { %1734 = vmatmul.mubr.bf16.gmra.mrb[8].mxu0 %v4998_v8  ;;  %v1797_v8 = vadd.s32 16, %v5727_v41 }
 0x120   : > { %1743 = vmatprep.mubr.bf16.mxu0 %v5002_v9  ;;  %v1798_v9 = vadd.s32 24, %v5727_v41 }
 0x121   : > { %v5787_v23 = vadd.s32 %v5747_v51, %v1797_v8 }
 0x123   : > { %vm1830_vm2 = vcmp.lt.s32.totalorder %v5787_v23, 160 }
 0x127   : > { %1744 = vmatmul.mubr.bf16.gmra.mrb[12].mxu0 %v5004_v10 }
 0x128   : > { %1753 = vmatprep.mubr.bf16.mxu0 %v5008_v11 }
 0x12f   : > { %1754 = vmatmul.mubr.bf16.gmra.mrb[16].mxu0 %v5010_v12 }
 0x130   : > { %1763 = vmatprep.mubr.bf16.mxu0 %v5014_v13 }
 0x137   : > { %1764 = vmatmul.mubr.bf16.gmra.mrb[20].mxu0 %v5016_v14 }
 0x138   : > { %1773 = vmatprep.mubr.bf16.mxu0 %v5020_v15 }
 0x13f   : > { %1774 = vmatmul.mubr.bf16.gmra.mrb[24].mxu0 %v5022_v17 }
 0x140   : > { %1783 = vmatprep.mubr.bf16.mxu0 %v5026_v18 }
 0x147   : > { %1784 = vmatmul.mubr.bf16.gmra.mrb[28].mxu0 %v5028_v19 }
 0x1a8   : > { %v1489_v24 = vpop.f32.mrb[0].mxu1 }
 0x1a9   : > { %v1491_v25 = vpop.f32.mrb[1].mxu1  ;;  %v1490_v53 = vadd.f32 %v1489_v24, %v5739_v49  ;;  %v5790_v24 = vadd.s32 %v5747_v51, %v1798_v9 }
 0x1aa   : > { %v1493_v26 = vpop.f32.mrb[2].mxu1  ;;  %v1492_v55 = vadd.f32 %v1491_v25, %v5744_v50 }
 0x1ab   : > { %v1495_v27 = vpop.f32.mrb[3].mxu1  ;;  %v1494_v62 = vadd.f32 %v1493_v26, %v5739_v49  ;;  %vm1831_vm3 = vcmp.lt.s32.totalorder %v5790_v24, 160 }
 0x1ac   : > { %v1496_v1 = vadd.f32 %v1495_v27, %v5744_v50 }
 0x1b0   : > { %v1499_v28 = vpop.f32.mrb[4].mxu1 }
 0x1b1   : > { %v1501_v29 = vpop.f32.mrb[5].mxu1  ;;  %v1500_v11 = vadd.f32 %v1499_v28, %v5739_v49 }
 0x1b2   : > { %v5706_v30 = vpop.f32.mrb[6].mxu1  ;;  %v1502_v15 = vadd.f32 %v1501_v29, %v5744_v50 }
 0x1b3   : > { %v5708_v31 = vpop.f32.mrb[7].mxu1  ;;  %v1504_v26 = vadd.f32 %v5706_v30, %v5739_v49 }
 0x1b4   : > { %v1506_v29 = vadd.f32 %v5708_v31, %v5744_v50 }
 0x1b8   : > { %v5710_v32 = vpop.f32.mrb[8].mxu1 }
 0x1b9   : > { %v5712_v33 = vpop.f32.mrb[9].mxu1 }
 0x1ba   : > { %v5714_v34 = vpop.f32.mrb[10].mxu1 }
 0x1bb   : > { %v5716_v35 = vpop.f32.mrb[11].mxu1 }
 0x1c0   : > { %v5718_v37 = vpop.f32.mrb[12].mxu1 }
 0x1c1   : > { %v5720_v38 = vpop.f32.mrb[13].mxu1 }
 0x1c2   : > { %v5722_v39 = vpop.f32.mrb[14].mxu1 }
 0x1c3   : > { %v5724_v40 = vpop.f32.mrb[15].mxu1 }
 0x1c8   : > { %v5730_v43 = vpop.f32.mrb[16].mxu1 }
 0x1c9   : > { %v5733_v46 = vpop.f32.mrb[17].mxu1 }
 0x1ca   : > { %v5735_v47 = vpop.f32.mrb[18].mxu1 }
 0x1cb   : > { %v5737_v48 = vpop.f32.mrb[19].mxu1 }
 0x1d0   : > { %v5751_v54 = vpop.f32.mrb[20].mxu1 }
 0x1d1   : > { %v5754_v56 = vpop.f32.mrb[21].mxu1 }
 0x1d2   : > { %v5760_v58 = vpop.f32.mrb[22].mxu1 }
 0x1d3   : > { %v5765_v61 = vpop.f32.mrb[23].mxu1 }
 0x1d8   : > { %v5775_v12 = vpop.f32.mrb[24].mxu1 }
 0x1d9   : > { %v5778_v16 = vpop.f32.mrb[25].mxu1 }
 0x1da   : > { %v5784_v19 = vpop.f32.mrb[26].mxu1 }
 0x1db   : > { %v5792_v25 = vpop.f32.mrb[27].mxu1 }
 0x1e0   : > { %v5807_v31 = vpop.f32.mrb[28].mxu1 }
 0x1e2   : > { %v1715_v59 = vpop.f32.mrb[0].mxu0 }
 0x1e3   : > { %v4582_v63 = vadd.f32 %v1715_v59, %v1490_v53  ;;  %v1717_v0 = vpop.f32.mrb[1].mxu0  ;;  %v1800_v59 = vadd.s32 40, %v5727_v41 }
 0x1e4   : > { %v4584_v2 = vadd.f32 %v1717_v0, %v1492_v55  ;;  %v1719_v3 = vpop.f32.mrb[2].mxu0  ;;  %v1799_v55 = vadd.s32 32, %v5727_v41 }
 0x1e5   : > { %v1844_v4 = vmax.f32 %v4582_v63, 0.0  ;;  %v4586_v5 = vadd.f32 %v1719_v3, %v1494_v62  ;;  %v1721_v6 = vpop.f32.mrb[3].mxu0  ;;  %v1510_v63 = vadd.f32 %v5710_v32, %v5739_v49  ;;  %v5811_v3 = vpop.f32.mrb[29].mxu1 }
 0x1e6   : > { %v4588_v7 = vadd.f32 %v1721_v6, %v1496_v1  ;;  %v1928_v13 = vmax.f32 %v4584_v2, 0.0  ;;  %v1512_v2 = vadd.f32 %v5712_v33, %v5744_v50  ;;  %v5818_v6 = vadd.s32 %v5747_v51, %v1799_v55  ;;  %v5820_v32 = vpop.f32.mrb[30].mxu1 }
 0x1e7   : > { %v1845_v10 = vmax.f32 %v4586_v5, 0.0  ;;  %v1892_v17 = vsel %vm1828_vm0, %v1844_v4, 0.0  ;;  %v5825_v33 = vpop.f32.mrb[31].mxu1 }
 0x1e8   : > { %v1929_v14 = vmax.f32 %v4588_v7, 0.0  ;;  %vm1832_vm4 = vcmp.lt.s32.totalorder %v5818_v6, 160 }
 0x1e9   : > { %v1893_v18 = vsel %vm1829_vm1, %v1845_v10, 0.0  ;;  %v5823_v10 = vadd.s32 %v5747_v51, %v1800_v59 }
 0x1ea   : > { %v1908_v20 = vpack.c.bf16 %v1893_v18, %v1892_v17  ;;  %v1944_v21 = vpack.c.bf16 %v1929_v14, %v1928_v13  ;;  %v1725_v22 = vpop.f32.mrb[4].mxu0 }
 0x1eb   : > { %v4590_v27 = vadd.f32 %v1725_v22, %v1500_v11  ;;  %v1727_v28 = vpop.f32.mrb[5].mxu0  ;;  %v1514_v11 = vadd.f32 %v5714_v34, %v5739_v49  ;;  %vm1833_vm5 = vcmp.lt.s32.totalorder %v5823_v10, 160  ;;  %v1802_v34 = vadd.s32 56, %v5727_v41 }
 0x1ec   : > { %1920 = vst [vmem:[%s5796_s25] sm:$0xff] %v1908_v20  ;;  %v4592_v42 = vadd.f32 %v1727_v28, %v1502_v15  ;;  %v1729_v44 = vpop.f32.mrb[6].mxu0  ;;  %4525 = vmatprep.mubr.bf16.mxu1 %v1944_v21  ;;  %v1516_v15 = vadd.f32 %v5716_v35, %v5744_v50  ;;  %v1520_v35 = vadd.f32 %v5718_v37, %v5739_v49 }
 0x1ed   : > { %v1846_v45 = vmax.f32 %v4590_v27, 0.0  ;;  %v4594_v52 = vadd.f32 %v1729_v44, %v1504_v26  ;;  %v1731_v53 = vpop.f32.mrb[7].mxu0  ;;  %v1801_v27 = vadd.s32 48, %v5727_v41  ;;  %v1522_v44 = vadd.f32 %v5720_v38, %v5744_v50 }
 0x1ee   : > { %v4596_v30 = vadd.f32 %v1731_v53, %v1506_v29  ;;  %v1930_v0 = vmax.f32 %v4592_v42, 0.0  ;;  %v1524_v37 = vadd.f32 %v5722_v39, %v5739_v49  ;;  %v1804_v39 = vadd.s32 72, %v5727_v41 }
 0x1ef   : > { %v1847_v62 = vmax.f32 %v4594_v52, 0.0  ;;  %v1894_v4 = vsel %vm1830_vm2, %v1846_v45, 0.0  ;;  %v5845_v59 = vadd.s32 %v5747_v51, %v1801_v27 }
 0x1f0   : > { %v1931_v1 = vmax.f32 %v4596_v30, 0.0  ;;  %v5871_v27 = vadd.s32 %v5747_v51, %v1804_v39 }
 0x1f1   : > { %v1895_v5 = vsel %vm1831_vm3, %v1847_v62, 0.0  ;;  %v5848_v62 = vadd.s32 %v5747_v51, %v1802_v34  ;;  %vm1834_vm6 = vcmp.lt.s32.totalorder %v5845_v59, 160 }
 0x1f2   : > { %v1909_v7 = vpack.c.bf16 %v1895_v5, %v1894_v4  ;;  %v1945_v8 = vpack.c.bf16 %v1931_v1, %v1930_v0  ;;  %v1735_v9 = vpop.f32.mrb[8].mxu0  ;;  %v1526_v0 = vadd.f32 %v5724_v40, %v5744_v50  ;;  %v1530_v40 = vadd.f32 %v5730_v43, %v5739_v49 }
 0x1f3   : > { %v4598_v13 = vadd.f32 %v1735_v9, %v1510_v63  ;;  %v1737_v14 = vpop.f32.mrb[9].mxu0  ;;  %vm1835_vm7 = vcmp.lt.s32.totalorder %v5848_v62, 160  ;;  %v1534_v43 = vadd.f32 %v5735_v47, %v5739_v49  ;;  %vm1837_vm9 = vcmp.lt.s32.totalorder %v5871_v27, 160 }
 0x1f4   : > { %1921 = vst [vmem:[%s5796_s25 + $0x8] sm:$0xff] %v1909_v7  ;;  %v4600_v17 = vadd.f32 %v1737_v14, %v1512_v2  ;;  %v1739_v18 = vpop.f32.mrb[10].mxu0  ;;  %4526 = vmatmul.mubr.bf16.vlgmr.msra.gmra.mrb[32].mxu1 %v1945_v8  ;;  %v1803_v8 = vadd.s32 64, %v5727_v41  ;;  %v1806_v47 = vadd.s32 88, %v5727_v41 }
 0x1f5   : > { %v1848_v20 = vmax.f32 %v4598_v13, 0.0  ;;  %v4602_v21 = vadd.f32 %v1739_v18, %v1514_v11  ;;  %v1741_v22 = vpop.f32.mrb[11].mxu0 }
 0x1f6   : > { %v4604_v26 = vadd.f32 %v1741_v22, %v1516_v15  ;;  %v1932_v29 = vmax.f32 %v4600_v17, 0.0  ;;  %v1532_v15 = vadd.f32 %v5733_v46, %v5744_v50 }
 0x1f7   : > { %v1849_v28 = vmax.f32 %v4602_v21, 0.0  ;;  %v1896_v45 = vsel %vm1832_vm4, %v1848_v20, 0.0  ;;  %v5868_v20 = vadd.s32 %v5747_v51, %v1803_v8 }
 0x1f8   : > { %v1933_v42 = vmax.f32 %v4604_v26, 0.0 }
 0x1f9   : > { %v1897_v52 = vsel %vm1833_vm5, %v1849_v28, 0.0  ;;  %v1536_v28 = vadd.f32 %v5737_v48, %v5744_v50  ;;  %vm1836_vm8 = vcmp.lt.s32.totalorder %v5868_v20, 160  ;;  %v1540_v48 = vadd.f32 %v5751_v54, %v5739_v49 }
 0x1fa   : > { %v1910_v53 = vpack.c.bf16 %v1897_v52, %v1896_v45  ;;  %v1946_v55 = vpack.c.bf16 %v1933_v42, %v1932_v29  ;;  %v1745_v30 = vpop.f32.mrb[12].mxu0  ;;  %v1544_v54 = vadd.f32 %v5760_v58, %v5739_v49  ;;  %v1808_v58 = vadd.s32 104, %v5727_v41 }
 0x1fb   : > { %v4606_v63 = vadd.f32 %v1745_v30, %v1520_v35  ;;  %v1747_v38 = vpop.f32.mrb[13].mxu0 }
 0x1fc   : > { %1922 = vst [vmem:[%s5796_s25 + $0x10] sm:$0xff] %v1910_v53  ;;  %v4608_v1 = vadd.f32 %v1747_v38, %v1522_v44  ;;  %v1749_v2 = vpop.f32.mrb[14].mxu0  ;;  %4529 = vmatprep.mubr.bf16.mxu1 %v1946_v55  ;;  %v1805_v53 = vadd.s32 80, %v5727_v41 }
 0x1fd   : > { %v1850_v4 = vmax.f32 %v4606_v63, 0.0  ;;  %v4610_v5 = vadd.f32 %v1749_v2, %v1524_v37  ;;  %v1751_v7 = vpop.f32.mrb[15].mxu0  ;;  %v1542_v63 = vadd.f32 %v5754_v56, %v5744_v50 }
 0x1fe   : > { %v4612_v9 = vadd.f32 %v1751_v7, %v1526_v0  ;;  %v1934_v13 = vmax.f32 %v4608_v1, 0.0  ;;  %v5894_v7 = vadd.s32 %v5747_v51, %v1806_v47 }
 0x1ff   : > { %v1851_v11 = vmax.f32 %v4610_v5, 0.0  ;;  %v1898_v17 = vsel %vm1834_vm6, %v1850_v4, 0.0  ;;  %v5891_v5 = vadd.s32 %v5747_v51, %v1805_v53 }
 0x200   : > { %v1935_v14 = vmax.f32 %v4612_v9, 0.0  ;;  %v1546_v9 = vadd.f32 %v5765_v61, %v5744_v50  ;;  %vm1839_vm11 = vcmp.lt.s32.totalorder %v5894_v7, 160  ;;  %v1550_v61 = vadd.f32 %v5775_v12, %v5739_v49 }
 0x201   : > { %v1899_v18 = vsel %vm1835_vm7, %v1851_v11, 0.0  ;;  %vm1838_vm10 = vcmp.lt.s32.totalorder %v5891_v5, 160  ;;  %v1554_v12 = vadd.f32 %v5784_v19, %v5739_v49  ;;  %v1810_v19 = vadd.s32 120, %v5727_v41 }
 0x202   : > { %v1911_v21 = vpack.c.bf16 %v1899_v18, %v1898_v17  ;;  %v1947_v22 = vpack.c.bf16 %v1935_v14, %v1934_v13  ;;  %v1755_v26 = vpop.f32.mrb[16].mxu0 }
 0x203   : > { %v4614_v34 = vadd.f32 %v1755_v26, %v1530_v40  ;;  %v1757_v46 = vpop.f32.mrb[17].mxu0  ;;  %v1552_v26 = vadd.f32 %v5778_v16, %v5744_v50 }
 0x204   : > { %1923 = vst [vmem:[%s5796_s25 + $0x18] sm:$0xff] %v1911_v21  ;;  %v4616_v35 = vadd.f32 %v1757_v46, %v1532_v15  ;;  %v1759_v29 = vpop.f32.mrb[18].mxu0  ;;  %4530 = vmatmul.mubr.bf16.gmra.mrb[36].mxu1 %v1947_v22  ;;  %v1807_v15 = vadd.s32 96, %v5727_v41 }
 0x205   : > { %v1852_v42 = vmax.f32 %v4614_v34, 0.0  ;;  %v4618_v44 = vadd.f32 %v1759_v29, %v1534_v43  ;;  %v1761_v45 = vpop.f32.mrb[19].mxu0 }
 0x206   : > { %v4620_v52 = vadd.f32 %v1761_v45, %v1536_v28  ;;  %v1936_v30 = vmax.f32 %v4616_v35, 0.0  ;;  %v5914_v46 = vadd.s32 %v5747_v51, %v1807_v15  ;;  %v1556_v45 = vadd.f32 %v5792_v25, %v5744_v50 }
 0x207   : > { %v1853_v55 = vmax.f32 %v4618_v44, 0.0  ;;  %v1900_v38 = vsel %vm1836_vm8, %v1852_v42, 0.0  ;;  %v5917_v42 = vadd.s32 %v5747_v51, %v1808_v58  ;;  %v1560_v25 = vadd.f32 %v5807_v31, %v5739_v49 }
 0x208   : > { %v1937_v37 = vmax.f32 %v4620_v52, 0.0  ;;  %vm1840_vm12 = vcmp.lt.s32.totalorder %v5914_v46, 160  ;;  %v1564_v31 = vadd.f32 %v5820_v32, %v5739_v49  ;;  %v2439_v46 = vld [vmem:[%s6978_s1] sm:$0xff] (!%p4430_p6) }
 0x209   : > { %v1901_v0 = vsel %vm1837_vm9, %v1853_v55, 0.0  ;;  %vm1841_vm13 = vcmp.lt.s32.totalorder %v5917_v42, 160  ;;  %v6082_v42 = vld [vmem:[%s6978_s1 + $0x8] sm:$0xff] (!%p4430_p6) }
 0x20a   : > { %v1912_v1 = vpack.c.bf16 %v1901_v0, %v1900_v38  ;;  %v1948_v2 = vpack.c.bf16 %v1937_v37, %v1936_v30  ;;  %v1765_v4 = vpop.f32.mrb[20].mxu0  ;;  %v1809_v37 = vadd.s32 112, %v5727_v41 }
 0x20b   : > { %v4622_v8 = vadd.f32 %v1765_v4, %v1540_v48  ;;  %v1767_v56 = vpop.f32.mrb[21].mxu0 }
 0x20c   : > { %1924 = vst [vmem:[%s5796_s25 + $0x20] sm:$0xff] %v1912_v1  ;;  %v4624_v39 = vadd.f32 %v1767_v56, %v1542_v63  ;;  %v1769_v11 = vpop.f32.mrb[22].mxu0  ;;  %4533 = vmatprep.mubr.bf16.mxu1 %v1948_v2  ;;  %v1562_v1 = vadd.f32 %v5811_v3, %v5744_v50 }
 0x20d   : > { %v1854_v40 = vmax.f32 %v4622_v8, 0.0  ;;  %v4626_v13 = vadd.f32 %v1769_v11, %v1544_v54  ;;  %v1771_v14 = vpop.f32.mrb[23].mxu0 }
 0x20e   : > { %v4628_v17 = vadd.f32 %v1771_v14, %v1546_v9  ;;  %v1938_v21 = vmax.f32 %v4624_v39, 0.0  ;;  %v5937_v9 = vadd.s32 %v5747_v51, %v1809_v37  ;;  %v5940_v39 = vadd.s32 %v5747_v51, %v1810_v19 }
 0x20f   : > { %v1855_v18 = vmax.f32 %v4626_v13, 0.0  ;;  %v1902_v43 = vsel %vm1838_vm10, %v1854_v40, 0.0  ;;  %v1566_v40 = vadd.f32 %v5825_v33, %v5744_v50 }
 0x210   : > { %v1939_v22 = vmax.f32 %v4628_v17, 0.0  ;;  %vm1842_vm14 = vcmp.lt.s32.totalorder %v5937_v9, 160  ;;  %vm6997_vm15 = vcmp.lt.s32.totalorder %v5940_v39, 160 }
 0x211   : > { %v1903_v34 = vsel %vm1839_vm11, %v1855_v18, 0.0 }
 0x212   : > { %v1913_v28 = vpack.c.bf16 %v1903_v34, %v1902_v43  ;;  %v1949_v35 = vpack.c.bf16 %v1939_v22, %v1938_v21  ;;  %v1775_v29 = vpop.f32.mrb[24].mxu0  ;;  %v5954_v22 = vld [vmem:[#allocation11] ss:$0 sm:$0xff] }
 0x213   : > { %v4630_v44 = vadd.f32 %v1775_v29, %v1550_v61  ;;  %v1777_v16 = vpop.f32.mrb[25].mxu0  ;;  %v5958_v29 = vld [vmem:[#allocation13] ss:$0 sm:$0xff] }
 0x214   : > { %1925 = vst [vmem:[%s5796_s25 + $0x28] sm:$0xff] %v1913_v28  ;;  %v4632_v52 = vadd.f32 %v1777_v16, %v1552_v26  ;;  %v1779_v53 = vpop.f32.mrb[26].mxu0  ;;  %4534 = vmatmul.mubr.bf16.gmra.mrb[40].mxu1 %v1949_v35 }
 0x215   : > { %v1856_v47 = vmax.f32 %v4630_v44, 0.0  ;;  %v4634_v55 = vadd.f32 %v1779_v53, %v1554_v12  ;;  %v1781_v48 = vpop.f32.mrb[27].mxu0 }
 0x216   : > { %v4636_v30 = vadd.f32 %v1781_v48, %v1556_v45  ;;  %v1940_v38 = vmax.f32 %v4632_v52, 0.0 }
 0x217   : > { %v1857_v63 = vmax.f32 %v4634_v55, 0.0  ;;  %v1904_v2 = vsel %vm1840_vm12, %v1856_v47, 0.0 }
 0x218   : > { %v1941_v0 = vmax.f32 %v4636_v30, 0.0 }
 0x219   : > { %v1905_v4 = vsel %vm1841_vm13, %v1857_v63, 0.0 }
 0x21a   : > { %v1914_v54 = vpack.c.bf16 %v1905_v4, %v1904_v2  ;;  %v1950_v8 = vpack.c.bf16 %v1941_v0, %v1940_v38  ;;  %v1785_v56 = vpop.f32.mrb[28].mxu0 }
 0x21b   : > { %v4638_v11 = vadd.f32 %v1785_v56, %v1560_v25  ;;  %v1787_v3 = vpop.f32.mrb[29].mxu0 }
 0x21c   : > { %1926 = vst [vmem:[%s5796_s25 + $0x30] sm:$0xff] %v1914_v54  ;;  %v4640_v13 = vadd.f32 %v1787_v3, %v1562_v1  ;;  %v1789_v14 = vpop.f32.mrb[30].mxu0  ;;  %4537 = vmatprep.mubr.bf16.mxu1 %v1950_v8 }
 0x21d   : > { %v1858_v15 = vmax.f32 %v4638_v11, 0.0  ;;  %v4642_v17 = vadd.f32 %v1789_v14, %v1564_v31  ;;  %v1791_v58 = vpop.f32.mrb[31].mxu0 }
 0x21e   : > { %v4644_v51 = vadd.f32 %v1791_v58, %v1566_v40  ;;  %v1942_v49 = vmax.f32 %v4640_v13, 0.0 }
 0x21f   : > { %v1859_v18 = vmax.f32 %v4642_v17, 0.0  ;;  %v1906_v61 = vsel %vm1842_vm14, %v1858_v15, 0.0 }
 0x220   : > { %v1943_v32 = vmax.f32 %v4644_v51, 0.0 }
 0x221   : > { %v1907_v50 = vsel %vm6997_vm15, %v1859_v18, 0.0  ;;  %vm2159_vm15 = vcmask 261120  }
 0x222   : > { %v1915_v33 = vpack.c.bf16 %v1907_v50, %v1906_v61  ;;  %v1951_v21 = vpack.c.bf16 %v1943_v32, %v1942_v49 }
 0x224   : > { %1927 = vst [vmem:[%s5796_s25 + $0x38] sm:$0xff] %v1915_v33  ;;  %4538 = vmatmul.mubr.bf16.gmra.mrb[44].mxu1 %v1951_v21 }
 0x2c7   : > { %v4527_v26 = vpop.f32.mrb[32].mxu1 }
 0x2c8   : > { %v2066_v43 = vadd.f32 %v4527_v26, %v5954_v22  ;;  %v2057_v34 = vpop.f32.mrb[33].mxu1 }
 0x2c9   : > { %v2058_v28 = vadd.f32 %v5954_v22, %v2057_v34  ;;  %v4528_v35 = vpop.f32.mrb[34].mxu1 }
 0x2ca   : > { %v2122_v12 = vmax.f32 %v2066_v43, 0.0  ;;  %v2069_v44 = vadd.f32 %v4528_v35, %v5954_v22  ;;  %v2060_v16 = vpop.f32.mrb[35].mxu1 }
 0x2cb   : > { %v2120_v45 = vmax.f32 %v2058_v28, 0.0  ;;  %v2061_v52 = vadd.f32 %v5954_v22, %v2060_v16 }
 0x2cc   : > { %v2123_v53 = vmax.f32 %v2069_v44, 0.0  ;;  %v2145_v47 = vmul.f32 %v5958_v29, %v2122_v12 }
 0x2cd   : > { %v2121_v55 = vmax.f32 %v2061_v52, 0.0  ;;  %v2143_v48 = vmul.f32 %v5958_v29, %v2120_v45 }
 0x2ce   : > { %v2166_v30 = vsel %vm2159_vm15, %v2145_v47, 0.0  ;;  %v2146_v37 = vmul.f32 %v5958_v29, %v2123_v53 }
 0x2cf   : > { %2167 = vadd.xlane.f32.xlu1 %v2166_v30  ;;  %v2160_v19 = vsel %vm2159_vm15, %v2143_v48, 0.0  ;;  %v2144_v63 = vmul.f32 %v5958_v29, %v2121_v55 }
 0x2d0   : > { %2161 = vadd.xlane.f32.xlu0 %v2160_v19  ;;  %v2169_v25 = vsel %vm2159_vm15, %v2146_v37, 0.0 }
 0x2d1   : > { %v2163_v38 = vsel %vm2159_vm15, %v2144_v63, 0.0 }
 0x2d3   : > { %2170 = vadd.xlane.f32.xlu1 %v2169_v25 }
 0x2d4   : > { %2164 = vadd.xlane.f32.xlu0 %v2163_v38 }
 0x2d7   : > { %v4531_v0 = vpop.f32.mrb[36].mxu1 }
 0x2d8   : > { %v2082_v1 = vadd.f32 %v4531_v0, %v5954_v22  ;;  %v2073_v2 = vpop.f32.mrb[37].mxu1 }
 0x2d9   : > { %v2074_v4 = vadd.f32 %v5954_v22, %v2073_v2  ;;  %v4532_v54 = vpop.f32.mrb[38].mxu1 }
 0x2da   : > { %v2126_v8 = vmax.f32 %v2082_v1, 0.0  ;;  %v2085_v56 = vadd.f32 %v4532_v54, %v5954_v22  ;;  %v2076_v31 = vpop.f32.mrb[39].mxu1 }
 0x2db   : > { %v2124_v11 = vmax.f32 %v2074_v4, 0.0  ;;  %v2077_v3 = vadd.f32 %v5954_v22, %v2076_v31 }
 0x2dc   : > { %v2127_v40 = vmax.f32 %v2085_v56, 0.0  ;;  %v2149_v13 = vmul.f32 %v5958_v29, %v2126_v8 }
 0x2dd   : > { %v2125_v14 = vmax.f32 %v2077_v3, 0.0  ;;  %v2147_v58 = vmul.f32 %v5958_v29, %v2124_v11 }
 0x2de   : > { %v2178_v15 = vsel %vm2159_vm15, %v2149_v13, 0.0  ;;  %v2150_v17 = vmul.f32 %v5958_v29, %v2127_v40 }
 0x2df   : > { %2179 = vadd.xlane.f32.xlu0 %v2178_v15  ;;  %v2148_v18 = vmul.f32 %v5958_v29, %v2125_v14  ;;  %v2172_v49 = vsel %vm2159_vm15, %v2147_v58, 0.0  ;;  %v6006_v58 = vstv %s2208_s16 }
 0x2e0   : > { %v2181_v51 = vsel %vm2159_vm15, %v2150_v17, 0.0 }
 0x2e1   : > { %2182 = vadd.xlane.f32.xlu1 %v2181_v51  ;;  %v2175_v32 = vsel %vm2159_vm15, %v2148_v18, 0.0 }
 0x2e3   : > { %2173 = vadd.xlane.f32.xlu0 %v2172_v49 }
 0x2e5   : > { %2176 = vadd.xlane.f32.xlu1 %v2175_v32 }
 0x2e7   : > { %v4535_v61 = vpop.f32.mrb[40].mxu1 }
 0x2e8   : > { %v2098_v50 = vadd.f32 %v4535_v61, %v5954_v22  ;;  %v2089_v33 = vpop.f32.mrb[41].mxu1 }
 0x2e9   : > { %v2090_v21 = vadd.f32 %v5954_v22, %v2089_v33  ;;  %v4536_v26 = vpop.f32.mrb[42].mxu1 }
 0x2ea   : > { %v2130_v43 = vmax.f32 %v2098_v50, 0.0  ;;  %v2101_v34 = vadd.f32 %v4536_v26, %v5954_v22  ;;  %v2092_v28 = vpop.f32.mrb[43].mxu1 }
 0x2eb   : > { %v2128_v35 = vmax.f32 %v2090_v21, 0.0  ;;  %v2093_v12 = vadd.f32 %v5954_v22, %v2092_v28 }
 0x2ec   : > { %v2131_v44 = vmax.f32 %v2101_v34, 0.0  ;;  %v2153_v16 = vmul.f32 %v5958_v29, %v2130_v43 }
 0x2ed   : > { %v2129_v45 = vmax.f32 %v2093_v12, 0.0  ;;  %v2151_v47 = vmul.f32 %v5958_v29, %v2128_v35 }
 0x2ee   : > { %v2190_v52 = vsel %vm2159_vm15, %v2153_v16, 0.0  ;;  %v2154_v53 = vmul.f32 %v5958_v29, %v2131_v44 }
 0x2ef   : > { %2191 = vadd.xlane.f32.xlu0 %v2190_v52  ;;  %v2152_v48 = vmul.f32 %v5958_v29, %v2129_v45  ;;  %v2184_v30 = vsel %vm2159_vm15, %v2151_v47, 0.0 }
 0x2f0   : > { %v2193_v55 = vsel %vm2159_vm15, %v2154_v53, 0.0 }
 0x2f1   : > { %2194 = vadd.xlane.f32.xlu1 %v2193_v55  ;;  %v2187_v37 = vsel %vm2159_vm15, %v2152_v48, 0.0 }
 0x2f3   : > { %2185 = vadd.xlane.f32.xlu0 %v2184_v30 }
 0x2f5   : > { %2188 = vadd.xlane.f32.xlu1 %v2187_v37 }
 0x2f7   : > { %v4539_v19 = vpop.f32.mrb[44].mxu1 }
 0x2f8   : > { %v2114_v63 = vadd.f32 %v4539_v19, %v5954_v22  ;;  %v2105_v25 = vpop.f32.mrb[45].mxu1 }
 0x2f9   : > { %v2106_v38 = vadd.f32 %v5954_v22, %v2105_v25  ;;  %v4540_v0 = vpop.f32.mrb[46].mxu1 }
 0x2fa   : > { %v2117_v1 = vadd.f32 %v4540_v0, %v5954_v22  ;;  %v2108_v2 = vpop.f32.mrb[47].mxu1  ;;  %v2134_v4 = vmax.f32 %v2114_v63, 0.0 }
 0x2fb   : > { %v2132_v54 = vmax.f32 %v2106_v38, 0.0  ;;  %v2109_v8 = vadd.f32 %v5954_v22, %v2108_v2 }
 0x2fc   : > { %v2135_v56 = vmax.f32 %v2117_v1, 0.0  ;;  %v2157_v13 = vmul.f32 %v5958_v29, %v2134_v4 }
 0x2fd   : > { %v2133_v31 = vmax.f32 %v2109_v8, 0.0  ;;  %v2155_v11 = vmul.f32 %v5958_v29, %v2132_v54 }
 0x2fe   : > { %v2158_v15 = vmul.f32 %v5958_v29, %v2135_v56  ;;  %v2202_v17 = vsel %vm2159_vm15, %v2157_v13, 0.0 }
 0x2ff   : > { %v2196_v3 = vsel %vm2159_vm15, %v2155_v11, 0.0  ;;  %v2156_v40 = vmul.f32 %v5958_v29, %v2133_v31 }
 0x300   : > { %2197 = vadd.xlane.f32.xlu0 %v2196_v3  ;;  %v2205_v22 = vsel %vm2159_vm15, %v2158_v15, 0.0 }
 0x301   : > { %v2199_v14 = vsel %vm2159_vm15, %v2156_v40, 0.0 }
 0x302   : > { %2200 = vadd.xlane.f32.xlu1 %v2199_v14 }
 0x304   : > { %2203 = vadd.xlane.f32.xlu0 %v2202_v17 }
 0x306   : > { %2206 = vadd.xlane.f32.xlu1 %v2205_v22 }
 0x35c   : > { %v2168_v51 = vpop.xlane.xlu1 %2167 }
 0x35d   : > { %v2212_v18 = vadd.f32 %v6006_v58, %v2168_v51  ;;  %v2162_v49 = vpop.xlane.xlu0 %2161 }
 0x35e   : > { %v2210_v32 = vadd.f32 %v6006_v58, %v2162_v49 }
 0x35f   : > { %v2228_v61 = vmax.f32 %v2212_v18, 0.0 }
 0x360   : > { %v2226_v50 = vmax.f32 %v2210_v32, 0.0  ;;  %v2171_v33 = vpop.xlane.xlu1 %2170 }
 0x361   : > { %5037 = vtanh.f32 %v2228_v61  ;;  %v2213_v29 = vadd.f32 %v6006_v58, %v2171_v33  ;;  %v2165_v21 = vpop.xlane.xlu0 %2164 }
 0x362   : > { %5039 = vtanh.f32 %v2226_v50  ;;  %v2211_v26 = vadd.f32 %v6006_v58, %v2165_v21 }
 0x363   : > { %v2229_v43 = vmax.f32 %v2213_v29, 0.0 }
 0x364   : > { %v2227_v34 = vmax.f32 %v2211_v26, 0.0 }
 0x365   : > { %5041 = vtanh.f32 %v2229_v43 }
 0x366   : > { %5043 = vtanh.f32 %v2227_v34 }
 0x36b   : > { %v5038_v28 = vpop.eup %5037 }
 0x36c   : > { %v5040_v35 = vpop.eup %5039  ;;  %v4416_v12 = vmul.f32 -1.442695, %v5038_v28  ;;  %v2180_v44 = vpop.xlane.xlu0 %2179 }
 0x36d   : > { %v4414_v16 = vmul.f32 -1.442695, %v5040_v35  ;;  %v2216_v45 = vadd.f32 %v6006_v58, %v2180_v44 }
 0x36e   : > { %5045 = vpow2.f32 %v4416_v12  ;;  %v2183_v52 = vpop.xlane.xlu1 %2182 }
 0x36f   : > { %v5042_v53 = vpop.eup %5041  ;;  %5047 = vpow2.f32 %v4414_v16  ;;  %v2232_v47 = vmax.f32 %v2216_v45, 0.0  ;;  %v2217_v55 = vadd.f32 %v6006_v58, %v2183_v52 }
 0x370   : > { %v5044_v48 = vpop.eup %5043  ;;  %v4417_v30 = vmul.f32 -1.442695, %v5042_v53  ;;  %v2174_v37 = vpop.xlane.xlu0 %2173 }
 0x371   : > { %v4415_v19 = vmul.f32 -1.442695, %v5044_v48  ;;  %5049 = vtanh.f32 %v2232_v47  ;;  %v2233_v63 = vmax.f32 %v2217_v55, 0.0  ;;  %v2214_v25 = vadd.f32 %v6006_v58, %v2174_v37 }
 0x372   : > { %5051 = vpow2.f32 %v4417_v30  ;;  %v2177_v38 = vpop.xlane.xlu1 %2176 }
 0x373   : > { %5053 = vpow2.f32 %v4415_v19  ;;  %v2230_v0 = vmax.f32 %v2214_v25, 0.0  ;;  %v2215_v1 = vadd.f32 %v6006_v58, %v2177_v38 }
 0x374   : > { %5055 = vtanh.f32 %v2233_v63 }
 0x375   : > { %5057 = vtanh.f32 %v2230_v0  ;;  %v2231_v2 = vmax.f32 %v2215_v1, 0.0 }
 0x377   : > { %5059 = vtanh.f32 %v2231_v2 }
 0x378   : > { %v5046_v4 = vpop.eup %5045 }
 0x379   : > { %v5048_v54 = vpop.eup %5047  ;;  %v2308_v8 = vadd.f32 1.0, %v5046_v4 }
 0x37a   : > { %v2306_v56 = vadd.f32 1.0, %v5048_v54 }
 0x37b   : > { %v5050_v31 = vpop.eup %5049  ;;  %5061 = vrcp.f32 %v2308_v8 }
 0x37c   : > { %v5052_v11 = vpop.eup %5051  ;;  %5063 = vrcp.f32 %v2306_v56  ;;  %v4420_v3 = vmul.f32 -1.442695, %v5050_v31  ;;  %v2192_v40 = vpop.xlane.xlu0 %2191 }
 0x37d   : > { %v5054_v13 = vpop.eup %5053  ;;  %v2309_v14 = vadd.f32 1.0, %v5052_v11  ;;  %v2220_v15 = vadd.f32 %v6006_v58, %v2192_v40 }
 0x37e   : > { %v5056_v17 = vpop.eup %5055  ;;  %v2307_v22 = vadd.f32 1.0, %v5054_v13  ;;  %5065 = vpow2.f32 %v4420_v3  ;;  %v2195_v51 = vpop.xlane.xlu1 %2194 }
 0x37f   : > { %v5058_v18 = vpop.eup %5057  ;;  %5067 = vrcp.f32 %v2309_v14  ;;  %v4421_v49 = vmul.f32 -1.442695, %v5056_v17  ;;  %v2236_v32 = vmax.f32 %v2220_v15, 0.0  ;;  %v2221_v61 = vadd.f32 %v6006_v58, %v2195_v51 }
 0x380   : > { %5069 = vrcp.f32 %v2307_v22  ;;  %v4418_v50 = vmul.f32 -1.442695, %v5058_v18  ;;  %v2186_v33 = vpop.xlane.xlu0 %2185 }
 0x381   : > { %v5060_v29 = vpop.eup %5059  ;;  %5071 = vpow2.f32 %v4421_v49  ;;  %v2237_v21 = vmax.f32 %v2221_v61, 0.0  ;;  %v2218_v26 = vadd.f32 %v6006_v58, %v2186_v33 }
 0x382   : > { %5073 = vpow2.f32 %v4418_v50  ;;  %v4419_v43 = vmul.f32 -1.442695, %v5060_v29  ;;  %v2189_v34 = vpop.xlane.xlu1 %2188 }
 0x383   : > { %5075 = vtanh.f32 %v2236_v32  ;;  %v2234_v28 = vmax.f32 %v2218_v26, 0.0  ;;  %v2219_v35 = vadd.f32 %v6006_v58, %v2189_v34 }
 0x384   : > { %5077 = vpow2.f32 %v4419_v43 }
 0x385   : > { %v5062_v12 = vpop.eup %5061  ;;  %5079 = vtanh.f32 %v2237_v21  ;;  %v2235_v44 = vmax.f32 %v2219_v35, 0.0 }
 0x386   : > { %v5064_v16 = vpop.eup %5063  ;;  %v2356_v45 = vsel %vm1830_vm2, %v5062_v12, 0.0  ;;  %5081 = vtanh.f32 %v2234_v28  ;;  %vm2472_vm2 = vcmp.ge.s32.totalorder (!%p4430_p6), %v6082_v42, 0 }
 0x387   : > { %2373 = vst [vmem:[%s6023_s22 + $0x10] sm:$0xff] %v2356_v45  ;;  %v2354_v52 = vsel %vm1828_vm0, %v5064_v16, 0.0  ;;  %5083 = vtanh.f32 %v2235_v44  ;;  %vm7012_vm0 = vcmp.lt.s32.totalorder %v5940_v39, 160 }
 0x388   : > { %v5066_v53 = vpop.eup %5065  ;;  %2371 = vst [vmem:[%s6023_s22] sm:$0xff] %v2354_v52 }
 0x389   : > { %v5068_v47 = vpop.eup %5067  ;;  %v2312_v55 = vadd.f32 1.0, %v5066_v53 }
 0x38a   : > { %v5070_v48 = vpop.eup %5069  ;;  %v2357_v23 = vsel %vm1831_vm3, %v5068_v47, 0.0 }
 0x38b   : > { %v5072_v30 = vpop.eup %5071  ;;  %2374 = vst [vmem:[%s6023_s22 + $0x18] sm:$0xff] %v2357_v23  ;;  %v2355_v37 = vsel %vm1829_vm1, %v5070_v48, 0.0  ;;  %5085 = vrcp.f32 %v2312_v55  ;;  %vm2471_vm1 = vcmp.ge.s32.totalorder (!%p4430_p6), %v2439_v46, 0 }
 0x38c   : > { %v5074_v19 = vpop.eup %5073  ;;  %2372 = vst [vmem:[%s6023_s22 + $0x8] sm:$0xff] %v2355_v37  ;;  %v2313_v63 = vadd.f32 1.0, %v5072_v30 }
 0x38d   : > { %v5076_v57 = vpop.eup %5075  ;;  %v2310_v25 = vadd.f32 1.0, %v5074_v19  ;;  %v2198_v38 = vpop.xlane.xlu0 %2197 }
 0x38e   : > { %v5078_v0 = vpop.eup %5077  ;;  %5087 = vrcp.f32 %v2313_v63  ;;  %v4424_v1 = vmul.f32 -1.442695, %v5076_v57  ;;  %v2222_v2 = vadd.f32 %v6006_v58, %v2198_v38 }
 0x38f   : > { %v5080_v4 = vpop.eup %5079  ;;  %5089 = vrcp.f32 %v2310_v25  ;;  %v2311_v24 = vadd.f32 1.0, %v5078_v0  ;;  %v2201_v54 = vpop.xlane.xlu1 %2200 }
 0x390   : > { %v5082_v8 = vpop.eup %5081  ;;  %5091 = vpow2.f32 %v4424_v1  ;;  %v4425_v60 = vmul.f32 -1.442695, %v5080_v4  ;;  %v2223_v56 = vadd.f32 %v6006_v58, %v2201_v54  ;;  %v2238_v3 = vmax.f32 %v2222_v2, 0.0 }
 0x391   : > { %v5084_v31 = vpop.eup %5083  ;;  %5093 = vrcp.f32 %v2311_v24  ;;  %v4422_v11 = vmul.f32 -1.442695, %v5082_v8  ;;  %v2204_v40 = vpop.xlane.xlu0 %2203 }
 0x392   : > { %5095 = vpow2.f32 %v4425_v60  ;;  %v4423_v13 = vmul.f32 -1.442695, %v5084_v31  ;;  %v2239_v14 = vmax.f32 %v2223_v56, 0.0  ;;  %v2224_v15 = vadd.f32 %v6006_v58, %v2204_v40 }
 0x393   : > { %5097 = vpow2.f32 %v4422_v11  ;;  %v2207_v17 = vpop.xlane.xlu1 %2206  ;;  %v5383_v11 = vmov (!%p4430_p6), 0  }
 0x394   : > { %5099 = vpow2.f32 %v4423_v13  ;;  %v2240_v22 = vmax.f32 %v2224_v15, 0.0  ;;  %v2225_v51 = vadd.f32 %v6006_v58, %v2207_v17  ;;  %5133 = vset.pattern.permute.xlu1 (!%p4430_p6), %v5383_v11  ;;  %5134 = vset.pattern.permute.xlu0 (!%p4430_p6), %v5383_v11  ;;  %v2857_v39 = vsel (!%p4430_p6), %vm2471_vm1, 1, %v5383_v11 }
 0x395   : > { %v5086_v18 = vpop.eup %5085  ;;  %5101 = vtanh.f32 %v2238_v3  ;;  %v6091_v3 = vld [vmem:[%s6978_s1 + $0x10] sm:$0xff] (!%p4430_p6)  ;;  %2890 = vperm.xlu1 (!%p4430_p6), %5133, %v2857_v39   ;;  %v2858_v15 = vsel (!%p4430_p6), %vm2472_vm2, 1, %v5383_v11  ;;  %v6131_v39 = vld [vmem:[%s6978_s1 + $0x38] sm:$0xff] (!%p4430_p6) }
 0x396   : > { %v2360_v49 = vsel %vm1834_vm6, %v5086_v18, 0.0  ;;  %5103 = vtanh.f32 %v2239_v14  ;;  %v2241_v32 = vmax.f32 %v2225_v51, 0.0  ;;  %vm2473_vm3 = vcmp.ge.s32.totalorder (!%p4430_p6), %v6091_v3, 0  ;;  %v6098_v51 = vld [vmem:[%s6978_s1 + $0x18] sm:$0xff] (!%p4430_p6) }
 0x397   : > { %2377 = vst [vmem:[%s6023_s22 + $0x30] sm:$0xff] %v2360_v49  ;;  %5105 = vtanh.f32 %v2240_v22 }
 0x398   : > { %v5088_v61 = vpop.eup %5087  ;;  %5107 = vtanh.f32 %v2241_v32 }
 0x399   : > { %v5090_v50 = vpop.eup %5089  ;;  %v2361_v33 = vsel %vm1835_vm7, %v5088_v61, 0.0  ;;  %2893 = vperm.xlu1 (!%p4430_p6), %5133, %v2858_v15  }
 0x39a   : > { %v5092_v29 = vpop.eup %5091  ;;  %2378 = vst [vmem:[%s6023_s22 + $0x38] sm:$0xff] %v2361_v33  ;;  %v2358_v58 = vsel %vm1832_vm4, %v5090_v50, 0.0  ;;  %vm2474_vm4 = vcmp.ge.s32.totalorder (!%p4430_p6), %v6098_v51, 0 }
 0x39b   : > { %v5094_v21 = vpop.eup %5093  ;;  %2375 = vst [vmem:[%s6023_s22 + $0x20] sm:$0xff] %v2358_v58  ;;  %v2316_v59 = vadd.f32 1.0, %v5092_v29  ;;  %v2859_v29 = vsel (!%p4430_p6), %vm2473_vm3, 1, %v5383_v11 }
 0x39c   : > { %v5096_v26 = vpop.eup %5095  ;;  %v2359_v43 = vsel %vm1833_vm5, %v5094_v21, 0.0 }
 0x39d   : > { %v5098_v34 = vpop.eup %5097  ;;  %2376 = vst [vmem:[%s6023_s22 + $0x28] sm:$0xff] %v2359_v43  ;;  %5109 = vrcp.f32 %v2316_v59  ;;  %v2317_v28 = vadd.f32 1.0, %v5096_v26  ;;  %v6105_v26 = vld [vmem:[%s6978_s1 + $0x20] sm:$0xff] (!%p4430_p6)  ;;  %2896 = vperm.xlu1 (!%p4430_p6), %5133, %v2859_v29  }
 0x39e   : > { %v5100_v35 = vpop.eup %5099  ;;  %v2314_v12 = vadd.f32 1.0, %v5098_v34  ;;  %vm2475_vm5 = vcmp.ge.s32.totalorder (!%p4430_p6), %v6105_v26, 0 }
 0x39f   : > { %v5102_v62 = vpop.eup %5101  ;;  %5111 = vrcp.f32 %v2317_v28  ;;  %v2315_v44 = vadd.f32 1.0, %v5100_v35  ;;  %v2663_v35 = vmul.u32 (!%p4430_p6), 8, %v2439_v46 }
 0x3a0   : > { %v5104_v16 = vpop.eup %5103  ;;  %5113 = vrcp.f32 %v2314_v12  ;;  %v4426_v6 = vmul.f32 -1.442695, %v5102_v62 }
 0x3a1   : > { %v5106_v45 = vpop.eup %5105  ;;  %5115 = vrcp.f32 %v2315_v44  ;;  %v4427_v52 = vmul.f32 -1.442695, %v5104_v16  ;;  %v2860_v44 = vsel (!%p4430_p6), %vm2474_vm4, 1, %v5383_v11 }
 0x3a2   : > { %v5108_v53 = vpop.eup %5107  ;;  %5117 = vpow2.f32 %v4426_v6  ;;  %v4428_v10 = vmul.f32 -1.442695, %v5106_v45  ;;  %2899 = vperm.xlu1 (!%p4430_p6), %5133, %v2860_v44  }
 0x3a3   : > { %5119 = vpow2.f32 %v4427_v52  ;;  %v4429_v47 = vmul.f32 -1.442695, %v5108_v53 }
 0x3a4   : > { %5121 = vpow2.f32 %v4428_v10 }
 0x3a5   : > { %5123 = vpow2.f32 %v4429_v47 }
 0x3a7   : > { %v5110_v55 = vpop.eup %5109 }
 0x3a8   : > { %v2364_v48 = vsel %vm1838_vm10, %v5110_v55, 0.0  ;;  %v2664_v55 = vmul.u32 (!%p4430_p6), 8, %v6082_v42 }
 0x3a9   : > { %v5112_v23 = vpop.eup %5111  ;;  %2381 = vst [vmem:[%s6023_s22 + $0x50] sm:$0xff] %v2364_v48 }
 0x3aa   : > { %v5114_v30 = vpop.eup %5113  ;;  %v2365_v37 = vsel %vm1839_vm11, %v5112_v23, 0.0  ;;  %v6113_v23 = vld [vmem:[%s6978_s1 + $0x28] sm:$0xff] (!%p4430_p6) }
 0x3ab   : > { %v5116_v19 = vpop.eup %5115  ;;  %2382 = vst [vmem:[%s6023_s22 + $0x58] sm:$0xff] %v2365_v37  ;;  %v2362_v63 = vsel %vm1836_vm8, %v5114_v30, 0.0  ;;  %vm2476_vm6 = vcmp.ge.s32.totalorder (!%p4430_p6), %v6113_v23, 0  ;;  %vm2478_vm8 = vcmp.ge.s32.totalorder (!%p4430_p6), %v6131_v39, 0 }
 0x3ac   : > { %v5118_v57 = vpop.eup %5117  ;;  %2379 = vst [vmem:[%s6023_s22 + $0x40] sm:$0xff] %v2362_v63  ;;  %v2363_v25 = vsel %vm1837_vm9, %v5116_v19, 0.0 }
 0x3ad   : > { %v5120_v38 = vpop.eup %5119  ;;  %2380 = vst [vmem:[%s6023_s22 + $0x48] sm:$0xff] %v2363_v25  ;;  %v2318_v5 = vadd.f32 1.0, %v5118_v57  ;;  %v2665_v25 = vmul.u32 (!%p4430_p6), 8, %v6091_v3 }
 0x3ae   : > { %v5122_v0 = vpop.eup %5121  ;;  %v2319_v1 = vadd.f32 1.0, %v5120_v38 }
 0x3af   : > { %v5124_v2 = vpop.eup %5123  ;;  %5125 = vrcp.f32 %v2318_v5  ;;  %v2320_v7 = vadd.f32 1.0, %v5122_v0  ;;  %v2861_v5 = vsel (!%p4430_p6), %vm2475_vm5, 1, %v5383_v11 }
 0x3b0   : > { %5127 = vrcp.f32 %v2319_v1  ;;  %v2321_v20 = vadd.f32 1.0, %v5124_v2  ;;  %2902 = vperm.xlu1 (!%p4430_p6), %5133, %v2861_v5  }
 0x3b1   : > { %5129 = vrcp.f32 %v2320_v7 }
 0x3b2   : > { %5131 = vrcp.f32 %v2321_v20 }
 0x3b8   : > { %2390 = sbr.rel (%p4430_p6) target bundleno = 2698 (0xa8a), region = 104 }
 0x3b9   : > { %v5126_v4 = vpop.eup %5125 }
 0x3ba   : > { %v5128_v24 = vpop.eup %5127  ;;  %v2366_v27 = vsel %vm1840_vm12, %v5126_v4, 0.0 }
 0x3bb   : > { %v5130_v54 = vpop.eup %5129  ;;  %2383 = vst [vmem:[%s6023_s22 + $0x60] sm:$0xff] %v2366_v27  ;;  %v2367_v8 = vsel %vm1841_vm13, %v5128_v24, 0.0  ;;  %v6123_v24 = vld [vmem:[%s6978_s1 + $0x30] sm:$0xff] (!%p4430_p6) }
 0x3bc   : > { %v5132_v60 = vpop.eup %5131  ;;  %2384 = vst [vmem:[%s6023_s22 + $0x68] sm:$0xff] %v2367_v8  ;;  %v2368_v56 = vsel %vm1842_vm14, %v5130_v54, 0.0  ;;  %vm2477_vm7 = vcmp.ge.s32.totalorder (!%p4430_p6), %v6123_v24, 0 }
 0x3bd   : > { %2385 = vst [vmem:[%s6023_s22 + $0x70] sm:$0xff] %v2368_v56  ;;  %v2369_v31 = vsel %vm7012_vm0, %v5132_v60, 0.0  ;;  %v2666_v56 = vmul.u32 (!%p4430_p6), 8, %v6098_v51 }
 0x3be   : > { %2386 = vst [vmem:[%s6023_s22 + $0x78] sm:$0xff] %v2369_v31  ;;  %v2862_v31 = vsel (!%p4430_p6), %vm2476_vm6, 1, %v5383_v11 }
 0x3bf   : > { %2905 = vperm.xlu1 %5133, %v2862_v31   ;;  %v6171_v31 = vld [vmem:[%s6978_s1 + $0x60] sm:$0xff] }
 0x3c0   : > { %vm2483_vm13 = vcmp.ge.s32.totalorder %v6171_v31, 0 }
 0x3c5   : > { %v2407_v9 = vld [vmem:[#allocation3] sm:$0xff]  ;;  %v2408_v40 = vld [vmem:[#allocation3 + $0x8] sm:$0xff]  ;;  %v2409_v14 = vld [vmem:[#allocation3 + $0x10] sm:$0xff] }
 0x3c6   : > { %v2503_v13 = vmul.f32 8.0, %v2407_v9  ;;  %v2504_v17 = vmul.f32 8.0, %v2408_v40  ;;  %v2410_v22 = vld [vmem:[#allocation3 + $0x18] sm:$0xff]  ;;  %v2505_v32 = vmul.f32 8.0, %v2409_v14  ;;  %v2411_v61 = vld [vmem:[#allocation3 + $0x20] sm:$0xff]  ;;  %v2412_v28 = vld [vmem:[#allocation3 + $0x28] sm:$0xff] }
 0x3c7   : > { %v2506_v33 = vmul.f32 8.0, %v2410_v22  ;;  %v2507_v34 = vmul.f32 8.0, %v2411_v61  ;;  %v2508_v10 = vmul.f32 8.0, %v2412_v28  ;;  %v2413_v47 = vld [vmem:[#allocation3 + $0x30] sm:$0xff]  ;;  %v2414_v1 = vld [vmem:[#allocation3 + $0x38] sm:$0xff]  ;;  %v2415_v60 = vld [vmem:[#allocation3 + $0x40] sm:$0xff] }
 0x3c8   : > { %v2535_v18 = vfloor.f32 %v2503_v13  ;;  %v2536_v49 = vfloor.f32 %v2504_v17  ;;  %v2537_v21 = vfloor.f32 %v2505_v32  ;;  %v2509_v0 = vmul.f32 8.0, %v2413_v47  ;;  %v2416_v15 = vld [vmem:[#allocation3 + $0x48] sm:$0xff]  ;;  %v2417_v61 = vld [vmem:[#allocation3 + $0x50] sm:$0xff] }
 0x3c9   : > { %v2538_v43 = vfloor.f32 %v2506_v33  ;;  %v2539_v45 = vfloor.f32 %v2507_v34  ;;  %v2540_v57 = vfloor.f32 %v2508_v10  ;;  %v2510_v8 = vmul.f32 8.0, %v2414_v1 }
 0x3ca   : > { %v2567_v50 = vmax.f32 %v2535_v18, 0.0  ;;  %v2568_v58 = vmax.f32 %v2536_v49, 0.0  ;;  %v2569_v62 = vmax.f32 %v2537_v21, 0.0  ;;  %v2541_v54 = vfloor.f32 %v2509_v0  ;;  %v6139_v49 = vld [vmem:[%s6978_s1 + $0x40] sm:$0xff] }
 0x3cb   : > { %v2570_v6 = vmax.f32 %v2538_v43, 0.0  ;;  %v2571_v37 = vmax.f32 %v2539_v45, 0.0  ;;  %v2572_v27 = vmax.f32 %v2540_v57, 0.0  ;;  %v2542_v13 = vfloor.f32 %v2510_v8  ;;  %v6163_v57 = vld [vmem:[%s6978_s1 + $0x58] sm:$0xff] }
 0x3cc   : > { %v2599_v59 = vmin.f32 %v2567_v50, 7.0  ;;  %v2600_v12 = vmin.f32 %v2568_v58, 7.0  ;;  %v2601_v53 = vmin.f32 %v2569_v62, 7.0  ;;  %v2573_v40 = vmax.f32 %v2541_v54, 0.0 }
 0x3cd   : > { %v2602_v30 = vmin.f32 %v2570_v6, 7.0  ;;  %v2603_v20 = vmin.f32 %v2571_v37, 7.0  ;;  %v2604_v3 = vmin.f32 %v2572_v27, 7.0  ;;  %v2511_v14 = vmul.f32 8.0, %v2415_v60  ;;  %v2419_v37 = vld [vmem:[#allocation3 + $0x60] sm:$0xff] }
 0x3ce   : > { %v4678_v16 = vtrunc.f32 %v2599_v59  ;;  %v4680_v52 = vtrunc.f32 %v2600_v12  ;;  %v4682_v63 = vtrunc.f32 %v2601_v53  ;;  %v2667_v17 = vmul.u32 8, %v6105_v26 }
 0x3cf   : > { %v4684_v7 = vtrunc.f32 %v2602_v30  ;;  %v4686_v9 = vtrunc.f32 %v2603_v20  ;;  %v2863_v22 = vsel %vm2477_vm7, 1, %v5383_v11  ;;  %v2512_v32 = vmul.f32 8.0, %v2416_v15  ;;  %v2420_v20 = vld [vmem:[#allocation3 + $0x68] sm:$0xff] }
 0x3d0   : > { %v4679_v48 = vcvt.f32.s32 %v4678_v16  ;;  %v4681_v19 = vcvt.f32.s32 %v4680_v52  ;;  %v4683_v2 = vcvt.f32.s32 %v4682_v63  ;;  %v4688_v50 = vtrunc.f32 %v2604_v3  ;;  %2908 = vperm.xlu1 %5133, %v2863_v22   ;;  %v2418_v16 = vld [vmem:[#allocation3 + $0x58] sm:$0xff] }
 0x3d1   : > { %v4685_v42 = vcvt.f32.s32 %v4684_v7  ;;  %v4687_v18 = vcvt.f32.s32 %v4686_v9  ;;  %v2605_v33 = vmin.f32 %v2573_v40, 7.0  ;;  %v2574_v29 = vmax.f32 %v2542_v13, 0.0  ;;  %v2421_v9 = vld [vmem:[#allocation3 + $0x70] sm:$0xff] }
 0x3d2   : > { %v2695_v38 = vadd.s32 %v4679_v48, %v2663_v35  ;;  %v2696_v4 = vadd.s32 %v4681_v19, %v2664_v55  ;;  %v2697_v46 = vadd.s32 %v4683_v2, %v2665_v25  ;;  %v2543_v58 = vfloor.f32 %v2511_v14  ;;  %v6147_v35 = vld [vmem:[%s6978_s1 + $0x48] sm:$0xff]  ;;  %v6155_v48 = vld [vmem:[%s6978_s1 + $0x50] sm:$0xff] }
 0x3d3   : > { %v2698_v51 = vadd.s32 %v4685_v42, %v2666_v56  ;;  %v2668_v21 = vmul.u32 8, %v6113_v23  ;;  %v2864_v59 = vsel %vm2478_vm8, 1, %v5383_v11  ;;  %v2699_v26 = vadd.s32 %v4687_v18, %v2667_v17  ;;  %v6179_v17 = vld [vmem:[%s6978_s1 + $0x68] sm:$0xff] }
 0x3d4   : > { %2730 = vperm.xlu0 %5134, %v2695_v38   ;;  %vm2479_vm9 = vcmp.ge.s32.totalorder %v6139_v49, 0  ;;  %v2544_v43 = vfloor.f32 %v2512_v32  ;;  %v2513_v34 = vmul.f32 8.0, %v2417_v61  ;;  %v4689_v28 = vcvt.f32.s32 %v4688_v50  ;;  %2911 = vperm.xlu1 %5133, %v2864_v59  }
 0x3d5   : > { %v4690_v12 = vtrunc.f32 %v2605_v33  ;;  %v2606_v62 = vmin.f32 %v2574_v29, 7.0  ;;  %v2575_v44 = vmax.f32 %v2543_v58, 0.0  ;;  %v2669_v6 = vmul.u32 8, %v6123_v24  ;;  %v6187_v58 = vld [vmem:[%s6978_s1 + $0x70] sm:$0xff] }
 0x3d6   : > { %v2865_v45 = vsel %vm2479_vm9, 1, %v5383_v11  ;;  %vm2480_vm10 = vcmp.ge.s32.totalorder %v6147_v35, 0  ;;  %v2576_v52 = vmax.f32 %v2544_v43, 0.0  ;;  %v2545_v53 = vfloor.f32 %v2513_v34  ;;  %v2423_v34 = vld [vmem:[#allocation3 + $0x80] sm:$0xff] }
 0x3d7   : > { %v2514_v10 = vmul.f32 8.0, %v2418_v16  ;;  %v2700_v47 = vadd.s32 %v4689_v28, %v2668_v21  ;;  %v4691_v55 = vcvt.f32.s32 %v4690_v12  ;;  %v4692_v23 = vtrunc.f32 %v2606_v62  ;;  %v6195_v16 = vld [vmem:[%s6978_s1 + $0x78] sm:$0xff] }
 0x3d8   : > { %2733 = vperm.xlu0 %5134, %v2696_v4   ;;  %v2607_v30 = vmin.f32 %v2575_v44, 7.0  ;;  %v2670_v19 = vmul.u32 8, %v6131_v39  ;;  %2914 = vperm.xlu1 %5133, %v2865_v45   ;;  %v2866_v63 = vsel %vm2480_vm10, 1, %v5383_v11  ;;  %vm2481_vm11 = vcmp.ge.s32.totalorder %v6155_v48, 0 }
 0x3d9   : > { %v2608_v25 = vmin.f32 %v2576_v52, 7.0  ;;  %v2577_v38 = vmax.f32 %v2545_v53, 0.0  ;;  %v2546_v5 = vfloor.f32 %v2514_v10  ;;  %v2701_v0 = vadd.s32 %v4691_v55, %v2669_v6  ;;  %v2424_v10 = vld [vmem:[#allocation3 + $0x88] sm:$0xff] }
 0x3da   : > { %v4693_v1 = vcvt.f32.s32 %v4692_v23  ;;  %v4694_v2 = vtrunc.f32 %v2607_v30  ;;  %v2515_v7 = vmul.f32 8.0, %v2419_v37  ;;  %v2671_v4 = vmul.u32 8, %v6139_v49  ;;  %v2422_v49 = vld [vmem:[#allocation3 + $0x78] sm:$0xff] }
 0x3db   : > { %v2867_v24 = vsel %vm2481_vm11, 1, %v5383_v11  ;;  %vm2482_vm12 = vcmp.ge.s32.totalorder %v6163_v57, 0  ;;  %v4696_v27 = vtrunc.f32 %v2608_v25  ;;  %v2609_v54 = vmin.f32 %v2577_v38, 7.0  ;;  %v2425_v38 = vld [vmem:[#allocation3 + $0x90] sm:$0xff] }
 0x3dc   : > { %2736 = vperm.xlu0 %5134, %v2697_v46   ;;  %2917 = vperm.xlu1 %5133, %v2866_v63   ;;  %v2578_v8 = vmax.f32 %v2546_v5, 0.0  ;;  %v2702_v60 = vadd.s32 %v4693_v1, %v2670_v19  ;;  %v4695_v56 = vcvt.f32.s32 %v4694_v2  ;;  %v2547_v46 = vfloor.f32 %v2515_v7  ;;  %v6203_v19 = vld [vmem:[%s6978_s1 + $0x80] sm:$0xff] }
 0x3dd   : > { %v2516_v42 = vmul.f32 8.0, %v2420_v20  ;;  %v2672_v39 = vmul.u32 8, %v6147_v35  ;;  %v2868_v3 = vsel %vm2482_vm12, 1, %v5383_v11  ;;  %v4697_v40 = vcvt.f32.s32 %v4696_v27 }
 0x3de   : > { %v4698_v13 = vtrunc.f32 %v2609_v54  ;;  %v2610_v14 = vmin.f32 %v2578_v8, 7.0  ;;  %v2703_v15 = vadd.s32 %v4695_v56, %v2671_v4  ;;  %v2579_v22 = vmax.f32 %v2547_v46, 0.0  ;;  %v2426_v8 = vld [vmem:[#allocation3 + $0x98] sm:$0xff] }
 0x3df   : > { %v2517_v18 = vmul.f32 8.0, %v2421_v9  ;;  %v2673_v32 = vmul.u32 8, %v6155_v48  ;;  %v2869_v61 = vsel %vm2483_vm13, 1, %v5383_v11  ;;  %v2704_v50 = vadd.s32 %v4697_v40, %v2672_v39 }
 0x3e0   : > { %2739 = vperm.xlu0 %5134, %v2698_v51   ;;  %2920 = vperm.xlu1 %5133, %v2867_v24   ;;  %v2548_v51 = vfloor.f32 %v2516_v42  ;;  %vm2484_vm14 = vcmp.ge.s32.totalorder %v6179_v17, 0  ;;  %v4699_v33 = vcvt.f32.s32 %v4698_v13  ;;  %v4700_v29 = vtrunc.f32 %v2610_v14  ;;  %v6211_v24 = vld [vmem:[%s6978_s1 + $0x88] sm:$0xff]  ;;  %v2427_v14 = vld [vmem:[#allocation3 + $0xa0] sm:$0xff] }
 0x3e1   : > { %v2611_v21 = vmin.f32 %v2579_v22, 7.0  ;;  %v2518_v43 = vmul.f32 8.0, %v2422_v49  ;;  %v2674_v28 = vmul.u32 8, %v6163_v57  ;;  %v2870_v35 = vsel %vm2484_vm14, 1, %v5383_v11 }
 0x3e2   : > { %v2580_v59 = vmax.f32 %v2548_v51, 0.0  ;;  %v2705_v12 = vadd.s32 %v4699_v33, %v2673_v32  ;;  %vm2485_vm0 = vcmp.ge.s32.totalorder %v6187_v58, 0  ;;  %v4701_v62 = vcvt.f32.s32 %v4700_v29  ;;  %v2428_v29 = vld [vmem:[#allocation3 + $0xa8] sm:$0xff] }
 0x3e3   : > { %v2519_v44 = vmul.f32 8.0, %v2423_v34  ;;  %v4702_v6 = vtrunc.f32 %v2611_v21  ;;  %v2550_v53 = vfloor.f32 %v2518_v43  ;;  %v2871_v55 = vsel %vm2485_vm0, 1, %v5383_v11 }
 0x3e4   : > { %2742 = vperm.xlu0 %5134, %v2699_v26   ;;  %2923 = vperm.xlu1 %5133, %v2868_v3   ;;  %v2549_v26 = vfloor.f32 %v2517_v18  ;;  %v2612_v45 = vmin.f32 %v2580_v59, 7.0  ;;  %v2706_v48 = vadd.s32 %v4701_v62, %v2674_v28  ;;  %vm2486_vm1 = vcmp.ge.s32.totalorder %v6195_v16, 0  ;;  %v6219_v3 = vld [vmem:[%s6978_s1 + $0x90] sm:$0xff] }
 0x3e5   : > { %v2551_v23 = vfloor.f32 %v2519_v44  ;;  %v2520_v30 = vmul.f32 8.0, %v2424_v10  ;;  %v4703_v37 = vcvt.f32.s32 %v4702_v6  ;;  %v2582_v25 = vmax.f32 %v2550_v53, 0.0  ;;  %v2429_v44 = vld [vmem:[#allocation3 + $0xb0] sm:$0xff]  ;;  %v6243_v10 = vld [vmem:[%s6978_s1 + $0xa8] sm:$0xff] }
 0x3e6   : > { %v2581_v52 = vmax.f32 %v2549_v26, 0.0  ;;  %v4704_v63 = vtrunc.f32 %v2612_v45  ;;  %v2676_v5 = vmul.u32 8, %v6179_v17  ;;  %vm2487_vm2 = vcmp.ge.s32.totalorder %v6203_v19, 0  ;;  %v6235_v26 = vld [vmem:[%s6978_s1 + $0xa0] sm:$0xff] }
 0x3e7   : > { %v2583_v1 = vmax.f32 %v2551_v23, 0.0  ;;  %v2552_v2 = vfloor.f32 %v2520_v30  ;;  %v2521_v7 = vmul.f32 8.0, %v2425_v38  ;;  %v2614_v54 = vmin.f32 %v2582_v25, 7.0  ;;  %v2430_v30 = vld [vmem:[#allocation3 + $0xb8] sm:$0xff] }
 0x3e8   : > { %2745 = vperm.xlu0 %5134, %v2700_v47   ;;  %2926 = vperm.xlu1 %5133, %v2869_v61   ;;  %v2675_v47 = vmul.u32 8, %v6171_v31  ;;  %v2613_v57 = vmin.f32 %v2581_v52, 7.0  ;;  %v4705_v4 = vcvt.f32.s32 %v4704_v63  ;;  %v2873_v56 = vsel %vm2487_vm2, 1, %v5383_v11  ;;  %v6227_v61 = vld [vmem:[%s6978_s1 + $0x98] sm:$0xff] }
 0x3e9   : > { %vm2488_vm3 = vcmp.ge.s32.totalorder %v6211_v24, 0  ;;  %v2615_v31 = vmin.f32 %v2583_v1, 7.0  ;;  %v2584_v46 = vmax.f32 %v2552_v2, 0.0  ;;  %v2553_v42 = vfloor.f32 %v2521_v7 }
 0x3ea   : > { %v2707_v20 = vadd.s32 %v4703_v37, %v2675_v47  ;;  %v4706_v27 = vtrunc.f32 %v2613_v57  ;;  %v2708_v9 = vadd.s32 %v4705_v4, %v2676_v5  ;;  %v4708_v40 = vtrunc.f32 %v2614_v54  ;;  %v6252_v5 = vld [vmem:[%s6978_s1 + $0xb0] sm:$0xff] }
 0x3eb   : > { %v2522_v13 = vmul.f32 8.0, %v2426_v8  ;;  %v2874_v17 = vsel %vm2488_vm3, 1, %v5383_v11  ;;  %vm2489_vm4 = vcmp.ge.s32.totalorder %v6219_v3, 0  ;;  %v4710_v22 = vtrunc.f32 %v2615_v31 }
 0x3ec   : > { %2748 = vperm.xlu0 %5134, %v2701_v0   ;;  %2929 = vperm.xlu1 %5133, %v2870_v35   ;;  %v2872_v0 = vsel %vm2486_vm1, 1, %v5383_v11  ;;  %v4707_v39 = vcvt.f32.s32 %v4706_v27  ;;  %v2616_v51 = vmin.f32 %v2584_v46, 7.0  ;;  %v2585_v18 = vmax.f32 %v2553_v42, 0.0 }
 0x3ed   : > { %v4709_v32 = vcvt.f32.s32 %v4708_v40  ;;  %v2523_v33 = vmul.f32 8.0, %v2427_v14  ;;  %v2875_v21 = vsel %vm2489_vm4, 1, %v5383_v11  ;;  %vm2490_vm5 = vcmp.ge.s32.totalorder %v6227_v61, 0 }
 0x3ee   : > { %v4711_v59 = vcvt.f32.s32 %v4710_v22  ;;  %v4712_v43 = vtrunc.f32 %v2616_v51  ;;  %v2617_v34 = vmin.f32 %v2585_v18, 7.0  ;;  %v2524_v62 = vmul.f32 8.0, %v2428_v29  ;;  %v6268_v22 = vld [vmem:[%s6978_s1 + $0xc0] sm:$0xff] }
 0x3ef   : > { %v2876_v6 = vsel %vm2490_vm5, 1, %v5383_v11  ;;  %vm2491_vm6 = vcmp.ge.s32.totalorder %v6235_v26, 0  ;;  %v2525_v23 = vmul.f32 8.0, %v2429_v44  ;;  %v5384_v37 = vmov 0.0  }
 0x3f0   : > { %2751 = vperm.xlu0 %5134, %v2702_v60   ;;  %2932 = vperm.xlu1 %5133, %v2871_v55   ;;  %v2677_v60 = vmul.u32 8, %v6187_v58  ;;  %v2679_v58 = vmul.u32 8, %v6203_v19  ;;  %v4713_v52 = vcvt.f32.s32 %v4712_v43  ;;  %v4714_v53 = vtrunc.f32 %v2617_v34  ;;  %v2434_v34 = vld [vmem:[#allocation3 + $0xd8] sm:$0xff] }
 0x3f1   : > { %4541 = vmatprep.subr.bf16.mxu1 %v5384_v37  ;;  %v2681_v19 = vmul.u32 8, %v6219_v3  ;;  %v2877_v63 = vsel %vm2491_vm6, 1, %v5383_v11  ;;  %vm2492_vm7 = vcmp.ge.s32.totalorder %v6243_v10, 0  ;;  %v2526_v38 = vmul.f32 8.0, %v2430_v30 }
 0x3f2   : > { %v2709_v49 = vadd.s32 %v4707_v39, %v2677_v60  ;;  %v2711_v45 = vadd.s32 %v4711_v59, %v2679_v58  ;;  %v4715_v25 = vcvt.f32.s32 %v4714_v53  ;;  %v2557_v7 = vfloor.f32 %v2525_v23  ;;  %v6276_v59 = vld [vmem:[%s6978_s1 + $0xc8] sm:$0xff] }
 0x3f3   : > { %v2682_v4 = vmul.u32 8, %v6227_v61  ;;  %vm2493_vm8 = vcmp.ge.s32.totalorder %v6252_v5, 0  ;;  %v2558_v54 = vfloor.f32 %v2526_v38  ;;  %v2683_v39 = vmul.u32 8, %v6235_v26 }
 0x3f4   : > { %2754 = vperm.xlu0 %5134, %v2703_v15   ;;  %2935 = vperm.xlu1 %5133, %v2872_v0   ;;  %v2678_v15 = vmul.u32 8, %v6195_v16  ;;  %v2680_v16 = vmul.u32 8, %v6211_v24  ;;  %v2878_v24 = vsel %vm2492_vm7, 1, %v5383_v11  ;;  %v2713_v27 = vadd.s32 %v4715_v25, %v2681_v19 }
 0x3f5   : > { %v2589_v42 = vmax.f32 %v2557_v7, 0.0  ;;  %v2879_v3 = vsel %vm2493_vm8, 1, %v5383_v11  ;;  %v2590_v40 = vmax.f32 %v2558_v54, 0.0  ;;  %vm2495_vm10 = vcmp.ge.s32.totalorder %v6268_v22, 0 }
 0x3f6   : > { %v2710_v28 = vadd.s32 %v4709_v32, %v2678_v15  ;;  %v2712_v57 = vadd.s32 %v4713_v52, %v2680_v16  ;;  %v2684_v32 = vmul.u32 8, %v6243_v10  ;;  %vm2496_vm11 = vcmp.ge.s32.totalorder %v6276_v59, 0  ;;  %v2435_v10 = vld [vmem:[#allocation3 + $0xe0] sm:$0xff] }
 0x3f7   : > { %v2621_v18 = vmin.f32 %v2589_v42, 7.0  ;;  %v2530_v53 = vmul.f32 8.0, %v2434_v34  ;;  %v2531_v38 = vmul.f32 8.0, %v2435_v10 }
 0x3f8   : > { %2757 = vperm.xlu0 %5134, %v2704_v50   ;;  %2938 = vperm.xlu1 %5133, %v2873_v56   ;;  %v2554_v50 = vfloor.f32 %v2522_v13  ;;  %v6260_v56 = vld [vmem:[%s6978_s1 + $0xb8] sm:$0xff] }
 0x3f9   : > { %vm2494_vm9 = vcmp.ge.s32.totalorder %v6260_v56, 0  ;;  %v4722_v26 = vtrunc.f32 %v2621_v18  ;;  %v2562_v25 = vfloor.f32 %v2530_v53  ;;  %v2563_v54 = vfloor.f32 %v2531_v38 }
 0x3fa   : > { %v2586_v35 = vmax.f32 %v2554_v50, 0.0  ;;  %v2880_v61 = vsel %vm2494_vm9, 1, %v5383_v11  ;;  %v2622_v50 = vmin.f32 %v2590_v40, 7.0 }
 0x3fc   : > { %2760 = vperm.xlu0 %5134, %v2705_v12   ;;  %2941 = vperm.xlu1 %5133, %v2874_v17   ;;  %v2555_v12 = vfloor.f32 %v2523_v33  ;;  %v2618_v47 = vmin.f32 %v2586_v35, 7.0  ;;  %v2881_v35 = vsel %vm2495_vm10, 1, %v5383_v11 }
 0x3fe   : > { %v2587_v55 = vmax.f32 %v2555_v12, 0.0  ;;  %v4716_v0 = vtrunc.f32 %v2618_v47  ;;  %v4724_v12 = vtrunc.f32 %v2622_v50  ;;  %v2686_v47 = vmul.u32 8, %v6260_v56 }
 0x3ff   : > { %v2688_v56 = vmul.u32 8, %v6276_v59 }
 0x400   : > { %2763 = vperm.xlu0 %5134, %v2706_v48   ;;  %2944 = vperm.xlu1 %5133, %v2875_v21   ;;  %v2556_v48 = vfloor.f32 %v2524_v62  ;;  %v2619_v1 = vmin.f32 %v2587_v55, 7.0  ;;  %v4717_v60 = vcvt.f32.s32 %v4716_v0  ;;  %v2882_v55 = vsel %vm2496_vm11, 1, %v5383_v11 }
 0x401   : > { %v2687_v0 = vmul.u32 8, %v6268_v22 }
 0x402   : > { %v2588_v2 = vmax.f32 %v2556_v48, 0.0  ;;  %v4718_v31 = vtrunc.f32 %v2619_v1  ;;  %v2714_v15 = vadd.s32 %v4717_v60, %v2682_v4  ;;  %v4725_v48 = vcvt.f32.s32 %v4724_v12  ;;  %v2467_v4 = vld [vmem:[%s6978_s1 + $0xe0] sm:$0xff]  ;;  %v2437_v60 = vld [vmem:[#allocation3 + $0xf0] sm:$0xff] }
 0x403   : > { %vm2499_vm14 = vcmp.ge.s32.totalorder %v2467_v4, 0 }
 0x404   : > { %2766 = vperm.xlu0 %5134, %v2707_v20   ;;  %2947 = vperm.xlu1 %5133, %v2876_v6   ;;  %v2431_v20 = vld [vmem:[#allocation3 + $0xc0] sm:$0xff]  ;;  %v2620_v46 = vmin.f32 %v2588_v2, 7.0  ;;  %v4719_v17 = vcvt.f32.s32 %v4718_v31  ;;  %v4723_v6 = vcvt.f32.s32 %v4722_v26  ;;  %v2718_v2 = vadd.s32 %v4725_v48, %v2686_v47 }
 0x405   : > { %v2527_v8 = vmul.f32 8.0, %v2431_v20  ;;  %v2885_v22 = vsel %vm2499_vm14, 1, %v5383_v11 }
 0x406   : > { %v4720_v51 = vtrunc.f32 %v2620_v46  ;;  %v2715_v58 = vadd.s32 %v4719_v17, %v2683_v39  ;;  %v2468_v39 = vld [vmem:[%s6978_s1 + $0xe8] sm:$0xff] }
 0x407   : > { %v2559_v13 = vfloor.f32 %v2527_v8  ;;  %vm2500_vm0 = vcmp.ge.s32.totalorder %v2468_v39, 0  ;;  %v2692_v10 = vmul.u32 8, %v2468_v39 }
 0x408   : > { %2769 = vperm.xlu0 %5134, %v2708_v9   ;;  %2950 = vperm.xlu1 %5133, %v2877_v63   ;;  %v2432_v9 = vld [vmem:[#allocation3 + $0xc8] sm:$0xff]  ;;  %v4721_v21 = vcvt.f32.s32 %v4720_v51  ;;  %v6292_v63 = vld [vmem:[%s6978_s1 + $0xd8] sm:$0xff] }
 0x409   : > { %v2528_v14 = vmul.f32 8.0, %v2432_v9  ;;  %v2591_v33 = vmax.f32 %v2559_v13, 0.0  ;;  %vm2498_vm13 = vcmp.ge.s32.totalorder %v6292_v63, 0  ;;  %v2533_v9 = vmul.f32 8.0, %v2437_v60 }
 0x40a   : > { %v2716_v16 = vadd.s32 %v4721_v21, %v2684_v32  ;;  %v2884_v31 = vsel %vm2498_vm13, 1, %v5383_v11  ;;  %v2595_v13 = vmax.f32 %v2563_v54, 0.0  ;;  %v2886_v21 = vsel %vm2500_vm0, 1, %v5383_v11 }
 0x40b   : > { %v2560_v29 = vfloor.f32 %v2528_v14  ;;  %v2623_v62 = vmin.f32 %v2591_v33, 7.0  ;;  %v2565_v18 = vfloor.f32 %v2533_v9 }
 0x40c   : > { %2772 = vperm.xlu0 %5134, %v2709_v49   ;;  %2953 = vperm.xlu1 %5133, %v2878_v24   ;;  %v2433_v49 = vld [vmem:[#allocation3 + $0xd0] sm:$0xff]  ;;  %v2627_v33 = vmin.f32 %v2595_v13, 7.0 }
 0x40d   : > { %v2529_v43 = vmul.f32 8.0, %v2433_v49  ;;  %v2592_v44 = vmax.f32 %v2560_v29, 0.0  ;;  %v4726_v23 = vtrunc.f32 %v2623_v62  ;;  %v2597_v59 = vmax.f32 %v2565_v18, 0.0 }
 0x40e   : > { %v2691_v62 = vmul.u32 8, %v2467_v4 }
 0x40f   : > { %v2561_v52 = vfloor.f32 %v2529_v43  ;;  %v2624_v30 = vmin.f32 %v2592_v44, 7.0  ;;  %v4727_v7 = vcvt.f32.s32 %v4726_v23  ;;  %v2629_v53 = vmin.f32 %v2597_v59, 7.0 }
 0x410   : > { %2775 = vperm.xlu0 %5134, %v2710_v28   ;;  %2956 = vperm.xlu1 %5133, %v2879_v3   ;;  %v2685_v28 = vmul.u32 8, %v6252_v5  ;;  %v2436_v5 = vld [vmem:[#allocation3 + $0xe8] sm:$0xff] }
 0x411   : > { %v4728_v20 = vtrunc.f32 %v2624_v30  ;;  %v2532_v8 = vmul.f32 8.0, %v2436_v5  ;;  %v2719_v46 = vadd.s32 %v4727_v7, %v2687_v0  ;;  %v4738_v23 = vtrunc.f32 %v2629_v53 }
 0x412   : > { %v2717_v19 = vadd.s32 %v4723_v6, %v2685_v28  ;;  %v2470_v28 = vld [vmem:[%s6978_s1 + $0xf8] sm:$0xff] }
 0x413   : > { %v4729_v42 = vcvt.f32.s32 %v4728_v20  ;;  %v2564_v14 = vfloor.f32 %v2532_v8  ;;  %vm2502_vm2 = vcmp.ge.s32.totalorder %v2470_v28, 0  ;;  %v2694_v5 = vmul.u32 8, %v2470_v28 }
 0x414   : > { %2778 = vperm.xlu0 %5134, %v2711_v45   ;;  %2959 = vperm.xlu1 %5133, %v2880_v61   ;;  %v6284_v45 = vld [vmem:[%s6978_s1 + $0xd0] sm:$0xff]  ;;  %v2888_v47 = vsel %vm2502_vm2, 1, %v5383_v11  ;;  %v2891_v38 = vpop.permute.xlu1 %2890 }
 0x415   : > { %vm2497_vm12 = vcmp.ge.s32.totalorder %v6284_v45, 0  ;;  %v2689_v17 = vmul.u32 8, %v6284_v45  ;;  %v2720_v51 = vadd.s32 %v4729_v42, %v2688_v56  ;;  %v2469_v61 = vld [vmem:[%s6978_s1 + $0xf0] sm:$0xff]  ;;  %v2596_v29 = vmax.f32 %v2564_v14, 0.0 }
 0x416   : > { %v2883_v1 = vsel %vm2497_vm12, 1, %v5383_v11  ;;  %vm2501_vm1 = vcmp.ge.s32.totalorder %v2469_v61, 0  ;;  %vm2985_vm4 = vcmp.eq.s32.totalorder %v2891_v38, 1 }
 0x417   : > { %v2628_v12 = vmin.f32 %v2596_v29, 7.0  ;;  %v2887_v44 = vsel %vm2501_vm1, 1, %v5383_v11 }
 0x418   : > { %2781 = vperm.xlu0 %5134, %v2712_v57   ;;  %2962 = vperm.xlu1 %5133, %v2881_v35   ;;  %v2593_v57 = vmax.f32 %v2561_v52, 0.0  ;;  %v4734_v35 = vtrunc.f32 %v2627_v33 }
 0x419   : > { %v4736_v52 = vtrunc.f32 %v2628_v12 }
 0x41a   : > { %v2625_v24 = vmin.f32 %v2593_v57, 7.0  ;;  %v4735_v45 = vcvt.f32.s32 %v4734_v35  ;;  %v4739_v57 = vcvt.f32.s32 %v4738_v23 }
 0x41b   : > { %v4737_v48 = vcvt.f32.s32 %v4736_v52 }
 0x41c   : > { %2784 = vperm.xlu0 %5134, %v2713_v27   ;;  %2965 = vperm.xlu1 %5133, %v2882_v55   ;;  %v2594_v27 = vmax.f32 %v2562_v25, 0.0  ;;  %v4730_v3 = vtrunc.f32 %v2625_v24  ;;  %v2723_v55 = vadd.s32 %v4735_v45, %v2691_v62 }
 0x41e   : > { %v2626_v40 = vmin.f32 %v2594_v27, 7.0  ;;  %v4731_v32 = vcvt.f32.s32 %v4730_v3 }
 0x420   : > { %2787 = vperm.xlu0 %5134, %v2714_v15   ;;  %2968 = vperm.xlu1 %5133, %v2883_v1   ;;  %v2438_v15 = vld [vmem:[#allocation3 + $0xf8] sm:$0xff]  ;;  %v4732_v50 = vtrunc.f32 %v2626_v40  ;;  %v2721_v43 = vadd.s32 %v4731_v32, %v2689_v17 }
 0x421   : > { %v2534_v49 = vmul.f32 8.0, %v2438_v15 }
 0x422   : > { %v4733_v34 = vcvt.f32.s32 %v4732_v50 }
 0x423   : > { %v2566_v26 = vfloor.f32 %v2534_v49 }
 0x424   : > { %2790 = vperm.xlu0 %5134, %v2715_v58   ;;  %2971 = vperm.xlu1 %5133, %v2884_v31   ;;  %v2690_v58 = vmul.u32 8, %v6292_v63  ;;  %v2724_v63 = vadd.s32 %v4737_v48, %v2692_v10 }
 0x426   : > { %v2722_v6 = vadd.s32 %v4733_v34, %v2690_v58  ;;  %v6350_v58 = vand.u32 127, %v725_v36 }
 0x428   : > { %2793 = vperm.xlu0 %5134, %v2716_v16   ;;  %2974 = vperm.xlu1 %5133, %v2885_v22   ;;  %v2598_v16 = vmax.f32 %v2566_v26, 0.0 }
 0x42a   : > { %v2630_v30 = vmin.f32 %v2598_v16, 7.0 }
 0x42c   : > { %2796 = vperm.xlu0 %5134, %v2717_v19   ;;  %2977 = vperm.xlu1 %5133, %v2886_v21   ;;  %v2693_v19 = vmul.u32 8, %v2469_v61  ;;  %v4740_v25 = vtrunc.f32 %v2630_v30 }
 0x42e   : > { %v2725_v0 = vadd.s32 %v4739_v57, %v2693_v19  ;;  %v4741_v1 = vcvt.f32.s32 %v4740_v25 }
 0x430   : > { %2799 = vperm.xlu0 %5134, %v2718_v2   ;;  %2980 = vperm.xlu1 %5133, %v2887_v44   ;;  %v2894_v2 = vpop.permute.xlu1 %2893  ;;  %v2726_v7 = vadd.s32 %v4741_v1, %v2694_v5 }
 0x431   : > { %vm2986_vm6 = vcmp.eq.s32.totalorder %v2894_v2, 1 }
 0x434   : > { %2802 = vperm.xlu0 %5134, %v2719_v46   ;;  %2983 = vperm.xlu1 %5133, %v2888_v47   ;;  %v2897_v11 = vpop.permute.xlu1 %2896 }
 0x435   : > { %vm2987_vm9 = vcmp.eq.s32.totalorder %v2897_v11, 1 }
 0x438   : > { %2805 = vperm.xlu0 %5134, %v2720_v51   ;;  %v2900_v20 = vpop.permute.xlu1 %2899 }
 0x439   : > { %vm2988_vm13 = vcmp.eq.s32.totalorder %v2900_v20, 1 }
 0x43c   : > { %2808 = vperm.xlu0 %5134, %v2721_v43   ;;  %v2903_v24 = vpop.permute.xlu1 %2902 }
 0x43d   : > { %vm2989_vm1 = vcmp.eq.s32.totalorder %v2903_v24, 1 }
 0x440   : > { %2811 = vperm.xlu0 %5134, %v2722_v6   ;;  %v2906_v54 = vpop.permute.xlu1 %2905 }
 0x444   : > { %2814 = vperm.xlu0 %5134, %v2723_v55  }
 0x448   : > { %2817 = vperm.xlu0 %5134, %v2724_v63  }
 0x44c   : > { %2820 = vperm.xlu0 %5134, %v2725_v0  }
 0x44f   : > { %v2909_v60 = vpop.permute.xlu1 %2908 }
 0x450   : > { %2823 = vperm.xlu0 %5134, %v2726_v7  }
 0x453   : > { %v2731_v4 = vpop.permute.xlu0 %2730  ;;  %v6317_v31 = vpop.permute.xlu1 %2911 }
 0x454   : > { %vm2825_vm5 = vcmp.eq.s32.totalorder %v6350_v58, %v2731_v4 }
 0x455   : > { %vm3017_vm10 = vmand %vm2825_vm5, %vm2985_vm4  ;;  %vm2990_vm4 = vcmp.eq.s32.totalorder %v2906_v54, 1 }
 0x456   : > { %v6373_v35 = vsel %vm3017_vm10, 1.0, %v5384_v37  ;;  %vm2992_vm10 = vcmp.eq.s32.totalorder %v6317_v31, 1 }
 0x457   : > { %v2734_v27 = vpop.permute.xlu0 %2733  ;;  %v6319_v42 = vpop.permute.xlu1 %2914  ;;  %v3081_v6 = vsel %vm2159_vm15, %v6373_v35, 0.0 }
 0x458   : > { %vm2826_vm3 = vcmp.eq.s32.totalorder %v6350_v58, %v2734_v27 }
 0x459   : > { %vm3018_vm8 = vmand %vm2826_vm3, %vm2986_vm6 }
 0x45a   : > { %v6367_v34 = vsel %vm3018_vm8, 1.0, %v5384_v37 }
 0x45b   : > { %v2737_v8 = vpop.permute.xlu0 %2736  ;;  %v6321_v39 = vpop.permute.xlu1 %2917  ;;  %v3082_v62 = vsel %vm2159_vm15, %v6367_v34, 0.0 }
 0x45c   : > { %vm2827_vm7 = vcmp.eq.s32.totalorder %v6350_v58, %v2737_v8  ;;  %v3083_v53 = vadd.f32 %v3082_v62, %v3081_v6 }
 0x45d   : > { %vm3019_vm12 = vmand %vm2827_vm7, %vm2987_vm9  ;;  %vm2991_vm7 = vcmp.eq.s32.totalorder %v2909_v60, 1 }
 0x45e   : > { %v6376_v12 = vsel %vm3019_vm12, 1.0, %v5384_v37 }
 0x45f   : > { %v2740_v56 = vpop.permute.xlu0 %2739  ;;  %v6323_v40 = vpop.permute.xlu1 %2920  ;;  %v3084_v45 = vsel %vm2159_vm15, %v6376_v12, 0.0 }
 0x460   : > { %vm2828_vm11 = vcmp.eq.s32.totalorder %v6350_v58, %v2740_v56  ;;  %v3085_v48 = vadd.f32 %v3084_v45, %v3083_v53 }
 0x461   : > { %vm3020_vm0 = vmand %vm2828_vm11, %vm2988_vm13  ;;  %vm2993_vm13 = vcmp.eq.s32.totalorder %v6319_v42, 1 }
 0x462   : > { %v6384_v16 = vsel %vm3020_vm0, 1.0, %v5384_v37 }
 0x463   : > { %v2743_v46 = vpop.permute.xlu0 %2742  ;;  %v6325_v14 = vpop.permute.xlu1 %2923  ;;  %v3086_v47 = vsel %vm2159_vm15, %v6384_v16, 0.0 }
 0x464   : > { %vm2829_vm14 = vcmp.eq.s32.totalorder %v6350_v58, %v2743_v46  ;;  %v3087_v63 = vadd.f32 %v3086_v47, %v3085_v48 }
 0x465   : > { %vm3021_vm3 = vmand %vm2829_vm14, %vm2989_vm1  ;;  %vm2994_vm1 = vcmp.eq.s32.totalorder %v6321_v39, 1 }
 0x466   : > { %v6394_v10 = vsel %vm3021_vm3, 1.0, %v5384_v37 }
 0x467   : > { %v2746_v9 = vpop.permute.xlu0 %2745  ;;  %v6329_v17 = vpop.permute.xlu1 %2926  ;;  %v3088_v30 = vsel %vm2159_vm15, %v6394_v10, 0.0 }
 0x468   : > { %vm2830_vm2 = vcmp.eq.s32.totalorder %v6350_v58, %v2746_v9  ;;  %v3089_v5 = vadd.f32 %v3088_v30, %v3087_v63 }
 0x469   : > { %vm3022_vm6 = vmand %vm2830_vm2, %vm2990_vm4  ;;  %vm2995_vm4 = vcmp.eq.s32.totalorder %v6323_v40, 1 }
 0x46a   : > { %v6403_v23 = vsel %vm3022_vm6, 1.0, %v5384_v37 }
 0x46b   : > { %v2749_v3 = vpop.permute.xlu0 %2748  ;;  %v6333_v51 = vpop.permute.xlu1 %2929  ;;  %v3090_v25 = vsel %vm2159_vm15, %v6403_v23, 0.0 }
 0x46c   : > { %vm2831_vm5 = vcmp.eq.s32.totalorder %v6350_v58, %v2749_v3  ;;  %v3091_v7 = vadd.f32 %v3090_v25, %v3089_v5 }
 0x46d   : > { %vm3023_vm9 = vmand %vm2831_vm5, %vm2991_vm7  ;;  %vm2996_vm7 = vcmp.eq.s32.totalorder %v6325_v14, 1 }
 0x46e   : > { %v6413_v57 = vsel %vm3023_vm9, 1.0, %v5384_v37 }
 0x46f   : > { %v2752_v13 = vpop.permute.xlu0 %2751  ;;  %v6337_v49 = vpop.permute.xlu1 %2932  ;;  %v3092_v1 = vsel %vm2159_vm15, %v6413_v57, 0.0 }
 0x470   : > { %vm2832_vm8 = vcmp.eq.s32.totalorder %v6350_v58, %v2752_v13  ;;  %v3093_v24 = vadd.f32 %v3092_v1, %v3091_v7 }
 0x471   : > { %vm3024_vm12 = vmand %vm2832_vm8, %vm2992_vm10  ;;  %vm2997_vm10 = vcmp.eq.s32.totalorder %v6329_v17, 1 }
 0x472   : > { %v6423_v0 = vsel %vm3024_vm12, 1.0, %v5384_v37 }
 0x473   : > { %v6327_v15 = vpop.permute.xlu0 %2754  ;;  %v6341_v61 = vpop.permute.xlu1 %2935  ;;  %v3094_v20 = vsel %vm2159_vm15, %v6423_v0, 0.0 }
 0x474   : > { %vm2833_vm11 = vcmp.eq.s32.totalorder %v6350_v58, %v6327_v15  ;;  %v3095_v60 = vadd.f32 %v3094_v20, %v3093_v24 }
 0x475   : > { %vm3025_vm0 = vmand %vm2833_vm11, %vm2993_vm13  ;;  %vm2998_vm13 = vcmp.eq.s32.totalorder %v6333_v51, 1 }
 0x476   : > { %v6433_v11 = vsel %vm3025_vm0, 1.0, %v5384_v37 }
 0x477   : > { %v6331_v22 = vpop.permute.xlu0 %2757  ;;  %v6345_v33 = vpop.permute.xlu1 %2938  ;;  %v3096_v54 = vsel %vm2159_vm15, %v6433_v11, 0.0 }
 0x478   : > { %vm2834_vm14 = vcmp.eq.s32.totalorder %v6350_v58, %v6331_v22  ;;  %v3097_v42 = vadd.f32 %v3096_v54, %v3095_v60 }
 0x479   : > { %vm3026_vm3 = vmand %vm2834_vm14, %vm2994_vm1  ;;  %vm2999_vm1 = vcmp.eq.s32.totalorder %v6337_v49, 1 }
 0x47a   : > { %v6443_v27 = vsel %vm3026_vm3, 1.0, %v5384_v37 }
 0x47b   : > { %v6335_v18 = vpop.permute.xlu0 %2760  ;;  %v6352_v21 = vpop.permute.xlu1 %2941  ;;  %v3098_v31 = vsel %vm2159_vm15, %v6443_v27, 0.0 }
 0x47c   : > { %vm2835_vm2 = vcmp.eq.s32.totalorder %v6350_v58, %v6335_v18  ;;  %v3099_v40 = vadd.f32 %v3098_v31, %v3097_v42 }
 0x47d   : > { %vm3027_vm6 = vmand %vm2835_vm2, %vm2995_vm4  ;;  %vm3000_vm4 = vcmp.eq.s32.totalorder %v6341_v61, 1 }
 0x47e   : > { %v6451_v56 = vsel %vm3027_vm6, 1.0, %v5384_v37 }
 0x47f   : > { %v6339_v32 = vpop.permute.xlu0 %2763  ;;  %v6358_v26 = vpop.permute.xlu1 %2944  ;;  %v3100_v39 = vsel %vm2159_vm15, %v6451_v56, 0.0 }
 0x480   : > { %vm2836_vm5 = vcmp.eq.s32.totalorder %v6350_v58, %v6339_v32  ;;  %v3101_v17 = vadd.f32 %v3100_v39, %v3099_v40 }
 0x481   : > { %vm3028_vm9 = vmand %vm2836_vm5, %vm2996_vm7  ;;  %vm3001_vm7 = vcmp.eq.s32.totalorder %v6345_v33, 1 }
 0x482   : > { %v6461_v9 = vsel %vm3028_vm9, 1.0, %v5384_v37 }
 0x483   : > { %v6343_v50 = vpop.permute.xlu0 %2766  ;;  %v6364_v36 = vpop.permute.xlu1 %2947  ;;  %v3102_v14 = vsel %vm2159_vm15, %v6461_v9, 0.0 }
 0x484   : > { %vm2837_vm8 = vcmp.eq.s32.totalorder %v6350_v58, %v6343_v50  ;;  %v3103_v49 = vadd.f32 %v3102_v14, %v3101_v17 }
 0x485   : > { %vm3029_vm12 = vmand %vm2837_vm8, %vm2997_vm10  ;;  %vm3002_vm10 = vcmp.eq.s32.totalorder %v6352_v21, 1 }
 0x486   : > { %v6469_v13 = vsel %vm3029_vm12, 1.0, %v5384_v37 }
 0x487   : > { %v6347_v29 = vpop.permute.xlu0 %2769  ;;  %v6381_v44 = vpop.permute.xlu1 %2950  ;;  %v3104_v51 = vsel %vm2159_vm15, %v6469_v13, 0.0 }
 0x488   : > { %vm2838_vm11 = vcmp.eq.s32.totalorder %v6350_v58, %v6347_v29  ;;  %v3105_v50 = vadd.f32 %v3104_v51, %v3103_v49 }
 0x489   : > { %vm3030_vm0 = vmand %vm2838_vm11, %vm2998_vm13  ;;  %vm3003_vm13 = vcmp.eq.s32.totalorder %v6358_v26, 1 }
 0x48a   : > { %v6479_v22 = vsel %vm3030_vm0, 1.0, %v5384_v37 }
 0x48b   : > { %v6354_v59 = vpop.permute.xlu0 %2772  ;;  %v6399_v55 = vpop.permute.xlu1 %2953  ;;  %v3106_v61 = vsel %vm2159_vm15, %v6479_v22, 0.0 }
 0x48c   : > { %vm2839_vm14 = vcmp.eq.s32.totalorder %v6350_v58, %v6354_v59 }
 0x48d   : > { %vm3031_vm3 = vmand %vm2839_vm14, %vm2999_vm1  ;;  %vm3004_vm1 = vcmp.eq.s32.totalorder %v6364_v36, 1 }
 0x48e   : > { %v6487_v32 = vsel %vm3031_vm3, 1.0, %v5384_v37 }
 0x48f   : > { %v6361_v43 = vpop.permute.xlu0 %2775  ;;  %v6419_v38 = vpop.permute.xlu1 %2956  ;;  %v3108_v33 = vsel %vm2159_vm15, %v6487_v32, 0.0 }
 0x490   : > { %vm2840_vm2 = vcmp.eq.s32.totalorder %v6350_v58, %v6361_v43 }
 0x491   : > { %vm3032_vm6 = vmand %vm2840_vm2, %vm3000_vm4  ;;  %vm3005_vm4 = vcmp.eq.s32.totalorder %v6381_v44, 1 }
 0x492   : > { %v6495_v29 = vsel %vm3032_vm6, 1.0, %v5384_v37 }
 0x493   : > { %v6370_v28 = vpop.permute.xlu0 %2778  ;;  %v6439_v4 = vpop.permute.xlu1 %2959  ;;  %v3110_v21 = vsel %vm2159_vm15, %v6495_v29, 0.0 }
 0x494   : > { %vm2841_vm5 = vcmp.eq.s32.totalorder %v6350_v58, %v6370_v28  ;;  %v3107_v28 = vadd.f32 %v3106_v61, %v3105_v50 }
 0x495   : > { %vm3033_vm9 = vmand %vm2841_vm5, %vm3001_vm7  ;;  %vm3006_vm7 = vcmp.eq.s32.totalorder %v6399_v55, 1 }
 0x496   : > { %v6503_v62 = vsel %vm3033_vm9, 1.0, %v5384_v37  ;;  %v3109_v6 = vadd.f32 %v3108_v33, %v3107_v28 }
 0x497   : > { %v6391_v52 = vpop.permute.xlu0 %2781  ;;  %v6457_v46 = vpop.permute.xlu1 %2962  ;;  %v3112_v26 = vsel %vm2159_vm15, %v6503_v62, 0.0 }
 0x498   : > { %vm2842_vm8 = vcmp.eq.s32.totalorder %v6350_v58, %v6391_v52  ;;  %v3111_v53 = vadd.f32 %v3110_v21, %v3109_v6 }
 0x499   : > { %vm3034_vm12 = vmand %vm2842_vm8, %vm3002_vm10  ;;  %vm3007_vm10 = vcmp.eq.s32.totalorder %v6419_v38, 1 }
 0x49a   : > { %v6511_v45 = vsel %vm3034_vm12, 1.0, %v5384_v37  ;;  %v3113_v30 = vadd.f32 %v3112_v26, %v3111_v53 }
 0x49b   : > { %v6409_v19 = vpop.permute.xlu0 %2784  ;;  %v6475_v15 = vpop.permute.xlu1 %2965  ;;  %v3114_v36 = vsel %vm2159_vm15, %v6511_v45, 0.0 }
 0x49c   : > { %vm2843_vm11 = vcmp.eq.s32.totalorder %v6350_v58, %v6409_v19  ;;  %v3115_v25 = vadd.f32 %v3114_v36, %v3113_v30 }
 0x49d   : > { %vm3035_vm0 = vmand %vm2843_vm11, %vm3003_vm13  ;;  %vm3008_vm13 = vcmp.eq.s32.totalorder %v6439_v4, 1 }
 0x49e   : > { %v6518_v47 = vsel %vm3035_vm0, 1.0, %v5384_v37 }
 0x49f   : > { %v6429_v2 = vpop.permute.xlu0 %2787  ;;  %v2969_v59 = vpop.permute.xlu1 %2968  ;;  %v3116_v44 = vsel %vm2159_vm15, %v6518_v47, 0.0 }
 0x4a0   : > { %vm2844_vm14 = vcmp.eq.s32.totalorder %v6350_v58, %v6429_v2  ;;  %v3117_v1 = vadd.f32 %v3116_v44, %v3115_v25 }
 0x4a1   : > { %vm3036_vm3 = vmand %vm2844_vm14, %vm3004_vm1  ;;  %vm3009_vm1 = vcmp.eq.s32.totalorder %v6457_v46, 1 }
 0x4a2   : > { %v6525_v19 = vsel %vm3036_vm3, 1.0, %v5384_v37 }
 0x4a3   : > { %v2791_v8 = vpop.permute.xlu0 %2790  ;;  %v2972_v48 = vpop.permute.xlu1 %2971  ;;  %v3118_v55 = vsel %vm2159_vm15, %v6525_v19, 0.0 }
 0x4a4   : > { %vm2845_vm2 = vcmp.eq.s32.totalorder %v6350_v58, %v2791_v8  ;;  %v3119_v24 = vadd.f32 %v3118_v55, %v3117_v1 }
 0x4a5   : > { %vm3037_vm6 = vmand %vm2845_vm2, %vm3005_vm4  ;;  %vm3010_vm4 = vcmp.eq.s32.totalorder %v6475_v15, 1 }
 0x4a6   : > { %v6532_v5 = vsel %vm3037_vm6, 1.0, %v5384_v37 }
 0x4a7   : > { %v2794_v3 = vpop.permute.xlu0 %2793  ;;  %v3120_v38 = vsel %vm2159_vm15, %v6532_v5, 0.0  ;;  %v2975_v7 = vpop.permute.xlu1 %2974 }
 0x4a8   : > { %vm2846_vm5 = vcmp.eq.s32.totalorder %v6350_v58, %v2794_v3  ;;  %v3121_v8 = vadd.f32 %v3120_v38, %v3119_v24 }
 0x4a9   : > { %vm3038_vm9 = vmand %vm2846_vm5, %vm3006_vm7  ;;  %vm3011_vm7 = vcmp.eq.s32.totalorder %v2969_v59, 1 }
 0x4aa   : > { %v6539_v2 = vsel %vm3038_vm9, 1.0, %v5384_v37 }
 0x4ab   : > { %v2797_v18 = vpop.permute.xlu0 %2796  ;;  %v3122_v4 = vsel %vm2159_vm15, %v6539_v2, 0.0  ;;  %v2978_v40 = vpop.permute.xlu1 %2977 }
 0x4ac   : > { %vm2847_vm8 = vcmp.eq.s32.totalorder %v6350_v58, %v2797_v18  ;;  %v3123_v42 = vadd.f32 %v3122_v4, %v3121_v8 }
 0x4ad   : > { %vm3039_vm12 = vmand %vm2847_vm8, %vm3007_vm10  ;;  %vm3012_vm10 = vcmp.eq.s32.totalorder %v2972_v48, 1 }
 0x4ae   : > { %v6546_v54 = vsel %vm3039_vm12, 1.0, %v5384_v37  ;;  %vm3013_vm12 = vcmp.eq.s32.totalorder %v2975_v7, 1 }
 0x4af   : > { %v2800_v43 = vpop.permute.xlu0 %2799  ;;  %v3124_v31 = vsel %vm2159_vm15, %v6546_v54, 0.0 }
 0x4b0   : > { %vm2848_vm11 = vcmp.eq.s32.totalorder %v6350_v58, %v2800_v43  ;;  %v3125_v14 = vadd.f32 %v3124_v31, %v3123_v42  ;;  %v2981_v43 = vpop.permute.xlu1 %2980 }
 0x4b1   : > { %vm3040_vm0 = vmand %vm2848_vm11, %vm3008_vm13 }
 0x4b2   : > { %v6553_v60 = vsel %vm3040_vm0, 1.0, %v5384_v37  ;;  %vm3014_vm0 = vcmp.eq.s32.totalorder %v2978_v40, 1 }
 0x4b3   : > { %v2803_v52 = vpop.permute.xlu0 %2802  ;;  %v3126_v3 = vsel %vm2159_vm15, %v6553_v60, 0.0 }
 0x4b4   : > { %vm2849_vm14 = vcmp.eq.s32.totalorder %v6350_v58, %v2803_v52  ;;  %v3127_v18 = vadd.f32 %v3126_v3, %v3125_v14  ;;  %v2984_v44 = vpop.permute.xlu1 %2983 }
 0x4b5   : > { %vm3041_vm3 = vmand %vm2849_vm14, %vm3009_vm1 }
 0x4b6   : > { %v6559_v39 = vsel %vm3041_vm3, 1.0, %v5384_v37  ;;  %vm3015_vm3 = vcmp.eq.s32.totalorder %v2981_v43, 1 }
 0x4b7   : > { %v2806_v63 = vpop.permute.xlu0 %2805  ;;  %v3128_v17 = vsel %vm2159_vm15, %v6559_v39, 0.0 }
 0x4b8   : > { %vm2850_vm2 = vcmp.eq.s32.totalorder %v6350_v58, %v2806_v63  ;;  %v3129_v50 = vadd.f32 %v3128_v17, %v3127_v18 }
 0x4b9   : > { %vm3042_vm6 = vmand %vm2850_vm2, %vm3010_vm4 }
 0x4ba   : > { %v6565_v15 = vsel %vm3042_vm6, 1.0, %v5384_v37  ;;  %vm3016_vm6 = vcmp.eq.s32.totalorder %v2984_v44, 1 }
 0x4bb   : > { %v2809_v20 = vpop.permute.xlu0 %2808  ;;  %v3130_v61 = vsel %vm2159_vm15, %v6565_v15, 0.0 }
 0x4bc   : > { %vm2851_vm5 = vcmp.eq.s32.totalorder %v6350_v58, %v2809_v20  ;;  %v3131_v21 = vadd.f32 %v3130_v61, %v3129_v50 }
 0x4bd   : > { %vm3043_vm9 = vmand %vm2851_vm5, %vm3011_vm7 }
 0x4be   : > { %v6570_v49 = vsel %vm3043_vm9, 1.0, %v5384_v37 }
 0x4bf   : > { %v2812_v46 = vpop.permute.xlu0 %2811  ;;  %v3132_v59 = vsel %vm2159_vm15, %v6570_v49, 0.0 }
 0x4c0   : > { %vm2852_vm8 = vcmp.eq.s32.totalorder %v6350_v58, %v2812_v46  ;;  %v3133_v52 = vadd.f32 %v3132_v59, %v3131_v21 }
 0x4c1   : > { %vm3044_vm11 = vmand %vm2852_vm8, %vm3012_vm10 }
 0x4c2   : > { %v6576_v33 = vsel %vm3044_vm11, 1.0, %v5384_v37 }
 0x4c3   : > { %v2815_v51 = vpop.permute.xlu0 %2814  ;;  %v3134_v26 = vsel %vm2159_vm15, %v6576_v33, 0.0 }
 0x4c4   : > { %vm2853_vm13 = vcmp.eq.s32.totalorder %v6350_v58, %v2815_v51  ;;  %v3135_v30 = vadd.f32 %v3134_v26, %v3133_v52 }
 0x4c5   : > { %vm3045_vm14 = vmand %vm2853_vm13, %vm3013_vm12  ;;  %vm3868_vm12 = vcmask 257024   ;;  %vm5385_vm13 = vmmov 0  }
 0x4c6   : > { %v6581_v6 = vsel %vm3045_vm14, 1.0, %v5384_v37  ;;  %4557 = vmatprep.mubr.msk.bf16.mxu1 %vm5385_vm13, %v5384_v37  ;;  %vm4028_vm14 = vcmask 523264  }
 0x4c7   : > { %v2818_v28 = vpop.permute.xlu0 %2817  ;;  %v3136_v36 = vsel %vm2159_vm15, %v6581_v6, 0.0 }
 0x4c8   : > { %vm2854_vm1 = vcmp.eq.s32.totalorder %v6350_v58, %v2818_v28  ;;  %v3137_v25 = vadd.f32 %v3136_v36, %v3135_v30 }
 0x4c9   : > { %vm3046_vm2 = vmand %vm2854_vm1, %vm3014_vm0  ;;  %vm4140_vm0 = vcmask 125952  }
 0x4ca   : > { %v6587_v53 = vsel %vm3046_vm2, 1.0, %v5384_v37 }
 0x4cb   : > { %v2821_v48 = vpop.permute.xlu0 %2820  ;;  %v3138_v63 = vsel %vm2159_vm15, %v6587_v53, 0.0 }
 0x4cc   : > { %vm2855_vm4 = vcmp.eq.s32.totalorder %v6350_v58, %v2821_v48  ;;  %v3139_v7 = vadd.f32 %v3138_v63, %v3137_v25 }
 0x4cd   : > { %vm3047_vm5 = vmand %vm2855_vm4, %vm3015_vm3 }
 0x4ce   : > { %v6595_v55 = vsel %vm3047_vm5, 1.0, %v5384_v37 }
 0x4cf   : > { %v3140_v1 = vsel %vm2159_vm15, %v6595_v55, 0.0  ;;  %v2824_v38 = vpop.permute.xlu0 %2823 }
 0x4d0   : > { %vm2856_vm7 = vcmp.eq.s32.totalorder %v6350_v58, %v2824_v38  ;;  %v3141_v20 = vadd.f32 %v3140_v1, %v3139_v7 }
 0x4d1   : > { %vm3048_vm8 = vmand %vm2856_vm7, %vm3016_vm6 }
 0x4d2   : > { %v6601_v24 = vsel %vm3048_vm8, 1.0, %v5384_v37 }
 0x4d3   : > { %v3142_v4 = vsel %vm2159_vm15, %v6601_v24, 0.0 }
 0x4d4   : > { %v3143_v8 = vadd.f32 %v3142_v4, %v3141_v20 }
 0x4d6   : > { %v3144_v31 = vrot.slane %v3143_v8, 4 }
 0x4d8   : > { %v3145_v46 = vadd.f32 %v3144_v31, %v3143_v8 }
 0x4da   : > { %v3146_v42 = vrot.slane %v3145_v46, 2 }
 0x4dc   : > { %v3147_v3 = vadd.f32 %v3146_v42, %v3145_v46 }
 0x4de   : > { %v3148_v40 = vrot.slane %v3147_v3, 1 }
 0x4e0   : > { %v6605_v14 = vadd.f32 %v3148_v40, %v3147_v3 }
 0x4e2   : > { %v3151_v17 = vmul.f32 %v6605_v14, %v6367_v34  ;;  %v3150_v51 = vmul.f32 %v6605_v14, %v6373_v35  ;;  %v3154_v50 = vmul.f32 %v6605_v14, %v6394_v10  ;;  %v3152_v59 = vmul.f32 %v6605_v14, %v6376_v12 }
 0x4e3   : > { %v3156_v21 = vmul.f32 %v6605_v14, %v6413_v57  ;;  %v3153_v26 = vmul.f32 %v6605_v14, %v6384_v16  ;;  %v3158_v48 = vmul.f32 %v6605_v14, %v6433_v11  ;;  %v3155_v30 = vmul.f32 %v6605_v14, %v6403_v23 }
 0x4e4   : > { %v3185_v18 = vsel %vm2159_vm15, %v3151_v17, 0.0  ;;  %v3182_v61 = vsel %vm2159_vm15, %v3150_v51, 0.0  ;;  %v3194_v43 = vsel %vm2159_vm15, %v3154_v50, 0.0  ;;  %v3188_v28 = vsel %vm2159_vm15, %v3152_v59, 0.0 }
 0x4e5   : > { %3186 = vadd.xlane.f32.xlu1 %v3185_v18  ;;  %3183 = vadd.xlane.f32.xlu0 %v3182_v61  ;;  %v3200_v52 = vsel %vm2159_vm15, %v3156_v21, 0.0  ;;  %v3191_v36 = vsel %vm2159_vm15, %v3153_v26, 0.0  ;;  %v3206_v44 = vsel %vm2159_vm15, %v3158_v48, 0.0  ;;  %v3197_v63 = vsel %vm2159_vm15, %v3155_v30, 0.0 }
 0x4e6   : > { %v3160_v25 = vmul.f32 %v6605_v14, %v6451_v56  ;;  %v3157_v1 = vmul.f32 %v6605_v14, %v6423_v0  ;;  %v3162_v20 = vmul.f32 %v6605_v14, %v6469_v13  ;;  %v3159_v4 = vmul.f32 %v6605_v14, %v6443_v27 }
 0x4e7   : > { %v3164_v46 = vmul.f32 %v6605_v14, %v6487_v32  ;;  %v3161_v42 = vmul.f32 %v6605_v14, %v6461_v9  ;;  %v3166_v17 = vmul.f32 %v6605_v14, %v6503_v62  ;;  %v3163_v51 = vmul.f32 %v6605_v14, %v6479_v22 }
 0x4e8   : > { %v3212_v38 = vsel %vm2159_vm15, %v3160_v25, 0.0  ;;  %v3203_v7 = vsel %vm2159_vm15, %v3157_v1, 0.0  ;;  %v3218_v8 = vsel %vm2159_vm15, %v3162_v20, 0.0  ;;  %v3209_v31 = vsel %vm2159_vm15, %v3159_v4, 0.0 }
 0x4e9   : > { %3195 = vadd.xlane.f32.xlu1 %v3194_v43  ;;  %3189 = vadd.xlane.f32.xlu0 %v3188_v28  ;;  %v3224_v3 = vsel %vm2159_vm15, %v3164_v46, 0.0  ;;  %v3215_v40 = vsel %vm2159_vm15, %v3161_v42, 0.0  ;;  %v3230_v18 = vsel %vm2159_vm15, %v3166_v17, 0.0  ;;  %v3221_v61 = vsel %vm2159_vm15, %v3163_v51, 0.0 }
 0x4ea   : > { %v3168_v50 = vmul.f32 %v6605_v14, %v6518_v47  ;;  %v3165_v59 = vmul.f32 %v6605_v14, %v6495_v29  ;;  %v3170_v21 = vmul.f32 %v6605_v14, %v6532_v5  ;;  %v3167_v26 = vmul.f32 %v6605_v14, %v6511_v45 }
 0x4eb   : > { %v3172_v48 = vmul.f32 %v6605_v14, %v6546_v54  ;;  %v3169_v30 = vmul.f32 %v6605_v14, %v6525_v19  ;;  %v3174_v25 = vmul.f32 %v6605_v14, %v6559_v39  ;;  %v3171_v1 = vmul.f32 %v6605_v14, %v6539_v2 }
 0x4ec   : > { %v3236_v43 = vsel %vm2159_vm15, %v3168_v50, 0.0  ;;  %v3227_v28 = vsel %vm2159_vm15, %v3165_v59, 0.0  ;;  %v3176_v20 = vmul.f32 %v6605_v14, %v6570_v49  ;;  %v3173_v4 = vmul.f32 %v6605_v14, %v6553_v60 }
 0x4ed   : > { %3201 = vadd.xlane.f32.xlu1 %v3200_v52  ;;  %3192 = vadd.xlane.f32.xlu0 %v3191_v36  ;;  %v3242_v52 = vsel %vm2159_vm15, %v3170_v21, 0.0  ;;  %v3233_v36 = vsel %vm2159_vm15, %v3167_v26, 0.0  ;;  %v3178_v46 = vmul.f32 %v6605_v14, %v6581_v6  ;;  %v3175_v42 = vmul.f32 %v6605_v14, %v6565_v15 }
 0x4ee   : > { %v3180_v17 = vmul.f32 %v6605_v14, %v6595_v55  ;;  %v3177_v51 = vmul.f32 %v6605_v14, %v6576_v33  ;;  %v3179_v50 = vmul.f32 %v6605_v14, %v6587_v53 }
 0x4f0   : > { %v3269_v59 = vsel %vm2159_vm15, %v3179_v50, 0.0 }
 0x4f1   : > { %3207 = vadd.xlane.f32.xlu1 %v3206_v44  ;;  %3198 = vadd.xlane.f32.xlu0 %v3197_v63  ;;  %v3248_v44 = vsel %vm2159_vm15, %v3172_v48, 0.0  ;;  %v3239_v63 = vsel %vm2159_vm15, %v3169_v30, 0.0  ;;  %v5155_v48 = vld [vmem:[#allocation3] sm:$0xff] }
 0x4f5   : > { %3213 = vadd.xlane.f32.xlu1 %v3212_v38  ;;  %3204 = vadd.xlane.f32.xlu0 %v3203_v7  ;;  %v3254_v38 = vsel %vm2159_vm15, %v3174_v25, 0.0  ;;  %v3245_v7 = vsel %vm2159_vm15, %v3171_v1, 0.0 }
 0x4f9   : > { %3219 = vadd.xlane.f32.xlu1 %v3218_v8  ;;  %3210 = vadd.xlane.f32.xlu0 %v3209_v31  ;;  %v3260_v8 = vsel %vm2159_vm15, %v3176_v20, 0.0  ;;  %v3251_v31 = vsel %vm2159_vm15, %v3173_v4, 0.0  ;;  %v5157_v20 = vld [vmem:[#allocation3 + $0x10] sm:$0xff] }
 0x4fd   : > { %3225 = vadd.xlane.f32.xlu1 %v3224_v3  ;;  %3216 = vadd.xlane.f32.xlu0 %v3215_v40  ;;  %v3266_v3 = vsel %vm2159_vm15, %v3178_v46, 0.0  ;;  %v3257_v40 = vsel %vm2159_vm15, %v3175_v42, 0.0 }
 0x501   : > { %3231 = vadd.xlane.f32.xlu1 %v3230_v18  ;;  %3222 = vadd.xlane.f32.xlu0 %v3221_v61  ;;  %v3272_v18 = vsel %vm2159_vm15, %v3180_v17, 0.0  ;;  %v3263_v61 = vsel %vm2159_vm15, %v3177_v51, 0.0  ;;  %v5159_v17 = vld [vmem:[#allocation3 + $0x18] sm:$0xff] }
 0x505   : > { %3237 = vadd.xlane.f32.xlu1 %v3236_v43  ;;  %3228 = vadd.xlane.f32.xlu0 %v3227_v28  ;;  %v3181_v43 = vmul.f32 %v6605_v14, %v6601_v24 }
 0x507   : > { %v3275_v28 = vsel %vm2159_vm15, %v3181_v43, 0.0  ;;  %v5160_v43 = vld [vmem:[#allocation3 + $0x40] sm:$0xff] }
 0x509   : > { %3243 = vadd.xlane.f32.xlu1 %v3242_v52  ;;  %3234 = vadd.xlane.f32.xlu0 %v3233_v36  ;;  %v5154_v52 = vld [vmem:[#allocation3 + $0x8] sm:$0xff] }
 0x50d   : > { %3249 = vadd.xlane.f32.xlu1 %v3248_v44  ;;  %3240 = vadd.xlane.f32.xlu0 %v3239_v63 }
 0x511   : > { %3255 = vadd.xlane.f32.xlu1 %v3254_v38  ;;  %3246 = vadd.xlane.f32.xlu0 %v3245_v7  ;;  %v5156_v38 = vld [vmem:[#allocation3 + $0x20] sm:$0xff] }
 0x515   : > { %3261 = vadd.xlane.f32.xlu1 %v3260_v8  ;;  %3252 = vadd.xlane.f32.xlu0 %v3251_v31 }
 0x519   : > { %3267 = vadd.xlane.f32.xlu1 %v3266_v3  ;;  %3258 = vadd.xlane.f32.xlu0 %v3257_v40  ;;  %v5158_v3 = vld [vmem:[#allocation3 + $0x30] sm:$0xff] }
 0x51d   : > { %3273 = vadd.xlane.f32.xlu1 %v3272_v18  ;;  %3264 = vadd.xlane.f32.xlu0 %v3263_v61 }
 0x521   : > { %3270 = vadd.xlane.f32.xlu0 %v3269_v59 }
 0x525   : > { %3276 = vadd.xlane.f32.xlu0 %v3275_v28 }
 0x572   : > { %v3187_v21 = vpop.xlane.xlu1 %3186  ;;  %v3184_v26 = vpop.xlane.xlu0 %3183 }
 0x573   : > { %v3279_v36 = vmul.f32 %v5154_v52, %v3187_v21  ;;  %v3278_v30 = vmul.f32 %v5155_v48, %v3184_v26  ;;  %v5161_v21 = vld [vmem:[#allocation3 + $0x28] sm:$0xff] }
 0x575   : > { %v3311_v44 = vceil.f32 %v3279_v36  ;;  %v3310_v63 = vceil.f32 %v3278_v30 }
 0x576   : > { %v3196_v25 = vpop.xlane.xlu1 %3195  ;;  %v3190_v1 = vpop.xlane.xlu0 %3189 }
 0x577   : > { %v3282_v7 = vmul.f32 %v5156_v38, %v3196_v25  ;;  %v3280_v4 = vmul.f32 %v5157_v20, %v3190_v1  ;;  %3349 = vperm.xlu0 %5134, %v3311_v44   ;;  %3344 = vperm.xlu1 %5133, %v3310_v63   ;;  %v5162_v44 = vld [vmem:[#allocation3 + $0x50] sm:$0xff]  ;;  %v5163_v25 = vld [vmem:[#allocation3 + $0x38] sm:$0xff] }
 0x579   : > { %v3314_v8 = vceil.f32 %v3282_v7  ;;  %v3312_v31 = vceil.f32 %v3280_v4 }
 0x57a   : > { %v3202_v46 = vpop.xlane.xlu1 %3201  ;;  %v3193_v42 = vpop.xlane.xlu0 %3192 }
 0x57b   : > { %v3284_v40 = vmul.f32 %v5158_v3, %v3202_v46  ;;  %v3281_v51 = vmul.f32 %v5159_v17, %v3193_v42  ;;  %3364 = vperm.xlu0 %5134, %v3314_v8   ;;  %3354 = vperm.xlu1 %5133, %v3312_v31   ;;  %v5164_v8 = vld [vmem:[#allocation3 + $0x60] sm:$0xff]  ;;  %v5165_v46 = vld [vmem:[#allocation3 + $0x48] sm:$0xff] }
 0x57d   : > { %v3316_v18 = vceil.f32 %v3284_v40  ;;  %v3313_v61 = vceil.f32 %v3281_v51 }
 0x57e   : > { %v3208_v50 = vpop.xlane.xlu1 %3207  ;;  %v3199_v59 = vpop.xlane.xlu0 %3198 }
 0x57f   : > { %v3286_v28 = vmul.f32 %v5160_v43, %v3208_v50  ;;  %v3283_v26 = vmul.f32 %v5161_v21, %v3199_v59  ;;  %3374 = vperm.xlu0 %5134, %v3316_v18   ;;  %3359 = vperm.xlu1 %5133, %v3313_v61   ;;  %v5166_v18 = vld [vmem:[#allocation3 + $0x70] sm:$0xff]  ;;  %v5167_v50 = vld [vmem:[#allocation3 + $0x58] sm:$0xff] }
 0x581   : > { %v3318_v52 = vceil.f32 %v3286_v28  ;;  %v3315_v36 = vceil.f32 %v3283_v26 }
 0x582   : > { %v3214_v48 = vpop.xlane.xlu1 %3213  ;;  %v3205_v30 = vpop.xlane.xlu0 %3204 }
 0x583   : > { %v3288_v63 = vmul.f32 %v5162_v44, %v3214_v48  ;;  %v3285_v1 = vmul.f32 %v5163_v25, %v3205_v30  ;;  %3384 = vperm.xlu0 %5134, %v3318_v52   ;;  %3369 = vperm.xlu1 %5133, %v3315_v36   ;;  %v5168_v52 = vld [vmem:[#allocation3 + $0x80] sm:$0xff]  ;;  %v5169_v48 = vld [vmem:[#allocation3 + $0x68] sm:$0xff] }
 0x585   : > { %v3320_v38 = vceil.f32 %v3288_v63  ;;  %v3317_v7 = vceil.f32 %v3285_v1 }
 0x586   : > { %v3220_v20 = vpop.xlane.xlu1 %3219  ;;  %v3211_v4 = vpop.xlane.xlu0 %3210 }
 0x587   : > { %v3290_v31 = vmul.f32 %v5164_v8, %v3220_v20  ;;  %v3287_v42 = vmul.f32 %v5165_v46, %v3211_v4  ;;  %3394 = vperm.xlu0 %5134, %v3320_v38   ;;  %3379 = vperm.xlu1 %5133, %v3317_v7   ;;  %v5170_v38 = vld [vmem:[#allocation3 + $0x90] sm:$0xff]  ;;  %v5171_v20 = vld [vmem:[#allocation3 + $0x78] sm:$0xff] }
 0x589   : > { %v3322_v3 = vceil.f32 %v3290_v31  ;;  %v3319_v40 = vceil.f32 %v3287_v42 }
 0x58a   : > { %v3226_v17 = vpop.xlane.xlu1 %3225  ;;  %v3217_v51 = vpop.xlane.xlu0 %3216 }
 0x58b   : > { %v3292_v61 = vmul.f32 %v5166_v18, %v3226_v17  ;;  %v3289_v59 = vmul.f32 %v5167_v50, %v3217_v51  ;;  %3404 = vperm.xlu0 %5134, %v3322_v3   ;;  %3389 = vperm.xlu1 %5133, %v3319_v40   ;;  %v5172_v3 = vld [vmem:[#allocation3 + $0xa0] sm:$0xff]  ;;  %v5173_v17 = vld [vmem:[#allocation3 + $0x88] sm:$0xff] }
 0x58d   : > { %v3324_v43 = vceil.f32 %v3292_v61  ;;  %v3321_v28 = vceil.f32 %v3289_v59 }
 0x58e   : > { %v3232_v21 = vpop.xlane.xlu1 %3231  ;;  %v3223_v26 = vpop.xlane.xlu0 %3222 }
 0x58f   : > { %v3294_v36 = vmul.f32 %v5168_v52, %v3232_v21  ;;  %v3291_v30 = vmul.f32 %v5169_v48, %v3223_v26  ;;  %3414 = vperm.xlu0 %5134, %v3324_v43   ;;  %3399 = vperm.xlu1 %5133, %v3321_v28   ;;  %v5174_v43 = vld [vmem:[#allocation3 + $0xb0] sm:$0xff]  ;;  %v5175_v21 = vld [vmem:[#allocation3 + $0x98] sm:$0xff] }
 0x591   : > { %v3326_v44 = vceil.f32 %v3294_v36  ;;  %v3323_v63 = vceil.f32 %v3291_v30 }
 0x592   : > { %v3238_v25 = vpop.xlane.xlu1 %3237  ;;  %v3229_v1 = vpop.xlane.xlu0 %3228 }
 0x593   : > { %v3296_v7 = vmul.f32 %v5170_v38, %v3238_v25  ;;  %v3293_v4 = vmul.f32 %v5171_v20, %v3229_v1  ;;  %3424 = vperm.xlu0 %5134, %v3326_v44   ;;  %3409 = vperm.xlu1 %5133, %v3323_v63   ;;  %v5176_v44 = vld [vmem:[#allocation3 + $0xc0] sm:$0xff]  ;;  %v5177_v25 = vld [vmem:[#allocation3 + $0xa8] sm:$0xff] }
 0x595   : > { %v3328_v8 = vceil.f32 %v3296_v7  ;;  %v3325_v31 = vceil.f32 %v3293_v4 }
 0x596   : > { %v3244_v46 = vpop.xlane.xlu1 %3243  ;;  %v3235_v42 = vpop.xlane.xlu0 %3234 }
 0x597   : > { %v3298_v40 = vmul.f32 %v5172_v3, %v3244_v46  ;;  %v3295_v51 = vmul.f32 %v5173_v17, %v3235_v42  ;;  %3434 = vperm.xlu0 %5134, %v3328_v8   ;;  %3419 = vperm.xlu1 %5133, %v3325_v31   ;;  %v5178_v8 = vld [vmem:[#allocation3 + $0xd0] sm:$0xff]  ;;  %v5179_v46 = vld [vmem:[#allocation3 + $0xb8] sm:$0xff] }
 0x599   : > { %v3330_v18 = vceil.f32 %v3298_v40  ;;  %v3327_v61 = vceil.f32 %v3295_v51 }
 0x59a   : > { %v3250_v50 = vpop.xlane.xlu1 %3249  ;;  %v3241_v59 = vpop.xlane.xlu0 %3240 }
 0x59b   : > { %v3300_v28 = vmul.f32 %v5174_v43, %v3250_v50  ;;  %v3297_v26 = vmul.f32 %v5175_v21, %v3241_v59  ;;  %3444 = vperm.xlu0 %5134, %v3330_v18   ;;  %3429 = vperm.xlu1 %5133, %v3327_v61   ;;  %v5180_v18 = vld [vmem:[#allocation3 + $0xe0] sm:$0xff]  ;;  %v5181_v50 = vld [vmem:[#allocation3 + $0xc8] sm:$0xff] }
 0x59d   : > { %v3332_v52 = vceil.f32 %v3300_v28  ;;  %v3329_v36 = vceil.f32 %v3297_v26 }
 0x59e   : > { %v3256_v48 = vpop.xlane.xlu1 %3255  ;;  %v3247_v30 = vpop.xlane.xlu0 %3246 }
 0x59f   : > { %v3302_v63 = vmul.f32 %v5176_v44, %v3256_v48  ;;  %v3299_v1 = vmul.f32 %v5177_v25, %v3247_v30  ;;  %3454 = vperm.xlu0 %5134, %v3332_v52   ;;  %3439 = vperm.xlu1 %5133, %v3329_v36   ;;  %v5182_v52 = vld [vmem:[#allocation3 + $0xf0] sm:$0xff]  ;;  %v5183_v48 = vld [vmem:[#allocation3 + $0xd8] sm:$0xff] }
 0x5a1   : > { %v3334_v38 = vceil.f32 %v3302_v63  ;;  %v3331_v7 = vceil.f32 %v3299_v1  ;;  %v5184_v1 = vld [vmem:[#allocation3 + $0xe8] sm:$0xff] }
 0x5a2   : > { %v3262_v20 = vpop.xlane.xlu1 %3261  ;;  %v3253_v4 = vpop.xlane.xlu0 %3252 }
 0x5a3   : > { %v3304_v31 = vmul.f32 %v5178_v8, %v3262_v20  ;;  %v3301_v42 = vmul.f32 %v5179_v46, %v3253_v4  ;;  %3464 = vperm.xlu0 %5134, %v3334_v38   ;;  %3449 = vperm.xlu1 %5133, %v3331_v7   ;;  %v5185_v4 = vld [vmem:[#allocation3 + $0xf8] sm:$0xff] }
 0x5a5   : > { %v3336_v3 = vceil.f32 %v3304_v31  ;;  %v3333_v40 = vceil.f32 %v3301_v42 }
 0x5a6   : > { %v3268_v17 = vpop.xlane.xlu1 %3267  ;;  %v3259_v51 = vpop.xlane.xlu0 %3258 }
 0x5a7   : > { %v3306_v61 = vmul.f32 %v5180_v18, %v3268_v17  ;;  %v3303_v59 = vmul.f32 %v5181_v50, %v3259_v51  ;;  %3474 = vperm.xlu0 %5134, %v3336_v3   ;;  %3459 = vperm.xlu1 %5133, %v3333_v40  }
 0x5a9   : > { %v3338_v43 = vceil.f32 %v3306_v61  ;;  %v3335_v28 = vceil.f32 %v3303_v59 }
 0x5aa   : > { %v3274_v21 = vpop.xlane.xlu1 %3273  ;;  %v3265_v26 = vpop.xlane.xlu0 %3264 }
 0x5ab   : > { %v3308_v36 = vmul.f32 %v5182_v52, %v3274_v21  ;;  %v3305_v30 = vmul.f32 %v5183_v48, %v3265_v26  ;;  %3484 = vperm.xlu0 %5134, %v3338_v43   ;;  %3469 = vperm.xlu1 %5133, %v3335_v28  }
 0x5ad   : > { %v3340_v44 = vceil.f32 %v3308_v36  ;;  %v3337_v63 = vceil.f32 %v3305_v30 }
 0x5ae   : > { %v3271_v25 = vpop.xlane.xlu0 %3270 }
 0x5af   : > { %v3307_v38 = vmul.f32 %v5184_v1, %v3271_v25  ;;  %3494 = vperm.xlu0 %5134, %v3340_v44   ;;  %3479 = vperm.xlu1 %5133, %v3337_v63  }
 0x5b1   : > { %v3339_v7 = vceil.f32 %v3307_v38 }
 0x5b2   : > { %v3277_v20 = vpop.xlane.xlu0 %3276 }
 0x5b3   : > { %v3309_v8 = vmul.f32 %v5185_v4, %v3277_v20  ;;  %3489 = vperm.xlu1 %5133, %v3339_v7  }
 0x5b5   : > { %v3341_v31 = vceil.f32 %v3309_v8 }
 0x5b7   : > { %3499 = vperm.xlu1 %5133, %v3341_v31  }
 0x5f6   : > { %v3345_v46 = vpop.permute.xlu1 %3344  ;;  %v3350_v42 = vpop.permute.xlu0 %3349 }
 0x5f7   : > { %v3502_v3 = vmul.f32 %v3345_v46, %v6373_v35  ;;  %v3503_v40 = vmul.f32 %v3350_v42, %v6367_v34 }
 0x5f9   : > { %v3534_v18 = vsel %vm2159_vm15, %v3502_v3, 0.0  ;;  %v3535_v61 = vsel %vm2159_vm15, %v3503_v40, 0.0 }
 0x5fa   : > { %v3355_v17 = vpop.permute.xlu1 %3354  ;;  %v3365_v51 = vpop.permute.xlu0 %3364  ;;  %v3536_v43 = vadd.f32 %v3535_v61, %v3534_v18 }
 0x5fb   : > { %v3504_v50 = vmul.f32 %v3355_v17, %v6376_v12  ;;  %v3506_v26 = vmul.f32 %v3365_v51, %v6394_v10 }
 0x5fd   : > { %v3537_v59 = vsel %vm2159_vm15, %v3504_v50, 0.0  ;;  %v3541_v25 = vsel %vm2159_vm15, %v3506_v26, 0.0 }
 0x5fe   : > { %v3360_v28 = vpop.permute.xlu1 %3359  ;;  %v3375_v21 = vpop.permute.xlu0 %3374  ;;  %v3538_v36 = vadd.f32 %v3537_v59, %v3536_v43 }
 0x5ff   : > { %v3505_v52 = vmul.f32 %v3360_v28, %v6384_v16  ;;  %v3508_v1 = vmul.f32 %v3375_v21, %v6413_v57 }
 0x601   : > { %v3539_v48 = vsel %vm2159_vm15, %v3505_v52, 0.0  ;;  %v3545_v46 = vsel %vm2159_vm15, %v3508_v1, 0.0 }
 0x602   : > { %v3540_v30 = vadd.f32 %v3539_v48, %v3538_v36  ;;  %v3370_v44 = vpop.permute.xlu1 %3369  ;;  %v3385_v63 = vpop.permute.xlu0 %3384 }
 0x603   : > { %v3507_v38 = vmul.f32 %v3370_v44, %v6403_v23  ;;  %v3510_v42 = vmul.f32 %v3385_v63, %v6433_v11 }
 0x604   : > { %v3542_v7 = vadd.f32 %v3541_v25, %v3540_v30 }
 0x605   : > { %v3543_v20 = vsel %vm2159_vm15, %v3507_v38, 0.0  ;;  %v3549_v50 = vsel %vm2159_vm15, %v3510_v42, 0.0 }
 0x606   : > { %v3544_v4 = vadd.f32 %v3543_v20, %v3542_v7  ;;  %v3380_v8 = vpop.permute.xlu1 %3379  ;;  %v3395_v31 = vpop.permute.xlu0 %3394 }
 0x607   : > { %v3509_v3 = vmul.f32 %v3380_v8, %v6423_v0  ;;  %v3512_v59 = vmul.f32 %v3395_v31, %v6451_v56 }
 0x608   : > { %v3546_v40 = vadd.f32 %v3545_v46, %v3544_v4 }
 0x609   : > { %v3547_v17 = vsel %vm2159_vm15, %v3509_v3, 0.0  ;;  %v3553_v48 = vsel %vm2159_vm15, %v3512_v59, 0.0 }
 0x60a   : > { %v3548_v51 = vadd.f32 %v3547_v17, %v3546_v40  ;;  %v3390_v18 = vpop.permute.xlu1 %3389  ;;  %v3405_v61 = vpop.permute.xlu0 %3404 }
 0x60b   : > { %v3511_v43 = vmul.f32 %v3390_v18, %v6443_v27  ;;  %v3514_v30 = vmul.f32 %v3405_v61, %v6469_v13 }
 0x60c   : > { %v3550_v28 = vadd.f32 %v3549_v50, %v3548_v51 }
 0x60d   : > { %v3551_v21 = vsel %vm2159_vm15, %v3511_v43, 0.0  ;;  %v3557_v20 = vsel %vm2159_vm15, %v3514_v30, 0.0 }
 0x60e   : > { %v3552_v26 = vadd.f32 %v3551_v21, %v3550_v28  ;;  %v3400_v52 = vpop.permute.xlu1 %3399  ;;  %v3415_v36 = vpop.permute.xlu0 %3414 }
 0x60f   : > { %v3513_v44 = vmul.f32 %v3400_v52, %v6461_v9  ;;  %v3516_v4 = vmul.f32 %v3415_v36, %v6487_v32 }
 0x610   : > { %v3554_v63 = vadd.f32 %v3553_v48, %v3552_v26 }
 0x611   : > { %v3555_v25 = vsel %vm2159_vm15, %v3513_v44, 0.0  ;;  %v3561_v17 = vsel %vm2159_vm15, %v3516_v4, 0.0 }
 0x612   : > { %v3556_v1 = vadd.f32 %v3555_v25, %v3554_v63  ;;  %v3410_v38 = vpop.permute.xlu1 %3409  ;;  %v3425_v7 = vpop.permute.xlu0 %3424 }
 0x613   : > { %v3515_v8 = vmul.f32 %v3410_v38, %v6479_v22  ;;  %v3518_v51 = vmul.f32 %v3425_v7, %v6503_v62 }
 0x614   : > { %v3558_v31 = vadd.f32 %v3557_v20, %v3556_v1 }
 0x615   : > { %v3559_v46 = vsel %vm2159_vm15, %v3515_v8, 0.0  ;;  %v3565_v21 = vsel %vm2159_vm15, %v3518_v51, 0.0 }
 0x616   : > { %v3560_v42 = vadd.f32 %v3559_v46, %v3558_v31  ;;  %v3420_v3 = vpop.permute.xlu1 %3419  ;;  %v3435_v40 = vpop.permute.xlu0 %3434 }
 0x617   : > { %v3517_v18 = vmul.f32 %v3420_v3, %v6495_v29  ;;  %v3520_v26 = vmul.f32 %v3435_v40, %v6518_v47 }
 0x618   : > { %v3562_v61 = vadd.f32 %v3561_v17, %v3560_v42 }
 0x619   : > { %v3563_v50 = vsel %vm2159_vm15, %v3517_v18, 0.0  ;;  %v3569_v25 = vsel %vm2159_vm15, %v3520_v26, 0.0 }
 0x61a   : > { %v3564_v59 = vadd.f32 %v3563_v50, %v3562_v61  ;;  %v3430_v43 = vpop.permute.xlu1 %3429  ;;  %v3445_v28 = vpop.permute.xlu0 %3444 }
 0x61b   : > { %v3519_v52 = vmul.f32 %v3430_v43, %v6511_v45  ;;  %v3522_v1 = vmul.f32 %v3445_v28, %v6532_v5 }
 0x61c   : > { %v3566_v36 = vadd.f32 %v3565_v21, %v3564_v59 }
 0x61d   : > { %v3567_v48 = vsel %vm2159_vm15, %v3519_v52, 0.0  ;;  %v3573_v46 = vsel %vm2159_vm15, %v3522_v1, 0.0 }
 0x61e   : > { %v3568_v30 = vadd.f32 %v3567_v48, %v3566_v36  ;;  %v3440_v44 = vpop.permute.xlu1 %3439  ;;  %v3455_v63 = vpop.permute.xlu0 %3454 }
 0x61f   : > { %v3521_v38 = vmul.f32 %v3440_v44, %v6525_v19  ;;  %v3524_v42 = vmul.f32 %v3455_v63, %v6546_v54 }
 0x620   : > { %v3570_v7 = vadd.f32 %v3569_v25, %v3568_v30 }
 0x621   : > { %v3571_v20 = vsel %vm2159_vm15, %v3521_v38, 0.0  ;;  %v3577_v50 = vsel %vm2159_vm15, %v3524_v42, 0.0 }
 0x622   : > { %v3572_v4 = vadd.f32 %v3571_v20, %v3570_v7  ;;  %v3450_v8 = vpop.permute.xlu1 %3449  ;;  %v3465_v31 = vpop.permute.xlu0 %3464 }
 0x623   : > { %v3523_v3 = vmul.f32 %v3450_v8, %v6539_v2  ;;  %v3526_v59 = vmul.f32 %v3465_v31, %v6559_v39 }
 0x624   : > { %v3574_v40 = vadd.f32 %v3573_v46, %v3572_v4 }
 0x625   : > { %v3575_v17 = vsel %vm2159_vm15, %v3523_v3, 0.0  ;;  %v3581_v48 = vsel %vm2159_vm15, %v3526_v59, 0.0 }
 0x626   : > { %v3576_v51 = vadd.f32 %v3575_v17, %v3574_v40  ;;  %v3460_v18 = vpop.permute.xlu1 %3459  ;;  %v3475_v61 = vpop.permute.xlu0 %3474 }
 0x627   : > { %v3525_v43 = vmul.f32 %v3460_v18, %v6553_v60  ;;  %v3528_v30 = vmul.f32 %v3475_v61, %v6570_v49 }
 0x628   : > { %v3578_v28 = vadd.f32 %v3577_v50, %v3576_v51 }
 0x629   : > { %v3579_v21 = vsel %vm2159_vm15, %v3525_v43, 0.0  ;;  %v3585_v7 = vsel %vm2159_vm15, %v3528_v30, 0.0 }
 0x62a   : > { %v3580_v26 = vadd.f32 %v3579_v21, %v3578_v28  ;;  %v3470_v52 = vpop.permute.xlu1 %3469  ;;  %v3485_v36 = vpop.permute.xlu0 %3484 }
 0x62b   : > { %v3527_v44 = vmul.f32 %v3470_v52, %v6565_v15  ;;  %v3530_v20 = vmul.f32 %v3485_v36, %v6581_v6 }
 0x62c   : > { %v3582_v63 = vadd.f32 %v3581_v48, %v3580_v26  ;;  %v3603_v26 = vmax.f32 %v6605_v14, 1.0 }
 0x62d   : > { %v3583_v25 = vsel %vm2159_vm15, %v3527_v44, 0.0  ;;  %v3589_v40 = vsel %vm2159_vm15, %v3530_v20, 0.0 }
 0x62e   : > { %v3584_v1 = vadd.f32 %v3583_v25, %v3582_v63  ;;  %v3480_v38 = vpop.permute.xlu1 %3479  ;;  %v3495_v31 = vpop.permute.xlu0 %3494  ;;  %5150 = vrcp.f32 %v3603_v26 }
 0x62f   : > { %v3529_v4 = vmul.f32 %v3480_v38, %v6576_v33  ;;  %v3532_v17 = vmul.f32 %v3495_v31, %v6595_v55 }
 0x630   : > { %v3586_v8 = vadd.f32 %v3585_v7, %v3584_v1 }
 0x631   : > { %v3587_v46 = vsel %vm2159_vm15, %v3529_v4, 0.0  ;;  %v3593_v43 = vsel %vm2159_vm15, %v3532_v17, 0.0 }
 0x632   : > { %v3588_v42 = vadd.f32 %v3587_v46, %v3586_v8  ;;  %v3490_v3 = vpop.permute.xlu1 %3489 }
 0x633   : > { %v3531_v51 = vmul.f32 %v3490_v3, %v6587_v53 }
 0x634   : > { %v3590_v18 = vadd.f32 %v3589_v40, %v3588_v42 }
 0x635   : > { %v3591_v61 = vsel %vm2159_vm15, %v3531_v51, 0.0 }
 0x636   : > { %v3592_v50 = vadd.f32 %v3591_v61, %v3590_v18  ;;  %v3500_v59 = vpop.permute.xlu1 %3499 }
 0x637   : > { %v3533_v28 = vmul.f32 %v3500_v59, %v6601_v24 }
 0x638   : > { %v3594_v21 = vadd.f32 %v3593_v43, %v3592_v50  ;;  %v5151_v38 = vpop.eup %5150 }
 0x639   : > { %v3595_v52 = vsel %vm2159_vm15, %v3533_v28, 0.0 }
 0x63a   : > { %v3596_v36 = vadd.f32 %v3595_v52, %v3594_v21 }
 0x63c   : > { %v3597_v48 = vrot.slane %v3596_v36, 4 }
 0x63e   : > { %v3598_v30 = vadd.f32 %v3597_v48, %v3596_v36 }
 0x640   : > { %v3599_v44 = vrot.slane %v3598_v30, 2 }
 0x642   : > { %v3600_v63 = vadd.f32 %v3599_v44, %v3598_v30 }
 0x644   : > { %v3601_v25 = vrot.slane %v3600_v63, 1 }
 0x646   : > { %v3602_v1 = vadd.f32 %v3601_v25, %v3600_v63 }
 0x648   : > { %v6768_v7 = vmul.f32 %v5151_v38, %v3602_v1 }
 0x64a   : > { %v6771_v20 = vmul.f32 %v5151_v38, %v6768_v7  ;;  %v3863_v38 = vadd.s32 1, %v5727_v41 }
 0x64c   : > { %v3624_v4 = vmul.f32 %v6771_v20, %v6511_v45  ;;  %v3623_v14 = vmul.f32 %v6771_v20, %v6503_v62  ;;  %v3625_v46 = vmul.f32 %v6771_v20, %v6518_v47  ;;  %v3607_v42 = vmul.f32 %v6771_v20, %v6373_v35 }
 0x64d   : > { %v3609_v45 = vmul.f32 %v6771_v20, %v6376_v12  ;;  %v3608_v62 = vmul.f32 %v6771_v20, %v6367_v34  ;;  %v3627_v35 = vmul.f32 %v6771_v20, %v6532_v5  ;;  %v3626_v51 = vmul.f32 %v6771_v20, %v6525_v19 }
 0x64e   : > { %v3690_v8 = vsel %vm2159_vm15, %v3624_v4, 0.0  ;;  %v3687_v31 = vsel %vm2159_vm15, %v3623_v14, 0.0  ;;  %v3693_v3 = vsel %vm2159_vm15, %v3625_v46, 0.0  ;;  %v3639_v40 = vsel %vm2159_vm15, %v3607_v42, 0.0 }
 0x64f   : > { %3691 = vadd.xlane.f32.xlu1 %v3690_v8  ;;  %3688 = vadd.xlane.f32.xlu0 %v3687_v31  ;;  %v3645_v17 = vsel %vm2159_vm15, %v3609_v45, 0.0  ;;  %v3642_v47 = vsel %vm2159_vm15, %v3608_v62, 0.0  ;;  %v3699_v18 = vsel %vm2159_vm15, %v3627_v35, 0.0  ;;  %v3696_v12 = vsel %vm2159_vm15, %v3626_v51, 0.0  ;;  %v5139_v35 = vld [vmem:[%s6986_s9 + $0x18] sm:$0xff]   ;;  %v5140_v51 = vld [vmem:[%s6986_s9 + $0x20] sm:$0xff]  }
 0x650   : > { %v3611_v34 = vmul.f32 %v6771_v20, %v6394_v10  ;;  %v3610_v61 = vmul.f32 %v6771_v20, %v6384_v16  ;;  %v3629_v19 = vmul.f32 %v6771_v20, %v6546_v54  ;;  %v3628_v59 = vmul.f32 %v6771_v20, %v6539_v2 }
 0x651   : > { %v3613_v16 = vmul.f32 %v6771_v20, %v6413_v57  ;;  %v3612_v28 = vmul.f32 %v6771_v20, %v6403_v23  ;;  %v3631_v2 = vmul.f32 %v6771_v20, %v6559_v39  ;;  %v3630_v26 = vmul.f32 %v6771_v20, %v6553_v60 }
 0x652   : > { %v3651_v50 = vsel %vm2159_vm15, %v3611_v34, 0.0  ;;  %v3648_v5 = vsel %vm2159_vm15, %v3610_v61, 0.0  ;;  %v3705_v43 = vsel %vm2159_vm15, %v3629_v19, 0.0  ;;  %v3702_v10 = vsel %vm2159_vm15, %v3628_v59, 0.0 }
 0x653   : > { %3694 = vadd.xlane.f32.xlu1 %v3693_v3  ;;  %3640 = vadd.xlane.f32.xlu0 %v3639_v40  ;;  %v3657_v21 = vsel %vm2159_vm15, %v3613_v16, 0.0  ;;  %v3654_v54 = vsel %vm2159_vm15, %v3612_v28, 0.0  ;;  %v3711_v52 = vsel %vm2159_vm15, %v3631_v2, 0.0  ;;  %v3708_v57 = vsel %vm2159_vm15, %v3630_v26, 0.0  ;;  %v2400_v2 = vld [vmem:[#allocation2 + $0x48] sm:$0xff] }
 0x654   : > { %v3615_v23 = vmul.f32 %v6771_v20, %v6433_v11  ;;  %v3614_v36 = vmul.f32 %v6771_v20, %v6423_v0  ;;  %v3633_v60 = vmul.f32 %v6771_v20, %v6570_v49  ;;  %v3632_v30 = vmul.f32 %v6771_v20, %v6565_v15 }
 0x655   : > { %v3617_v0 = vmul.f32 %v6771_v20, %v6451_v56  ;;  %v3616_v63 = vmul.f32 %v6771_v20, %v6443_v27  ;;  %v3635_v15 = vmul.f32 %v6771_v20, %v6581_v6  ;;  %v3634_v1 = vmul.f32 %v6771_v20, %v6576_v33 }
 0x656   : > { %v3663_v48 = vsel %vm2159_vm15, %v3615_v23, 0.0  ;;  %v3660_v39 = vsel %vm2159_vm15, %v3614_v36, 0.0  ;;  %v3717_v44 = vsel %vm2159_vm15, %v3633_v60, 0.0  ;;  %v3714_v11 = vsel %vm2159_vm15, %v3632_v30, 0.0 }
 0x657   : > { %3646 = vadd.xlane.f32.xlu1 %v3645_v17  ;;  %3643 = vadd.xlane.f32.xlu0 %v3642_v47  ;;  %v3669_v25 = vsel %vm2159_vm15, %v3617_v0, 0.0  ;;  %v3666_v49 = vsel %vm2159_vm15, %v3616_v63, 0.0  ;;  %v3723_v56 = vsel %vm2159_vm15, %v3635_v15, 0.0  ;;  %v3720_v27 = vsel %vm2159_vm15, %v3634_v1, 0.0  ;;  %v6874_v17 = vld [vmem:[#allocation5] sm:$0xff] }
 0x658   : > { %v3619_v4 = vmul.f32 %v6771_v20, %v6469_v13  ;;  %v3618_v14 = vmul.f32 %v6771_v20, %v6461_v9  ;;  %v3861_v6 = vmul.u32 8, %v5727_v41  ;;  %v3864_v8 = vmul.u32 8, %v3863_v38 }
 0x659   : > { %v3637_v46 = vmul.f32 %v6771_v20, %v6595_v55  ;;  %v3636_v42 = vmul.f32 %v6771_v20, %v6587_v53  ;;  %v3621_v13 = vmul.f32 %v6771_v20, %v6487_v32  ;;  %v3620_v3 = vmul.f32 %v6771_v20, %v6479_v22 }
 0x65a   : > { %v3675_v33 = vsel %vm2159_vm15, %v3619_v4, 0.0  ;;  %v3672_v31 = vsel %vm2159_vm15, %v3618_v14, 0.0  ;;  %vm3862_vm9 = vcmp.ge.s32.totalorder %v6350_v58, %v3861_v6  ;;  %vm3865_vm10 = vcmp.lt.s32.totalorder %v6350_v58, %v3864_v8  ;;  %v2393_v6 = vld [vmem:[#allocation2 + $0x10] sm:$0xff] }
 0x65b   : > { %3700 = vadd.xlane.f32.xlu1 %v3699_v18  ;;  %3697 = vadd.xlane.f32.xlu0 %v3696_v12  ;;  %v3729_v9 = vsel %vm2159_vm15, %v3637_v46, 0.0  ;;  %v3726_v41 = vsel %vm2159_vm15, %v3636_v42, 0.0  ;;  %vm3866_vm11 = vmand %vm3862_vm9, %vm3865_vm10  ;;  %v3681_v53 = vsel %vm2159_vm15, %v3621_v13, 0.0  ;;  %v3678_v55 = vsel %vm2159_vm15, %v3620_v3, 0.0  ;;  %v5141_v18 = vld [vmem:[%s6986_s9 + $0x28] sm:$0xff]   ;;  %v2399_v12 = vld [vmem:[#allocation2 + $0x40] sm:$0xff] }
 0x65c   : > { %v3638_v58 = vmul.f32 %v6771_v20, %v6601_v24  ;;  %v3867_v40 = vsel %vm3866_vm11, %v6768_v7, 0.0  ;;  %v3622_v22 = vmul.f32 %v6771_v20, %v6495_v29  ;;  %v3737_v24 = vcombine.high %v6874_v17, %v6874_v17  ;;  %v5136_v7 = vld [vmem:[%s6986_s9] sm:$0xff]   ;;  %v5137_v29 = vld [vmem:[%s6986_s9 + $0x8] sm:$0xff]   ;;  %v5138_v20 = vld [vmem:[%s6986_s9 + $0x10] sm:$0xff]  }
 0x65d   : > { %v3869_v45 = vsel %vm3868_vm12, %v3867_v40, 0.0  ;;  %4542 = vmatpush3.bf16.msra.mxu1 %v5136_v7  ;;  %v3758_v34 = vunpack.c.h.bf16 %v2399_v12  ;;  %v3757_v61 = vunpack.c.l.bf16 %v2399_v12  ;;  %v3745_v42 = vunpack.c.l.bf16 %v2393_v6  ;;  %v2402_v13 = vld [vmem:[#allocation2 + $0x58] sm:$0xff] }
 0x65e   : > { %v3732_v32 = vsel %vm2159_vm15, %v3638_v58, 0.0  ;;  %v3684_v62 = vsel %vm2159_vm15, %v3622_v22, 0.0  ;;  %v3740_v47 = vpack.c.bf16 %v3737_v24, %v3737_v24  ;;  %4543 = vmatprep.subr.bf16.mxu1 %v5384_v37  ;;  %v3763_v40 = vunpack.c.l.bf16 %v2402_v13  ;;  %v2394_v22 = vld [vmem:[#allocation2 + $0x18] sm:$0xff] }
 0x65f   : > { %3652 = vadd.xlane.f32.xlu1 %v3651_v50  ;;  %3649 = vadd.xlane.f32.xlu0 %v3648_v5 }
 0x660   : > { %3853 = vmatprep.mubr.bf16.mxu0 %v3740_v47 }
 0x661   : > { %4544 = vmatpush3.bf16.msra.mxu1 %v5137_v29  ;;  %v3747_v29 = vunpack.c.l.bf16 %v2394_v22 }
 0x662   : > { %4545 = vmatprep.subr.bf16.mxu1 %v5384_v37 }
 0x663   : > { %3706 = vadd.xlane.f32.xlu1 %v3705_v43  ;;  %3703 = vadd.xlane.f32.xlu0 %v3702_v10  ;;  %v2391_v43 = vld [vmem:[#allocation2] sm:$0xff] }
 0x665   : > { %4546 = vmatpush3.bf16.msra.mxu1 %v5138_v20 }
 0x666   : > { %4547 = vmatprep.subr.bf16.mxu1 %v5384_v37 }
 0x667   : > { %3658 = vadd.xlane.f32.xlu1 %v3657_v21  ;;  %3655 = vadd.xlane.f32.xlu0 %v3654_v54  ;;  %v3741_v21 = vunpack.c.l.bf16 %v2391_v43  ;;  %v3742_v54 = vunpack.c.h.bf16 %v2391_v43 }
 0x669   : > { %4548 = vmatpush3.bf16.msra.mxu1 %v5139_v35  ;;  %v3748_v35 = vunpack.c.h.bf16 %v2394_v22 }
 0x66a   : > { %4549 = vmatprep.subr.bf16.mxu1 %v5384_v37 }
 0x66b   : > { %3712 = vadd.xlane.f32.xlu1 %v3711_v52  ;;  %3709 = vadd.xlane.f32.xlu0 %v3708_v57  ;;  %v3759_v57 = vunpack.c.l.bf16 %v2400_v2 }
 0x66d   : > { %4550 = vmatpush3.bf16.msra.mxu1 %v5140_v51  ;;  %v2403_v51 = vld [vmem:[#allocation2 + $0x60] sm:$0xff] }
 0x66e   : > { %4551 = vmatprep.subr.bf16.mxu1 %v5384_v37 }
 0x66f   : > { %3664 = vadd.xlane.f32.xlu1 %v3663_v48  ;;  %3661 = vadd.xlane.f32.xlu0 %v3660_v39  ;;  %v3760_v48 = vunpack.c.h.bf16 %v2400_v2  ;;  %v2392_v39 = vld [vmem:[#allocation2 + $0x8] sm:$0xff] }
 0x670   : > { %v3743_v0 = vunpack.c.l.bf16 %v2392_v39 }
 0x671   : > { %4552 = vmatpush3.bf16.msra.mxu1 %v5141_v18 }
 0x672   : > { %4553 = vmatprep.subr.bf16.mxu1 %v5384_v37 }
 0x673   : > { %3718 = vadd.xlane.f32.xlu1 %v3717_v44  ;;  %3715 = vadd.xlane.f32.xlu0 %v3714_v11 }
 0x677   : > { %3670 = vadd.xlane.f32.xlu1 %v3669_v25  ;;  %3667 = vadd.xlane.f32.xlu0 %v3666_v49  ;;  %v3744_v25 = vunpack.c.h.bf16 %v2392_v39  ;;  %v2401_v49 = vld [vmem:[#allocation2 + $0x50] sm:$0xff] }
 0x678   : > { %v3762_v14 = vunpack.c.h.bf16 %v2401_v49 }
 0x67b   : > { %3724 = vadd.xlane.f32.xlu1 %v3723_v56  ;;  %3721 = vadd.xlane.f32.xlu0 %v3720_v27  ;;  %v3761_v27 = vunpack.c.l.bf16 %v2401_v49 }
 0x67f   : > { %3676 = vadd.xlane.f32.xlu1 %v3675_v33  ;;  %3673 = vadd.xlane.f32.xlu0 %v3672_v31 }
 0x683   : > { %3730 = vadd.xlane.f32.xlu1 %v3729_v9  ;;  %3727 = vadd.xlane.f32.xlu0 %v3726_v41  ;;  %v3746_v41 = vunpack.c.h.bf16 %v2393_v6 }
 0x687   : > { %3682 = vadd.xlane.f32.xlu1 %v3681_v53  ;;  %3679 = vadd.xlane.f32.xlu0 %v3678_v55 }
 0x68b   : > { %3870 = vadd.xlane.f32.xlu1 %v3869_v45  ;;  %3733 = vadd.xlane.f32.xlu0 %v3732_v32  ;;  %v3764_v32 = vunpack.c.h.bf16 %v2402_v13 }
 0x68f   : > { %3685 = vadd.xlane.f32.xlu0 %v3684_v62 }
 0x6dc   : > { %v3692_v50 = vpop.xlane.xlu1 %3691  ;;  %v3689_v5 = vpop.xlane.xlu0 %3688 }
 0x6dd   : > { %v3790_v19 = vmul.f32 %v3758_v34, %v3692_v50  ;;  %v3789_v59 = vmul.f32 %v3757_v61, %v3689_v5  ;;  %v3765_v50 = vunpack.c.l.bf16 %v2403_v51 }
 0x6df   : > { %v3813_v10 = vpack.c.bf16 %v3790_v19, %v3789_v59  ;;  %v3766_v19 = vunpack.c.h.bf16 %v2403_v51  ;;  %v2395_v59 = vld [vmem:[#allocation2 + $0x20] sm:$0xff] }
 0x6e0   : > { %v3695_v16 = vpop.xlane.xlu1 %3694  ;;  %v3641_v28 = vpop.xlane.xlu0 %3640  ;;  %v3750_v2 = vunpack.c.h.bf16 %v2395_v59 }
 0x6e1   : > { %4470 = vmatprep.subr.bf16.mxu0 %v3813_v10  ;;  %v3773_v23 = vmul.f32 %v3741_v21, %v3641_v28  ;;  %v3791_v11 = vmul.f32 %v3759_v57, %v3695_v16  ;;  %v3749_v21 = vunpack.c.l.bf16 %v2395_v59  ;;  %v5144_v59 = vld [vmem:[%s6988_s11] sm:$0xff]  }
 0x6e4   : > { %v3647_v26 = vpop.xlane.xlu1 %3646  ;;  %v3644_v52 = vpop.xlane.xlu0 %3643 }
 0x6e5   : > { %v3774_v36 = vmul.f32 %v3742_v54, %v3644_v52  ;;  %v3775_v56 = vmul.f32 %v3743_v0, %v3647_v26  ;;  %v2404_v26 = vld [vmem:[#allocation2 + $0x68] sm:$0xff] }
 0x6e7   : > { %v3805_v60 = vpack.c.bf16 %v3774_v36, %v3773_v23 }
 0x6e8   : > { %v3701_v30 = vpop.xlane.xlu1 %3700  ;;  %v3698_v44 = vpop.xlane.xlu0 %3697 }
 0x6e9   : > { %v3792_v63 = vmul.f32 %v3760_v48, %v3698_v44  ;;  %4471 = vmatpush3.bf16.msra.mxu0 %v3805_v60  ;;  %v3793_v46 = vmul.f32 %v3761_v27, %v3701_v30  ;;  %v3767_v48 = vunpack.c.l.bf16 %v2404_v26  ;;  %v3768_v60 = vunpack.c.h.bf16 %v2404_v26  ;;  %v2396_v30 = vld [vmem:[#allocation2 + $0x28] sm:$0xff] }
 0x6eb   : > { %v3814_v15 = vpack.c.bf16 %v3792_v63, %v3791_v11 }
 0x6ec   : > { %v3653_v1 = vpop.xlane.xlu1 %3652  ;;  %v3650_v38 = vpop.xlane.xlu0 %3649 }
 0x6ed   : > { %v3776_v4 = vmul.f32 %v3744_v25, %v3650_v38  ;;  %4472 = vmatprep.subr.bf16.mxu0 %v3814_v15  ;;  %v3777_v58 = vmul.f32 %v3745_v42, %v3653_v1  ;;  %v3751_v25 = vunpack.c.l.bf16 %v2396_v30  ;;  %v3752_v15 = vunpack.c.h.bf16 %v2396_v30  ;;  %v2405_v1 = vld [vmem:[#allocation2 + $0x70] sm:$0xff] }
 0x6ee   : > { %v3770_v6 = vunpack.c.h.bf16 %v2405_v1 }
 0x6ef   : > { %v3806_v8 = vpack.c.bf16 %v3776_v4, %v3775_v56  ;;  %v3769_v4 = vunpack.c.l.bf16 %v2405_v1 }
 0x6f0   : > { %v3707_v33 = vpop.xlane.xlu1 %3706  ;;  %v3704_v31 = vpop.xlane.xlu0 %3703 }
 0x6f1   : > { %v3794_v9 = vmul.f32 %v3762_v14, %v3704_v31  ;;  %4473 = vmatpush3.bf16.msra.mxu0 %v3806_v8  ;;  %v3795_v7 = vmul.f32 %v3763_v40, %v3707_v33  ;;  %v2397_v33 = vld [vmem:[#allocation2 + $0x30] sm:$0xff] }
 0x6f2   : > { %v3754_v13 = vunpack.c.h.bf16 %v2397_v33 }
 0x6f3   : > { %v3815_v3 = vpack.c.bf16 %v3794_v9, %v3793_v46  ;;  %v3753_v9 = vunpack.c.l.bf16 %v2397_v33 }
 0x6f4   : > { %v3659_v53 = vpop.xlane.xlu1 %3658  ;;  %v3656_v55 = vpop.xlane.xlu0 %3655 }
 0x6f5   : > { %v3778_v45 = vmul.f32 %v3746_v41, %v3656_v55  ;;  %4474 = vmatprep.subr.bf16.mxu0 %v3815_v3  ;;  %v3779_v61 = vmul.f32 %v3747_v29, %v3659_v53  ;;  %v2406_v3 = vld [vmem:[#allocation2 + $0x78] sm:$0xff] }
 0x6f6   : > { %v3772_v22 = vunpack.c.h.bf16 %v2406_v3 }
 0x6f7   : > { %v3807_v62 = vpack.c.bf16 %v3778_v45, %v3777_v58  ;;  %v3771_v45 = vunpack.c.l.bf16 %v2406_v3 }
 0x6f8   : > { %v3713_v24 = vpop.xlane.xlu1 %3712  ;;  %v3710_v47 = vpop.xlane.xlu0 %3709 }
 0x6f9   : > { %v3796_v20 = vmul.f32 %v3764_v32, %v3710_v47  ;;  %4475 = vmatpush3.bf16.msra.mxu0 %v3807_v62  ;;  %v3797_v28 = vmul.f32 %v3765_v50, %v3713_v24  ;;  %v2398_v62 = vld [vmem:[#allocation2 + $0x38] sm:$0xff] }
 0x6fa   : > { %v3755_v29 = vunpack.c.l.bf16 %v2398_v62 }
 0x6fb   : > { %v3816_v18 = vpack.c.bf16 %v3796_v20, %v3795_v7 }
 0x6fc   : > { %v3665_v12 = vpop.xlane.xlu1 %3664  ;;  %v3662_v34 = vpop.xlane.xlu0 %3661 }
 0x6fd   : > { %v3780_v5 = vmul.f32 %v3748_v35, %v3662_v34  ;;  %4476 = vmatprep.subr.bf16.mxu0 %v3816_v18  ;;  %v3781_v36 = vmul.f32 %v3749_v21, %v3665_v12  ;;  %v3756_v35 = vunpack.c.h.bf16 %v2398_v62 }
 0x6ff   : > { %v3808_v43 = vpack.c.bf16 %v3780_v5, %v3779_v61  ;;  %v3739_v5 = vpack.c.bf16 %v6874_v17, %v6874_v17  ;;  %v5143_v17 = vld [vmem:[%s6986_s9 + $0x38] sm:$0xff]  }
 0x700   : > { %v3719_v10 = vpop.xlane.xlu1 %3718  ;;  %v3716_v16 = vpop.xlane.xlu0 %3715 }
 0x701   : > { %v3798_v54 = vmul.f32 %v3766_v19, %v3716_v16  ;;  %4477 = vmatpush3.bf16.msra.mxu0 %v3808_v43  ;;  %v3799_v63 = vmul.f32 %v3767_v48, %v3719_v10  ;;  %v5142_v19 = vld [vmem:[%s6986_s9 + $0x30] sm:$0xff]   ;;  %v5145_v43 = vld [vmem:[%s6988_s11 + $0x8] sm:$0xff]   ;;  %v5147_v48 = vld [vmem:[%s6988_s11 + $0x18] sm:$0xff]  }
 0x702   : > { %4554 = vmatpush3.bf16.msra.mxu1 %v5142_v19 }
 0x703   : > { %v3817_v52 = vpack.c.bf16 %v3798_v54, %v3797_v28  ;;  %4555 = vmatprep.subr.bf16.mxu1 %v5384_v37 }
 0x704   : > { %v3671_v57 = vpop.xlane.xlu1 %3670  ;;  %v3668_v23 = vpop.xlane.xlu0 %3667 }
 0x705   : > { %v3782_v39 = vmul.f32 %v3750_v2, %v3668_v23  ;;  %4478 = vmatprep.subr.bf16.mxu0 %v3817_v52  ;;  %v3783_v27 = vmul.f32 %v3751_v25, %v3671_v57 }
 0x706   : > { %4556 = vmatpush3.bf16.msra.mxu1 %v5143_v17 }
 0x707   : > { %v3809_v44 = vpack.c.bf16 %v3782_v39, %v3781_v36  ;;  %4573 = vmatprep.subr.bf16.mxu1 %v5384_v37  ;;  %v5146_v36 = vld [vmem:[%s6988_s11 + $0x10] sm:$0xff]   ;;  %v5148_v39 = vld [vmem:[%s6990_s13] sm:$0xff]  }
 0x708   : > { %v3725_v11 = vpop.xlane.xlu1 %3724  ;;  %v3722_v0 = vpop.xlane.xlu0 %3721 }
 0x709   : > { %v3800_v49 = vmul.f32 %v3768_v60, %v3722_v0  ;;  %4479 = vmatpush3.bf16.msra.mxu0 %v3809_v44  ;;  %v3801_v42 = vmul.f32 %v3769_v4, %v3725_v11  ;;  %v4431_v60 = vld [vmem:[%s6987_s10] ss:$0 sm:$0xff] }
 0x70b   : > { %v3818_v38 = vpack.c.bf16 %v3800_v49, %v3799_v63 }
 0x70c   : > { %v3674_v56 = vpop.xlane.xlu0 %3673  ;;  %v3677_v8 = vpop.xlane.xlu1 %3676 }
 0x70d   : > { %v3784_v14 = vmul.f32 %v3752_v15, %v3674_v56  ;;  %4480 = vmatprep.subr.bf16.mxu0 %v3818_v38  ;;  %v3785_v40 = vmul.f32 %v3753_v9, %v3677_v8  ;;  %v5149_v15 = vld [vmem:[%s6990_s13 + $0x8] sm:$0xff]   ;;  %v4446_v8 = vld [vmem:[%s7014_s8] ss:$0 sm:$0xff] }
 0x70f   : > { %v3810_v31 = vpack.c.bf16 %v3784_v14, %v3783_v27 }
 0x710   : > { %v3728_v46 = vpop.xlane.xlu0 %3727  ;;  %v3731_v55 = vpop.xlane.xlu1 %3730 }
 0x711   : > { %v3802_v41 = vmul.f32 %v3770_v6, %v3728_v46  ;;  %4481 = vmatpush3.bf16.msra.mxu0 %v3810_v31  ;;  %v3803_v7 = vmul.f32 %v3771_v45, %v3731_v55 }
 0x713   : > { %v3819_v53 = vpack.c.bf16 %v3802_v41, %v3801_v42 }
 0x714   : > { %v3680_v58 = vpop.xlane.xlu0 %3679  ;;  %v3683_v51 = vpop.xlane.xlu1 %3682 }
 0x715   : > { %v3786_v32 = vmul.f32 %v3754_v13, %v3680_v58  ;;  %4482 = vmatprep.subr.bf16.mxu0 %v3819_v53  ;;  %v3787_v34 = vmul.f32 %v3755_v29, %v3683_v51 }
 0x717   : > { %v3811_v24 = vpack.c.bf16 %v3786_v32, %v3785_v40 }
 0x718   : > { %v3734_v47 = vpop.xlane.xlu0 %3733  ;;  %v3871_v10 = vpop.xlane.xlu1 %3870 }
 0x719   : > { %v3804_v20 = vmul.f32 %v3772_v22, %v3734_v47  ;;  %4483 = vmatpush3.bf16.msra.mxu0 %v3811_v24  ;;  %v3872_v16 = vmax.f32 %v3871_v10, 1e-06 }
 0x71b   : > { %v3820_v18 = vpack.c.bf16 %v3804_v20, %v3803_v7  ;;  %5152 = vrcp.f32 %v3872_v16 }
 0x71c   : > { %v3686_v12 = vpop.xlane.xlu0 %3685 }
 0x71d   : > { %v3788_v61 = vmul.f32 %v3756_v35, %v3686_v12  ;;  %4484 = vmatprep.subr.bf16.mxu0 %v3820_v18 }
 0x71f   : > { %v3812_v50 = vpack.c.bf16 %v3788_v61, %v3787_v34 }
 0x721   : > { %4485 = vmatpush3.bf16.msra.mxu0 %v3812_v50 }
 0x722   : > { %4561 = vmatprep.subr.bf16.mxu0 %v5384_v37 }
 0x724   : > { %3854 = vmatmul.mubr.bf16.vlgmr.msra.gmra.mrb[0].mxu0 %v3739_v5 }
 0x725   : > { %4569 = vmatprep.mubr.msk.bf16.mxu0 %vm5385_vm13, %v5384_v37  ;;  %4562 = vmatpush3.bf16.msra.mxu0 %v5144_v59  ;;  %v5153_v26 = vpop.eup %5152 }
 0x726   : > { %4563 = vmatprep.subr.bf16.mxu0 %v5384_v37 }
 0x729   : > { %4564 = vmatpush3.bf16.msra.mxu0 %v5145_v43 }
 0x72a   : > { %4565 = vmatprep.subr.bf16.mxu0 %v5384_v37 }
 0x72d   : > { %4566 = vmatpush3.bf16.msra.mxu0 %v5146_v36 }
 0x72e   : > { %4567 = vmatprep.subr.bf16.mxu0 %v5384_v37 }
 0x731   : > { %4568 = vmatpush3.bf16.msra.mxu0 %v5147_v48 }
 0x7f7   : > { %v4486_v28 = vpop.f32.mrb[0].mxu0 }
 0x7f8   : > { %v4487_v21 = vpop.f32.mrb[1].mxu0 }
 0x7f9   : > { %v4488_v54 = vadd.f32 %v4487_v21, %v4486_v28  ;;  %v4489_v2 = vpop.f32.mrb[2].mxu0 }
 0x7fa   : > { %v4490_v52 = vpop.f32.mrb[3].mxu0 }
 0x7fb   : > { %v3874_v57 = vmul.f32 %v5153_v26, %v4488_v54 }
 0x7fd   : > { %v3875_v23 = vpack.c.bf16 %v3874_v57, %v3874_v57 }
 0x7ff   : > { %4558 = vmatmul.mubr.bf16.vlgmr.msra.gmra.mrb[0].mxu1 %v3875_v23 }
 0x800   : > { %4577 = vmatprep.mubr.msk.bf16.mxu1 %vm5385_vm13, %v5384_v37  ;;  %4574 = vmatpush3.bf16.msra.mxu1 %v5148_v39 }
 0x801   : > { %4575 = vmatprep.subr.bf16.mxu1 %v5384_v37  ;;  %v4440_v37 = vld [vmem:[%s7013_s18] ss:$0 sm:$0xff] }
 0x804   : > { %4576 = vmatpush3.bf16.msra.mxu1 %v5149_v15 }
 0x8d2   : > { %v3981_v30 = vpop.f32.mrb[0].mxu1 }
 0x8d3   : > { %v3982_v44 = vadd.f32 %v4431_v60, %v3981_v30  ;;  %v4559_v11 = vpop.f32.mrb[1].mxu1 }
 0x8d4   : > { %v3984_v0 = vpop.f32.mrb[2].mxu1 }
 0x8d5   : > { %v3987_v63 = vmax.f32 %v3982_v44, 0.0  ;;  %v4560_v25 = vpop.f32.mrb[3].mxu1 }
 0x8d7   : > { %v3988_v49 = vpack.c.bf16 %v3987_v63, %v3987_v63 }
 0x8d9   : > { %4570 = vmatmul.mubr.msk.bf16.vlgmr.msra.gmra.mrb[4].mxu0 %vm4028_vm14, %v3988_v49 }
 0x9ac   : > { %v4066_v1 = vpop.f32.mrb[4].mxu0 }
 0x9ad   : > { %v4067_v38 = vadd.f32 %v4440_v37, %v4066_v1  ;;  %v4571_v56 = vpop.f32.mrb[5].mxu0 }
 0x9ae   : > { %v4069_v27 = vpop.f32.mrb[6].mxu0 }
 0x9af   : > { %v4072_v4 = vmax.f32 %v4067_v38, 0.0  ;;  %v4572_v14 = vpop.f32.mrb[7].mxu0 }
 0x9b1   : > { %v4073_v6 = vpack.c.bf16 %v4072_v4, %v4072_v4 }
 0x9b3   : > { %4578 = vmatmul.mubr.msk.bf16.vlgmr.msra.gmra.mrb[4].mxu1 %vm2159_vm15, %v4073_v6 }
 0xa86   : > { %v4134_v33 = vpop.f32.mrb[4].mxu1 }
 0xa87   : > { %v4135_v31 = vadd.f32 %v4446_v8, %v4134_v33  ;;  %v4579_v46 = vpop.f32.mrb[5].mxu1 }
 0xa88   : > { %v4137_v42 = vpop.f32.mrb[6].mxu1 }
 0xa89   : > { %4141 = vst.msk [vmem:[#allocation14] sm:$0xf] %vm4140_vm0, %v4135_v31  ;;  %v4580_v9 = vpop.f32.mrb[7].mxu1 }
 0xa8a PF: > { %p4792_p8 = scmp.eq.s32.totalorder %s5476_s23, 1  ;;  %s5386_s26 = smov [#allocation14]  }
 0xa8b   : > { %s4149_s24 = sshll.u32 %s5386_s26, 4  ;;  %s4150_s24 = int_to_ptr.vmem [resolvable:$true] %s4149_s24 }
 0xa8c   : > { %s5326_s28 = scalar_lea.vmem %s4150_s24, 64  ;;  %p5333_p12 = scmp.lt.s32.totalorder %s4150_s24, %s4150_s24 }
 0xa8d   : > { %p5327_p9 = scmp.ne.s32.totalorder %s4150_s24, %s5326_s28  ;;  %p5334_p13 = scmp.lt.s32.totalorder %s5326_s28, %s5326_s28 }
 0xa8f   : > { %p5328_p10 = pnand %p5327_p9, %p4792_p8  ;;  %p5335_p2 = por %p5334_p13, %p5333_p12 }
 0xa91   : > { %p5329_p11 = pneg %p5328_p10 }
 0xa93   : > { %p5336_p7 = pnand %p5335_p2, %p5329_p11 }
 0xa95   : > { %5339 = shalt.err (!%p5336_p7)
}
 0xa96   : > { %s7015_s25 = sld [smem:[#allocation22_spill]] }
 0xa9c   : > { %s5340_s16 = scalar_lea.hbm %s7015_s25, 64 }
 0xa9d   : > { %p5341_p3 = scmp.ne.s32.totalorder %s7015_s25, %s5340_s16  ;;  %p5346_p5 = scmp.lt.u32.totalorder %s5340_s16, %s7015_s25 }
 0xa9f   : > { %p5342_p0 = pnand %p5341_p3, %p4792_p8 }
 0xaa1   : > { %p5343_p1 = pneg %p5342_p0 }
 0xaa3   : > { %p5348_p4 = pnand %p5346_p5, %p5343_p1 }
 0xaa5   : > { %5351 = shalt.err (!%p5348_p4)
}
 0xaa6   : > { %4763 = dma.vmem_to_hbm [thread:$0]  (%p4792_p8), %s4150_s24, 64, %s7015_s25, [#allocation7]  }
 0xaa7   : > { %5369 = dma.done.wait (%p4792_p8), [#allocation7], 64  }
 0xaa8   : > { %5371 = vsyncadd (%p4792_p8), [#allocation7], 4294967232 }
 0xaa9 PF: > { %s7016_s30 = sld [smem:[#allocation19_spill]] }
 0xaaf   : > { %s30_s20 = sadd.s32 1, %s7016_s30  }
 0xab0   : > { %p27_p6 = scmp.ge.s32.totalorder %s30_s20, 4  }
 0xab2   :  { %29 = sbr.rel (!%p27_p6) target bundleno = 9 (0x9), region = 134 }
 0xab9   :  { %4162 = vsyncpa [#allocation6], 1 }
 0xaba   :  { %4164 = vsyncpa [#allocation6 + $0x1], 1 }
 0xabb   :  { %4165 = vsyncpa [#allocation9], 1 }
 0xabc   :  { %4166 = vsyncpa [#allocation12], 1 }
 0xabd   :  { %4167 = vsyncpa [#allocation7], 1 }
 0xabe   :  { %4169 = vsyncpa [#allocation7 + $0x1], 1 }

</bundles_post_ra>
